<compile_context>
chip_gen: v7x
topology: tpu7x:2x2x1
jax: 0.10.0
libtpu: 0.0.40
codegen_flags: <defaults>
</compile_context>

<pallas_src>
import functools

import jax
import jax.numpy as jnp
from jax import lax
from jax.experimental import pallas as pl
from jax.experimental.pallas import tpu as pltpu

LANE = 128


# ------------------------------ Pallas kernel -------------------------------

def _basic_block_kernel(x_ref, w1_ref, b1_ref, w2_ref, b2_ref, o_ref,
                        acc1_ref, y1_ref, acc2_ref, *, tile_h, H, W, cpad):
    """Fused BasicBlock forward for one (batch, row-tile) block.

    x_ref  : (1, 1, tile_h+4, W+2, cpad) bf16   input tile with 2-row/1-col zero halo
    w*_ref : (9, cpad, cpad) bf16               per-tap weight matrices, BN scale folded
    b*_ref : (1, cpad) f32                      folded BN bias
    o_ref  : (1, 1, tile_h, W, cpad) f32
    """
    th1 = tile_h + 2  # rows of y1 needed (1-row halo each side for conv2)

    # ---- conv1 (3x3, pad 1) + bn1 + relu: 9 accumulated MXU matmuls --------
    acc1_ref[...] = jnp.zeros_like(acc1_ref)
    for k in range(9):
        dy, dx = k // 3, k % 3
        patch = x_ref[0, 0, dy:dy + th1, dx:dx + W, :].reshape(th1 * W, cpad)
        acc1_ref[...] += jnp.dot(patch, w1_ref[k],
                                 preferred_element_type=jnp.float32)
    y1 = jnp.maximum(acc1_ref[...] + b1_ref[...], 0.0).reshape(th1, W, cpad)

    # y1 rows that fall outside the image are conv2's zero padding -> mask them.
    h = pl.program_id(1)
    row = h * tile_h - 1 + lax.broadcasted_iota(jnp.int32, (th1, 1, 1), 0)
    y1 = jnp.where((row >= 0) & (row < H), y1, 0.0)

    # Stash y1 in VMEM (bf16) with a 1-column zero border (conv2's W padding).
    y1_ref[...] = jnp.zeros_like(y1_ref)
    y1_ref[:, 1:1 + W, :] = y1.astype(y1_ref.dtype)

    # ---- conv2 (3x3, pad 1) + bn2 + identity + relu ------------------------
    acc2_ref[...] = jnp.zeros_like(acc2_ref)
    for k in range(9):
        dy, dx = k // 3, k % 3
        patch = y1_ref[dy:dy + tile_h, dx:dx + W, :].reshape(tile_h * W, cpad)
        acc2_ref[...] += jnp.dot(patch, w2_ref[k],
                                 preferred_element_type=jnp.float32)

    identity = x_ref[0, 0, 2:2 + tile_h, 1:1 + W, :].astype(jnp.float32)
    identity = identity.reshape(tile_h * W, cpad)
    out = jnp.maximum(acc2_ref[...] + b2_ref[...] + identity, 0.0)
    o_ref[0, 0] = out.reshape(tile_h, W, cpad)


# ------------------------------- glue (JAX) ---------------------------------

def _fold_bn_into_conv(w_oihw, gamma, beta, mean, var, cpad, eps=1e-5):
    """Fold eval-mode BN into the conv: returns (9, cpad, cpad) bf16 weight
    matrices (tap-major, [cin, cout]) and a (1, cpad) f32 bias."""
    cout, cin = w_oihw.shape[0], w_oihw.shape[1]
    s = gamma / jnp.sqrt(var + eps)
    bias = beta - mean * s
    w = w_oihw * s[:, None, None, None]                         # scale folded in
    wt = jnp.transpose(w, (2, 3, 1, 0)).reshape(9, cin, cout)   # [ky*3+kx, i, o]
    wt = jnp.pad(wt, ((0, 0), (0, cpad - cin), (0, cpad - cout)))
    bp = jnp.pad(bias, (0, cpad - cout)).reshape(1, cpad)
    return wt.astype(jnp.bfloat16), bp.astype(jnp.float32)


def basic_block_forward(x_nchw, params):
    N, C, H, W = x_nchw.shape
    cout = params["conv1_w"].shape[0]
    assert cout == C, "identity shortcut requires Cin == Cout (downsample=None)"
    cpad = ((max(C, cout) + LANE - 1) // LANE) * LANE   # lane-dense channels

    # Row-tile size (assumes W % 8 == 0 for clean lane/sublane reshapes).
    tile_h = 8 if H % 8 == 0 else H
    num_h = H // tile_h

    # NCHW -> NHWC, pad channels to 128, add the zero halo (2 rows / 1 col per
    # side), slice into overlapping row tiles, cast matmul operands to bf16.
    x = jnp.transpose(x_nchw, (0, 2, 3, 1)).astype(jnp.float32)
    x = jnp.pad(x, ((0, 0), (2, 2), (1, 1), (0, cpad - C)))
    x_tiles = jnp.stack(
        [x[:, h * tile_h: h * tile_h + tile_h + 4] for h in range(num_h)],
        axis=1).astype(jnp.bfloat16)           # (N, num_h, tile_h+4, W+2, cpad)

    w1t, b1 = _fold_bn_into_conv(params["conv1_w"], params["bn1_gamma"],
                                 params["bn1_beta"], params["bn1_mean"],
                                 params["bn1_var"], cpad)
    w2t, b2 = _fold_bn_into_conv(params["conv2_w"], params["bn2_gamma"],
                                 params["bn2_beta"], params["bn2_mean"],
                                 params["bn2_var"], cpad)

    kernel = functools.partial(_basic_block_kernel, tile_h=tile_h, H=H, W=W,
                               cpad=cpad)

    out = pl.pallas_call(
        kernel,
        out_shape=jax.ShapeDtypeStruct((N, num_h, tile_h, W, cpad), jnp.float32),
        grid_spec=pltpu.PrefetchScalarGridSpec(
            num_scalar_prefetch=0,
            grid=(N, num_h),
            in_specs=[
                pl.BlockSpec((1, 1, tile_h + 4, W + 2, cpad),
                             lambda n, h: (n, h, 0, 0, 0)),
                pl.BlockSpec((9, cpad, cpad), lambda n, h: (0, 0, 0)),   # w1 (resident)
                pl.BlockSpec((1, cpad), lambda n, h: (0, 0)),            # b1 (resident)
                pl.BlockSpec((9, cpad, cpad), lambda n, h: (0, 0, 0)),   # w2 (resident)
                pl.BlockSpec((1, cpad), lambda n, h: (0, 0)),            # b2 (resident)
            ],
            out_specs=pl.BlockSpec((1, 1, tile_h, W, cpad),
                                   lambda n, h: (n, h, 0, 0, 0)),
            scratch_shapes=[
                pltpu.VMEM(((tile_h + 2) * W, cpad), jnp.float32),    # conv1 acc
                pltpu.VMEM((tile_h + 2, W + 2, cpad), jnp.bfloat16),  # y1 + border
                pltpu.VMEM((tile_h * W, cpad), jnp.float32),          # conv2 acc
            ],
        ),
        compiler_params=pltpu.CompilerParams(
            dimension_semantics=("parallel", "parallel"),
        ),
    )(x_tiles, w1t, b1, w2t, b2)

    out = out.reshape(N, H, W, cpad)[..., :C]
    return jnp.transpose(out, (0, 3, 1, 2))                 # back to NCHW


# --------------------------- pure-JAX reference -----------------------------

def reference_forward(x, params, eps=1e-5):
    def conv(x, w):
        return lax.conv_general_dilated(
            x, w, window_strides=(1, 1), padding=((1, 1), (1, 1)),
            dimension_numbers=("NCHW", "OIHW", "NCHW"))

    def bn(x, g, b, m, v):
        g = g[None, :, None, None]; b = b[None, :, None, None]
        m = m[None, :, None, None]; v = v[None, :, None, None]
        return (x - m) / jnp.sqrt(v + eps) * g + b

    out = jnp.maximum(bn(conv(x, params["conv1_w"]), params["bn1_gamma"],
                         params["bn1_beta"], params["bn1_mean"],
                         params["bn1_var"]), 0.0)
    out = bn(conv(out, params["conv2_w"]), params["bn2_gamma"],
             params["bn2_beta"], params["bn2_mean"], params["bn2_var"])
    out = out + x
    return jnp.maximum(out, 0.0)


# ---------------------------------- main ------------------------------------

if __name__ == "__main__":
    # BasicBlock(inplanes=4, planes=4, downsample=None) -> stride=1
    N, C, H, W = 2, 4, 16, 16
    planes = C

    key = jax.random.PRNGKey(0)
    ks = jax.random.split(key, 11)

    params = {
        "conv1_w":  (0.1 * jax.random.normal(ks[0], (planes, C, 3, 3))).astype(jnp.float32),
        "conv2_w":  (0.1 * jax.random.normal(ks[1], (planes, planes, 3, 3))).astype(jnp.float32),
        "bn1_gamma": jax.random.uniform(ks[2], (planes,), minval=0.5, maxval=1.5).astype(jnp.float32),
        "bn1_beta":  (0.1 * jax.random.normal(ks[3], (planes,))).astype(jnp.float32),
        "bn1_mean":  (0.1 * jax.random.normal(ks[4], (planes,))).astype(jnp.float32),
        "bn1_var":   jax.random.uniform(ks[5], (planes,), minval=0.5, maxval=1.5).astype(jnp.float32),
        "bn2_gamma": jax.random.uniform(ks[6], (planes,), minval=0.5, maxval=1.5).astype(jnp.float32),
        "bn2_beta":  (0.1 * jax.random.normal(ks[7], (planes,))).astype(jnp.float32),
        "bn2_mean":  (0.1 * jax.random.normal(ks[8], (planes,))).astype(jnp.float32),
        "bn2_var":   jax.random.uniform(ks[9], (planes,), minval=0.5, maxval=1.5).astype(jnp.float32),
    }

    x = jax.random.normal(ks[10], (N, C, H, W), dtype=jnp.float32)

    fwd = jax.jit(lambda xx: basic_block_forward(xx, params))
    out = jax.block_until_ready(fwd(x))
    ref = jax.block_until_ready(reference_forward(x, params))

    assert out.shape == (N, C, H, W)
    # bf16 matmul operands -> relaxed tolerance vs the f32 reference.
    err = float(jnp.max(jnp.abs(out - ref)))
    assert err < 1e-1, err

    print("KERNEL_OK")
</pallas_src>

<mosaic_0001>
module attributes {stable_mosaic.version = 11 : i64} {
  func.func @_basic_block_kernel(%arg0: i32, %arg1: i32, %arg2: memref<1x1x12x18x128xbf16, #tpu.memory_space<vmem>>, %arg3: memref<9x128x128xbf16, #tpu.memory_space<vmem>>, %arg4: memref<1x128xf32, #tpu.memory_space<vmem>>, %arg5: memref<9x128x128xbf16, #tpu.memory_space<vmem>>, %arg6: memref<1x128xf32, #tpu.memory_space<vmem>>, %arg7: memref<1x1x8x16x128xf32, #tpu.memory_space<vmem>>, %arg8: memref<160x128xf32, #tpu.memory_space<vmem>>, %arg9: memref<10x18x128xbf16, #tpu.memory_space<vmem>>, %arg10: memref<128x128xf32, #tpu.memory_space<vmem>>) attributes {dimension_semantics = [#tpu.dimension_semantics<parallel>, #tpu.dimension_semantics<parallel>], iteration_bounds = array<i64: 2, 2>, scalar_prefetch = 0 : i64, scratch_operands = 3 : i64, tpu.core_type = #tpu.core_type<tc>, window_params = [{transform_indices = @transform_0, window_bounds = array<i64: 1, 1, 12, 18, 128>}, {pipeline_mode = #tpu.pipeline_mode<synchronous>, transform_indices = @transform_1, window_bounds = array<i64: 9, 128, 128>}, {pipeline_mode = #tpu.pipeline_mode<synchronous>, transform_indices = @transform_2, window_bounds = array<i64: 1, 128>}, {pipeline_mode = #tpu.pipeline_mode<synchronous>, transform_indices = @transform_3, window_bounds = array<i64: 9, 128, 128>}, {pipeline_mode = #tpu.pipeline_mode<synchronous>, transform_indices = @transform_4, window_bounds = array<i64: 1, 128>}, {transform_indices = @transform_5, window_bounds = array<i64: 1, 1, 8, 16, 128>}]} {
    %cst = arith.constant 0.000000e+00 : f32
    %0 = vector.broadcast %cst : f32 to vector<160x128xf32>
    %c0 = arith.constant 0 : index
    %c0_0 = arith.constant 0 : index
    %1 = vector.load %arg8[%c0, %c0_0] : memref<160x128xf32, #tpu.memory_space<vmem>>, vector<160x128xf32>
    tpu.vector_store %arg8[%c0, %c0_0], %0 {strides = array<i32>} : memref<160x128xf32, #tpu.memory_space<vmem>>, vector<160x128xf32>,
    %c0_1 = arith.constant 0 : index
    %c0_2 = arith.constant 0 : index
    %c0_3 = arith.constant 0 : index
    %c0_4 = arith.constant 0 : index
    %c0_5 = arith.constant 0 : index
    %2 = vector.load %arg2[%c0_1, %c0_2, %c0_3, %c0_4, %c0_5] : memref<1x1x12x18x128xbf16, #tpu.memory_space<vmem>>, vector<1x1x10x16x128xbf16>
    %3 = vector.shape_cast %2 : vector<1x1x10x16x128xbf16> to vector<10x16x128xbf16>
    %4 = vector.shape_cast %3 : vector<10x16x128xbf16> to vector<160x128xbf16>
    %c0_6 = arith.constant 0 : index
    %c0_7 = arith.constant 0 : index
    %5 = vector.load %arg8[%c0_6, %c0_7] : memref<160x128xf32, #tpu.memory_space<vmem>>, vector<160x128xf32>
    %c0_8 = arith.constant 0 : index
    %c0_9 = arith.constant 0 : index
    %c0_10 = arith.constant 0 : index
    %6 = vector.load %arg3[%c0_8, %c0_9, %c0_10] : memref<9x128x128xbf16, #tpu.memory_space<vmem>>, vector<1x128x128xbf16>
    %7 = vector.shape_cast %6 : vector<1x128x128xbf16> to vector<128x128xbf16>
    %cst_11 = arith.constant dense<0.000000e+00> : vector<160x128xf32>
    %8 = tpu.matmul %4, %7, %cst_11 {dimension_numbers = #tpu.dot_dimension_numbers<[1], [0], [0], [1], [0, 0, 1, 1], [], []>} : vector<160x128xbf16>, vector<128x128xbf16>, vector<160x128xf32> -> vector<160x128xf32>
    %9 = arith.addf %5, %8 : vector<160x128xf32>
    %c0_12 = arith.constant 0 : index
    %c0_13 = arith.constant 0 : index
    %10 = vector.load %arg8[%c0_12, %c0_13] : memref<160x128xf32, #tpu.memory_space<vmem>>, vector<160x128xf32>
    tpu.vector_store %arg8[%c0_12, %c0_13], %9 {strides = array<i32>} : memref<160x128xf32, #tpu.memory_space<vmem>>, vector<160x128xf32>,
    %c0_14 = arith.constant 0 : index
    %c0_15 = arith.constant 0 : index
    %c0_16 = arith.constant 0 : index
    %c1 = arith.constant 1 : index
    %c0_17 = arith.constant 0 : index
    %11 = vector.load %arg2[%c0_14, %c0_15, %c0_16, %c1, %c0_17] : memref<1x1x12x18x128xbf16, #tpu.memory_space<vmem>>, vector<1x1x10x16x128xbf16>
    %12 = vector.shape_cast %11 : vector<1x1x10x16x128xbf16> to vector<10x16x128xbf16>
    %13 = vector.shape_cast %12 : vector<10x16x128xbf16> to vector<160x128xbf16>
    %c0_18 = arith.constant 0 : index
    %c0_19 = arith.constant 0 : index
    %14 = vector.load %arg8[%c0_18, %c0_19] : memref<160x128xf32, #tpu.memory_space<vmem>>, vector<160x128xf32>
    %c1_20 = arith.constant 1 : index
    %c0_21 = arith.constant 0 : index
    %c0_22 = arith.constant 0 : index
    %15 = vector.load %arg3[%c1_20, %c0_21, %c0_22] : memref<9x128x128xbf16, #tpu.memory_space<vmem>>, vector<1x128x128xbf16>
    %16 = vector.shape_cast %15 : vector<1x128x128xbf16> to vector<128x128xbf16>
    %cst_23 = arith.constant dense<0.000000e+00> : vector<160x128xf32>
    %17 = tpu.matmul %13, %16, %cst_23 {dimension_numbers = #tpu.dot_dimension_numbers<[1], [0], [0], [1], [0, 0, 1, 1], [], []>} : vector<160x128xbf16>, vector<128x128xbf16>, vector<160x128xf32> -> vector<160x128xf32>
    %18 = arith.addf %14, %17 : vector<160x128xf32>
    %c0_24 = arith.constant 0 : index
    %c0_25 = arith.constant 0 : index
    %19 = vector.load %arg8[%c0_24, %c0_25] : memref<160x128xf32, #tpu.memory_space<vmem>>, vector<160x128xf32>
    tpu.vector_store %arg8[%c0_24, %c0_25], %18 {strides = array<i32>} : memref<160x128xf32, #tpu.memory_space<vmem>>, vector<160x128xf32>,
    %c0_26 = arith.constant 0 : index
    %c0_27 = arith.constant 0 : index
    %c0_28 = arith.constant 0 : index
    %c2 = arith.constant 2 : index
    %c0_29 = arith.constant 0 : index
    %20 = vector.load %arg2[%c0_26, %c0_27, %c0_28, %c2, %c0_29] : memref<1x1x12x18x128xbf16, #tpu.memory_space<vmem>>, vector<1x1x10x16x128xbf16>
    %21 = vector.shape_cast %20 : vector<1x1x10x16x128xbf16> to vector<10x16x128xbf16>
    %22 = vector.shape_cast %21 : vector<10x16x128xbf16> to vector<160x128xbf16>
    %c0_30 = arith.constant 0 : index
    %c0_31 = arith.constant 0 : index
    %23 = vector.load %arg8[%c0_30, %c0_31] : memref<160x128xf32, #tpu.memory_space<vmem>>, vector<160x128xf32>
    %c2_32 = arith.constant 2 : index
    %c0_33 = arith.constant 0 : index
    %c0_34 = arith.constant 0 : index
    %24 = vector.load %arg3[%c2_32, %c0_33, %c0_34] : memref<9x128x128xbf16, #tpu.memory_space<vmem>>, vector<1x128x128xbf16>
    %25 = vector.shape_cast %24 : vector<1x128x128xbf16> to vector<128x128xbf16>
    %cst_35 = arith.constant dense<0.000000e+00> : vector<160x128xf32>
    %26 = tpu.matmul %22, %25, %cst_35 {dimension_numbers = #tpu.dot_dimension_numbers<[1], [0], [0], [1], [0, 0, 1, 1], [], []>} : vector<160x128xbf16>, vector<128x128xbf16>, vector<160x128xf32> -> vector<160x128xf32>
    %27 = arith.addf %23, %26 : vector<160x128xf32>
    %c0_36 = arith.constant 0 : index
    %c0_37 = arith.constant 0 : index
    %28 = vector.load %arg8[%c0_36, %c0_37] : memref<160x128xf32, #tpu.memory_space<vmem>>, vector<160x128xf32>
    tpu.vector_store %arg8[%c0_36, %c0_37], %27 {strides = array<i32>} : memref<160x128xf32, #tpu.memory_space<vmem>>, vector<160x128xf32>,
    %c0_38 = arith.constant 0 : index
    %c0_39 = arith.constant 0 : index
    %c1_40 = arith.constant 1 : index
    %c0_41 = arith.constant 0 : index
    %c0_42 = arith.constant 0 : index
    %29 = vector.load %arg2[%c0_38, %c0_39, %c1_40, %c0_41, %c0_42] : memref<1x1x12x18x128xbf16, #tpu.memory_space<vmem>>, vector<1x1x10x16x128xbf16>
    %30 = vector.shape_cast %29 : vector<1x1x10x16x128xbf16> to vector<10x16x128xbf16>
    %31 = vector.shape_cast %30 : vector<10x16x128xbf16> to vector<160x128xbf16>
    %c0_43 = arith.constant 0 : index
    %c0_44 = arith.constant 0 : index
    %32 = vector.load %arg8[%c0_43, %c0_44] : memref<160x128xf32, #tpu.memory_space<vmem>>, vector<160x128xf32>
    %c3 = arith.constant 3 : index
    %c0_45 = arith.constant 0 : index
    %c0_46 = arith.constant 0 : index
    %33 = vector.load %arg3[%c3, %c0_45, %c0_46] : memref<9x128x128xbf16, #tpu.memory_space<vmem>>, vector<1x128x128xbf16>
    %34 = vector.shape_cast %33 : vector<1x128x128xbf16> to vector<128x128xbf16>
    %cst_47 = arith.constant dense<0.000000e+00> : vector<160x128xf32>
    %35 = tpu.matmul %31, %34, %cst_47 {dimension_numbers = #tpu.dot_dimension_numbers<[1], [0], [0], [1], [0, 0, 1, 1], [], []>} : vector<160x128xbf16>, vector<128x128xbf16>, vector<160x128xf32> -> vector<160x128xf32>
    %36 = arith.addf %32, %35 : vector<160x128xf32>
    %c0_48 = arith.constant 0 : index
    %c0_49 = arith.constant 0 : index
    %37 = vector.load %arg8[%c0_48, %c0_49] : memref<160x128xf32, #tpu.memory_space<vmem>>, vector<160x128xf32>
    tpu.vector_store %arg8[%c0_48, %c0_49], %36 {strides = array<i32>} : memref<160x128xf32, #tpu.memory_space<vmem>>, vector<160x128xf32>,
    %c0_50 = arith.constant 0 : index
    %c0_51 = arith.constant 0 : index
    %c1_52 = arith.constant 1 : index
    %c1_53 = arith.constant 1 : index
    %c0_54 = arith.constant 0 : index
    %38 = vector.load %arg2[%c0_50, %c0_51, %c1_52, %c1_53, %c0_54] : memref<1x1x12x18x128xbf16, #tpu.memory_space<vmem>>, vector<1x1x10x16x128xbf16>
    %39 = vector.shape_cast %38 : vector<1x1x10x16x128xbf16> to vector<10x16x128xbf16>
    %40 = vector.shape_cast %39 : vector<10x16x128xbf16> to vector<160x128xbf16>
    %c0_55 = arith.constant 0 : index
    %c0_56 = arith.constant 0 : index
    %41 = vector.load %arg8[%c0_55, %c0_56] : memref<160x128xf32, #tpu.memory_space<vmem>>, vector<160x128xf32>
    %c4 = arith.constant 4 : index
    %c0_57 = arith.constant 0 : index
    %c0_58 = arith.constant 0 : index
    %42 = vector.load %arg3[%c4, %c0_57, %c0_58] : memref<9x128x128xbf16, #tpu.memory_space<vmem>>, vector<1x128x128xbf16>
    %43 = vector.shape_cast %42 : vector<1x128x128xbf16> to vector<128x128xbf16>
    %cst_59 = arith.constant dense<0.000000e+00> : vector<160x128xf32>
    %44 = tpu.matmul %40, %43, %cst_59 {dimension_numbers = #tpu.dot_dimension_numbers<[1], [0], [0], [1], [0, 0, 1, 1], [], []>} : vector<160x128xbf16>, vector<128x128xbf16>, vector<160x128xf32> -> vector<160x128xf32>
    %45 = arith.addf %41, %44 : vector<160x128xf32>
    %c0_60 = arith.constant 0 : index
    %c0_61 = arith.constant 0 : index
    %46 = vector.load %arg8[%c0_60, %c0_61] : memref<160x128xf32, #tpu.memory_space<vmem>>, vector<160x128xf32>
    tpu.vector_store %arg8[%c0_60, %c0_61], %45 {strides = array<i32>} : memref<160x128xf32, #tpu.memory_space<vmem>>, vector<160x128xf32>,
    %c0_62 = arith.constant 0 : index
    %c0_63 = arith.constant 0 : index
    %c1_64 = arith.constant 1 : index
    %c2_65 = arith.constant 2 : index
    %c0_66 = arith.constant 0 : index
    %47 = vector.load %arg2[%c0_62, %c0_63, %c1_64, %c2_65, %c0_66] : memref<1x1x12x18x128xbf16, #tpu.memory_space<vmem>>, vector<1x1x10x16x128xbf16>
    %48 = vector.shape_cast %47 : vector<1x1x10x16x128xbf16> to vector<10x16x128xbf16>
    %49 = vector.shape_cast %48 : vector<10x16x128xbf16> to vector<160x128xbf16>
    %c0_67 = arith.constant 0 : index
    %c0_68 = arith.constant 0 : index
    %50 = vector.load %arg8[%c0_67, %c0_68] : memref<160x128xf32, #tpu.memory_space<vmem>>, vector<160x128xf32>
    %c5 = arith.constant 5 : index
    %c0_69 = arith.constant 0 : index
    %c0_70 = arith.constant 0 : index
    %51 = vector.load %arg3[%c5, %c0_69, %c0_70] : memref<9x128x128xbf16, #tpu.memory_space<vmem>>, vector<1x128x128xbf16>
    %52 = vector.shape_cast %51 : vector<1x128x128xbf16> to vector<128x128xbf16>
    %cst_71 = arith.constant dense<0.000000e+00> : vector<160x128xf32>
    %53 = tpu.matmul %49, %52, %cst_71 {dimension_numbers = #tpu.dot_dimension_numbers<[1], [0], [0], [1], [0, 0, 1, 1], [], []>} : vector<160x128xbf16>, vector<128x128xbf16>, vector<160x128xf32> -> vector<160x128xf32>
    %54 = arith.addf %50, %53 : vector<160x128xf32>
    %c0_72 = arith.constant 0 : index
    %c0_73 = arith.constant 0 : index
    %55 = vector.load %arg8[%c0_72, %c0_73] : memref<160x128xf32, #tpu.memory_space<vmem>>, vector<160x128xf32>
    tpu.vector_store %arg8[%c0_72, %c0_73], %54 {strides = array<i32>} : memref<160x128xf32, #tpu.memory_space<vmem>>, vector<160x128xf32>,
    %c0_74 = arith.constant 0 : index
    %c0_75 = arith.constant 0 : index
    %c2_76 = arith.constant 2 : index
    %c0_77 = arith.constant 0 : index
    %c0_78 = arith.constant 0 : index
    %56 = vector.load %arg2[%c0_74, %c0_75, %c2_76, %c0_77, %c0_78] : memref<1x1x12x18x128xbf16, #tpu.memory_space<vmem>>, vector<1x1x10x16x128xbf16>
    %57 = vector.shape_cast %56 : vector<1x1x10x16x128xbf16> to vector<10x16x128xbf16>
    %58 = vector.shape_cast %57 : vector<10x16x128xbf16> to vector<160x128xbf16>
    %c0_79 = arith.constant 0 : index
    %c0_80 = arith.constant 0 : index
    %59 = vector.load %arg8[%c0_79, %c0_80] : memref<160x128xf32, #tpu.memory_space<vmem>>, vector<160x128xf32>
    %c6 = arith.constant 6 : index
    %c0_81 = arith.constant 0 : index
    %c0_82 = arith.constant 0 : index
    %60 = vector.load %arg3[%c6, %c0_81, %c0_82] : memref<9x128x128xbf16, #tpu.memory_space<vmem>>, vector<1x128x128xbf16>
    %61 = vector.shape_cast %60 : vector<1x128x128xbf16> to vector<128x128xbf16>
    %cst_83 = arith.constant dense<0.000000e+00> : vector<160x128xf32>
    %62 = tpu.matmul %58, %61, %cst_83 {dimension_numbers = #tpu.dot_dimension_numbers<[1], [0], [0], [1], [0, 0, 1, 1], [], []>} : vector<160x128xbf16>, vector<128x128xbf16>, vector<160x128xf32> -> vector<160x128xf32>
    %63 = arith.addf %59, %62 : vector<160x128xf32>
    %c0_84 = arith.constant 0 : index
    %c0_85 = arith.constant 0 : index
    %64 = vector.load %arg8[%c0_84, %c0_85] : memref<160x128xf32, #tpu.memory_space<vmem>>, vector<160x128xf32>
    tpu.vector_store %arg8[%c0_84, %c0_85], %63 {strides = array<i32>} : memref<160x128xf32, #tpu.memory_space<vmem>>, vector<160x128xf32>,
    %c0_86 = arith.constant 0 : index
    %c0_87 = arith.constant 0 : index
    %c2_88 = arith.constant 2 : index
    %c1_89 = arith.constant 1 : index
    %c0_90 = arith.constant 0 : index
    %65 = vector.load %arg2[%c0_86, %c0_87, %c2_88, %c1_89, %c0_90] : memref<1x1x12x18x128xbf16, #tpu.memory_space<vmem>>, vector<1x1x10x16x128xbf16>
    %66 = vector.shape_cast %65 : vector<1x1x10x16x128xbf16> to vector<10x16x128xbf16>
    %67 = vector.shape_cast %66 : vector<10x16x128xbf16> to vector<160x128xbf16>
    %c0_91 = arith.constant 0 : index
    %c0_92 = arith.constant 0 : index
    %68 = vector.load %arg8[%c0_91, %c0_92] : memref<160x128xf32, #tpu.memory_space<vmem>>, vector<160x128xf32>
    %c7 = arith.constant 7 : index
    %c0_93 = arith.constant 0 : index
    %c0_94 = arith.constant 0 : index
    %69 = vector.load %arg3[%c7, %c0_93, %c0_94] : memref<9x128x128xbf16, #tpu.memory_space<vmem>>, vector<1x128x128xbf16>
    %70 = vector.shape_cast %69 : vector<1x128x128xbf16> to vector<128x128xbf16>
    %cst_95 = arith.constant dense<0.000000e+00> : vector<160x128xf32>
    %71 = tpu.matmul %67, %70, %cst_95 {dimension_numbers = #tpu.dot_dimension_numbers<[1], [0], [0], [1], [0, 0, 1, 1], [], []>} : vector<160x128xbf16>, vector<128x128xbf16>, vector<160x128xf32> -> vector<160x128xf32>
    %72 = arith.addf %68, %71 : vector<160x128xf32>
    %c0_96 = arith.constant 0 : index
    %c0_97 = arith.constant 0 : index
    %73 = vector.load %arg8[%c0_96, %c0_97] : memref<160x128xf32, #tpu.memory_space<vmem>>, vector<160x128xf32>
    tpu.vector_store %arg8[%c0_96, %c0_97], %72 {strides = array<i32>} : memref<160x128xf32, #tpu.memory_space<vmem>>, vector<160x128xf32>,
    %c0_98 = arith.constant 0 : index
    %c0_99 = arith.constant 0 : index
    %c2_100 = arith.constant 2 : index
    %c2_101 = arith.constant 2 : index
    %c0_102 = arith.constant 0 : index
    %74 = vector.load %arg2[%c0_98, %c0_99, %c2_100, %c2_101, %c0_102] : memref<1x1x12x18x128xbf16, #tpu.memory_space<vmem>>, vector<1x1x10x16x128xbf16>
    %75 = vector.shape_cast %74 : vector<1x1x10x16x128xbf16> to vector<10x16x128xbf16>
    %76 = vector.shape_cast %75 : vector<10x16x128xbf16> to vector<160x128xbf16>
    %c0_103 = arith.constant 0 : index
    %c0_104 = arith.constant 0 : index
    %77 = vector.load %arg8[%c0_103, %c0_104] : memref<160x128xf32, #tpu.memory_space<vmem>>, vector<160x128xf32>
    %c8 = arith.constant 8 : index
    %c0_105 = arith.constant 0 : index
    %c0_106 = arith.constant 0 : index
    %78 = vector.load %arg3[%c8, %c0_105, %c0_106] : memref<9x128x128xbf16, #tpu.memory_space<vmem>>, vector<1x128x128xbf16>
    %79 = vector.shape_cast %78 : vector<1x128x128xbf16> to vector<128x128xbf16>
    %cst_107 = arith.constant dense<0.000000e+00> : vector<160x128xf32>
    %80 = tpu.matmul %76, %79, %cst_107 {dimension_numbers = #tpu.dot_dimension_numbers<[1], [0], [0], [1], [0, 0, 1, 1], [], []>} : vector<160x128xbf16>, vector<128x128xbf16>, vector<160x128xf32> -> vector<160x128xf32>
    %81 = arith.addf %77, %80 : vector<160x128xf32>
    %c0_108 = arith.constant 0 : index
    %c0_109 = arith.constant 0 : index
    %82 = vector.load %arg8[%c0_108, %c0_109] : memref<160x128xf32, #tpu.memory_space<vmem>>, vector<160x128xf32>
    tpu.vector_store %arg8[%c0_108, %c0_109], %81 {strides = array<i32>} : memref<160x128xf32, #tpu.memory_space<vmem>>, vector<160x128xf32>,
    %c0_110 = arith.constant 0 : index
    %c0_111 = arith.constant 0 : index
    %83 = vector.load %arg8[%c0_110, %c0_111] : memref<160x128xf32, #tpu.memory_space<vmem>>, vector<160x128xf32>
    %c0_112 = arith.constant 0 : index
    %c0_113 = arith.constant 0 : index
    %84 = vector.load %arg4[%c0_112, %c0_113] : memref<1x128xf32, #tpu.memory_space<vmem>>, vector<1x128xf32>
    %85 = vector.broadcast %84 : vector<1x128xf32> to vector<160x128xf32>
    %86 = arith.addf %83, %85 : vector<160x128xf32>
    %cst_114 = arith.constant 0.000000e+00 : f32
    %87 = vector.broadcast %cst_114 : f32 to vector<160x128xf32>
    %88 = arith.maximumf %86, %87 : vector<160x128xf32>
    %89 = vector.shape_cast %88 : vector<160x128xf32> to vector<10x16x128xf32>
    %c8_i32 = arith.constant 8 : i32
    %90 = arith.muli %arg1, %c8_i32 : i32
    %c1_i32 = arith.constant 1 : i32
    %91 = arith.subi %90, %c1_i32 : i32
    %92 = tpu.iota {dimensions = array<i32: 0>} : vector<10x1x1xi32>
    %93 = vector.broadcast %91 : i32 to vector<10x1x1xi32>
    %94 = arith.addi %93, %92 : vector<10x1x1xi32>
    %c0_i32 = arith.constant 0 : i32
    %95 = vector.broadcast %c0_i32 : i32 to vector<10x1x1xi32>
    %96 = arith.cmpi sge, %94, %95 : vector<10x1x1xi32>
    %c16_i32 = arith.constant 16 : i32
    %97 = vector.broadcast %c16_i32 : i32 to vector<10x1x1xi32>
    %98 = arith.cmpi slt, %94, %97 : vector<10x1x1xi32>
    %99 = arith.andi %96, %98 : vector<10x1x1xi1>
    %cst_115 = arith.constant 0.000000e+00 : f32
    %100 = vector.shape_cast %99 : vector<10x1x1xi1> to vector<10x1x1xi1>
    %101 = vector.broadcast %100 : vector<10x1x1xi1> to vector<10x16x128xi1>
    %102 = vector.broadcast %cst_115 : f32 to vector<10x16x128xf32>
    %103 = arith.select %101, %89, %102 : vector<10x16x128xi1>, vector<10x16x128xf32>
    %cst_116 = arith.constant 0.000000e+00 : bf16
    %104 = vector.broadcast %cst_116 : bf16 to vector<10x18x128xbf16>
    %c0_117 = arith.constant 0 : index
    %c0_118 = arith.constant 0 : index
    %c0_119 = arith.constant 0 : index
    %105 = vector.load %arg9[%c0_117, %c0_118, %c0_119] : memref<10x18x128xbf16, #tpu.memory_space<vmem>>, vector<10x18x128xbf16>
    tpu.vector_store %arg9[%c0_117, %c0_118, %c0_119], %104 {strides = array<i32>} : memref<10x18x128xbf16, #tpu.memory_space<vmem>>, vector<10x18x128xbf16>,
    %106 = arith.truncf %103 : vector<10x16x128xf32> to vector<10x16x128xbf16>
    %c0_120 = arith.constant 0 : index
    %c1_121 = arith.constant 1 : index
    %c0_122 = arith.constant 0 : index
    %107 = vector.load %arg9[%c0_120, %c1_121, %c0_122] : memref<10x18x128xbf16, #tpu.memory_space<vmem>>, vector<10x16x128xbf16>
    tpu.vector_store %arg9[%c0_120, %c1_121, %c0_122], %106 {strides = array<i32>} : memref<10x18x128xbf16, #tpu.memory_space<vmem>>, vector<10x16x128xbf16>,
    %cst_123 = arith.constant 0.000000e+00 : f32
    %108 = vector.broadcast %cst_123 : f32 to vector<128x128xf32>
    %c0_124 = arith.constant 0 : index
    %c0_125 = arith.constant 0 : index
    %109 = vector.load %arg10[%c0_124, %c0_125] : memref<128x128xf32, #tpu.memory_space<vmem>>, vector<128x128xf32>
    tpu.vector_store %arg10[%c0_124, %c0_125], %108 {strides = array<i32>} : memref<128x128xf32, #tpu.memory_space<vmem>>, vector<128x128xf32>,
    %c0_126 = arith.constant 0 : index
    %c0_127 = arith.constant 0 : index
    %c0_128 = arith.constant 0 : index
    %110 = vector.load %arg9[%c0_126, %c0_127, %c0_128] : memref<10x18x128xbf16, #tpu.memory_space<vmem>>, vector<8x16x128xbf16>
    %111 = vector.shape_cast %110 : vector<8x16x128xbf16> to vector<128x128xbf16>
    %c0_129 = arith.constant 0 : index
    %c0_130 = arith.constant 0 : index
    %112 = vector.load %arg10[%c0_129, %c0_130] : memref<128x128xf32, #tpu.memory_space<vmem>>, vector<128x128xf32>
    %c0_131 = arith.constant 0 : index
    %c0_132 = arith.constant 0 : index
    %c0_133 = arith.constant 0 : index
    %113 = vector.load %arg5[%c0_131, %c0_132, %c0_133] : memref<9x128x128xbf16, #tpu.memory_space<vmem>>, vector<1x128x128xbf16>
    %114 = vector.shape_cast %113 : vector<1x128x128xbf16> to vector<128x128xbf16>
    %cst_134 = arith.constant dense<0.000000e+00> : vector<128x128xf32>
    %115 = tpu.matmul %111, %114, %cst_134 {dimension_numbers = #tpu.dot_dimension_numbers<[1], [0], [0], [1], [0, 0, 1, 1], [], []>} : vector<128x128xbf16>, vector<128x128xbf16>, vector<128x128xf32> -> vector<128x128xf32>
    %116 = arith.addf %112, %115 : vector<128x128xf32>
    %c0_135 = arith.constant 0 : index
    %c0_136 = arith.constant 0 : index
    %117 = vector.load %arg10[%c0_135, %c0_136] : memref<128x128xf32, #tpu.memory_space<vmem>>, vector<128x128xf32>
    tpu.vector_store %arg10[%c0_135, %c0_136], %116 {strides = array<i32>} : memref<128x128xf32, #tpu.memory_space<vmem>>, vector<128x128xf32>,
    %c0_137 = arith.constant 0 : index
    %c1_138 = arith.constant 1 : index
    %c0_139 = arith.constant 0 : index
    %118 = vector.load %arg9[%c0_137, %c1_138, %c0_139] : memref<10x18x128xbf16, #tpu.memory_space<vmem>>, vector<8x16x128xbf16>
    %119 = vector.shape_cast %118 : vector<8x16x128xbf16> to vector<128x128xbf16>
    %c0_140 = arith.constant 0 : index
    %c0_141 = arith.constant 0 : index
    %120 = vector.load %arg10[%c0_140, %c0_141] : memref<128x128xf32, #tpu.memory_space<vmem>>, vector<128x128xf32>
    %c1_142 = arith.constant 1 : index
    %c0_143 = arith.constant 0 : index
    %c0_144 = arith.constant 0 : index
    %121 = vector.load %arg5[%c1_142, %c0_143, %c0_144] : memref<9x128x128xbf16, #tpu.memory_space<vmem>>, vector<1x128x128xbf16>
    %122 = vector.shape_cast %121 : vector<1x128x128xbf16> to vector<128x128xbf16>
    %cst_145 = arith.constant dense<0.000000e+00> : vector<128x128xf32>
    %123 = tpu.matmul %119, %122, %cst_145 {dimension_numbers = #tpu.dot_dimension_numbers<[1], [0], [0], [1], [0, 0, 1, 1], [], []>} : vector<128x128xbf16>, vector<128x128xbf16>, vector<128x128xf32> -> vector<128x128xf32>
    %124 = arith.addf %120, %123 : vector<128x128xf32>
    %c0_146 = arith.constant 0 : index
    %c0_147 = arith.constant 0 : index
    %125 = vector.load %arg10[%c0_146, %c0_147] : memref<128x128xf32, #tpu.memory_space<vmem>>, vector<128x128xf32>
    tpu.vector_store %arg10[%c0_146, %c0_147], %124 {strides = array<i32>} : memref<128x128xf32, #tpu.memory_space<vmem>>, vector<128x128xf32>,
    %c0_148 = arith.constant 0 : index
    %c2_149 = arith.constant 2 : index
    %c0_150 = arith.constant 0 : index
    %126 = vector.load %arg9[%c0_148, %c2_149, %c0_150] : memref<10x18x128xbf16, #tpu.memory_space<vmem>>, vector<8x16x128xbf16>
    %127 = vector.shape_cast %126 : vector<8x16x128xbf16> to vector<128x128xbf16>
    %c0_151 = arith.constant 0 : index
    %c0_152 = arith.constant 0 : index
    %128 = vector.load %arg10[%c0_151, %c0_152] : memref<128x128xf32, #tpu.memory_space<vmem>>, vector<128x128xf32>
    %c2_153 = arith.constant 2 : index
    %c0_154 = arith.constant 0 : index
    %c0_155 = arith.constant 0 : index
    %129 = vector.load %arg5[%c2_153, %c0_154, %c0_155] : memref<9x128x128xbf16, #tpu.memory_space<vmem>>, vector<1x128x128xbf16>
    %130 = vector.shape_cast %129 : vector<1x128x128xbf16> to vector<128x128xbf16>
    %cst_156 = arith.constant dense<0.000000e+00> : vector<128x128xf32>
    %131 = tpu.matmul %127, %130, %cst_156 {dimension_numbers = #tpu.dot_dimension_numbers<[1], [0], [0], [1], [0, 0, 1, 1], [], []>} : vector<128x128xbf16>, vector<128x128xbf16>, vector<128x128xf32> -> vector<128x128xf32>
    %132 = arith.addf %128, %131 : vector<128x128xf32>
    %c0_157 = arith.constant 0 : index
    %c0_158 = arith.constant 0 : index
    %133 = vector.load %arg10[%c0_157, %c0_158] : memref<128x128xf32, #tpu.memory_space<vmem>>, vector<128x128xf32>
    tpu.vector_store %arg10[%c0_157, %c0_158], %132 {strides = array<i32>} : memref<128x128xf32, #tpu.memory_space<vmem>>, vector<128x128xf32>,
    %c1_159 = arith.constant 1 : index
    %c0_160 = arith.constant 0 : index
    %c0_161 = arith.constant 0 : index
    %134 = vector.load %arg9[%c1_159, %c0_160, %c0_161] : memref<10x18x128xbf16, #tpu.memory_space<vmem>>, vector<8x16x128xbf16>
    %135 = vector.shape_cast %134 : vector<8x16x128xbf16> to vector<128x128xbf16>
    %c0_162 = arith.constant 0 : index
    %c0_163 = arith.constant 0 : index
    %136 = vector.load %arg10[%c0_162, %c0_163] : memref<128x128xf32, #tpu.memory_space<vmem>>, vector<128x128xf32>
    %c3_164 = arith.constant 3 : index
    %c0_165 = arith.constant 0 : index
    %c0_166 = arith.constant 0 : index
    %137 = vector.load %arg5[%c3_164, %c0_165, %c0_166] : memref<9x128x128xbf16, #tpu.memory_space<vmem>>, vector<1x128x128xbf16>
    %138 = vector.shape_cast %137 : vector<1x128x128xbf16> to vector<128x128xbf16>
    %cst_167 = arith.constant dense<0.000000e+00> : vector<128x128xf32>
    %139 = tpu.matmul %135, %138, %cst_167 {dimension_numbers = #tpu.dot_dimension_numbers<[1], [0], [0], [1], [0, 0, 1, 1], [], []>} : vector<128x128xbf16>, vector<128x128xbf16>, vector<128x128xf32> -> vector<128x128xf32>
    %140 = arith.addf %136, %139 : vector<128x128xf32>
    %c0_168 = arith.constant 0 : index
    %c0_169 = arith.constant 0 : index
    %141 = vector.load %arg10[%c0_168, %c0_169] : memref<128x128xf32, #tpu.memory_space<vmem>>, vector<128x128xf32>
    tpu.vector_store %arg10[%c0_168, %c0_169], %140 {strides = array<i32>} : memref<128x128xf32, #tpu.memory_space<vmem>>, vector<128x128xf32>,
    %c1_170 = arith.constant 1 : index
    %c1_171 = arith.constant 1 : index
    %c0_172 = arith.constant 0 : index
    %142 = vector.load %arg9[%c1_170, %c1_171, %c0_172] : memref<10x18x128xbf16, #tpu.memory_space<vmem>>, vector<8x16x128xbf16>
    %143 = vector.shape_cast %142 : vector<8x16x128xbf16> to vector<128x128xbf16>
    %c0_173 = arith.constant 0 : index
    %c0_174 = arith.constant 0 : index
    %144 = vector.load %arg10[%c0_173, %c0_174] : memref<128x128xf32, #tpu.memory_space<vmem>>, vector<128x128xf32>
    %c4_175 = arith.constant 4 : index
    %c0_176 = arith.constant 0 : index
    %c0_177 = arith.constant 0 : index
    %145 = vector.load %arg5[%c4_175, %c0_176, %c0_177] : memref<9x128x128xbf16, #tpu.memory_space<vmem>>, vector<1x128x128xbf16>
    %146 = vector.shape_cast %145 : vector<1x128x128xbf16> to vector<128x128xbf16>
    %cst_178 = arith.constant dense<0.000000e+00> : vector<128x128xf32>
    %147 = tpu.matmul %143, %146, %cst_178 {dimension_numbers = #tpu.dot_dimension_numbers<[1], [0], [0], [1], [0, 0, 1, 1], [], []>} : vector<128x128xbf16>, vector<128x128xbf16>, vector<128x128xf32> -> vector<128x128xf32>
    %148 = arith.addf %144, %147 : vector<128x128xf32>
    %c0_179 = arith.constant 0 : index
    %c0_180 = arith.constant 0 : index
    %149 = vector.load %arg10[%c0_179, %c0_180] : memref<128x128xf32, #tpu.memory_space<vmem>>, vector<128x128xf32>
    tpu.vector_store %arg10[%c0_179, %c0_180], %148 {strides = array<i32>} : memref<128x128xf32, #tpu.memory_space<vmem>>, vector<128x128xf32>,
    %c1_181 = arith.constant 1 : index
    %c2_182 = arith.constant 2 : index
    %c0_183 = arith.constant 0 : index
    %150 = vector.load %arg9[%c1_181, %c2_182, %c0_183] : memref<10x18x128xbf16, #tpu.memory_space<vmem>>, vector<8x16x128xbf16>
    %151 = vector.shape_cast %150 : vector<8x16x128xbf16> to vector<128x128xbf16>
    %c0_184 = arith.constant 0 : index
    %c0_185 = arith.constant 0 : index
    %152 = vector.load %arg10[%c0_184, %c0_185] : memref<128x128xf32, #tpu.memory_space<vmem>>, vector<128x128xf32>
    %c5_186 = arith.constant 5 : index
    %c0_187 = arith.constant 0 : index
    %c0_188 = arith.constant 0 : index
    %153 = vector.load %arg5[%c5_186, %c0_187, %c0_188] : memref<9x128x128xbf16, #tpu.memory_space<vmem>>, vector<1x128x128xbf16>
    %154 = vector.shape_cast %153 : vector<1x128x128xbf16> to vector<128x128xbf16>
    %cst_189 = arith.constant dense<0.000000e+00> : vector<128x128xf32>
    %155 = tpu.matmul %151, %154, %cst_189 {dimension_numbers = #tpu.dot_dimension_numbers<[1], [0], [0], [1], [0, 0, 1, 1], [], []>} : vector<128x128xbf16>, vector<128x128xbf16>, vector<128x128xf32> -> vector<128x128xf32>
    %156 = arith.addf %152, %155 : vector<128x128xf32>
    %c0_190 = arith.constant 0 : index
    %c0_191 = arith.constant 0 : index
    %157 = vector.load %arg10[%c0_190, %c0_191] : memref<128x128xf32, #tpu.memory_space<vmem>>, vector<128x128xf32>
    tpu.vector_store %arg10[%c0_190, %c0_191], %156 {strides = array<i32>} : memref<128x128xf32, #tpu.memory_space<vmem>>, vector<128x128xf32>,
    %c2_192 = arith.constant 2 : index
    %c0_193 = arith.constant 0 : index
    %c0_194 = arith.constant 0 : index
    %158 = vector.load %arg9[%c2_192, %c0_193, %c0_194] : memref<10x18x128xbf16, #tpu.memory_space<vmem>>, vector<8x16x128xbf16>
    %159 = vector.shape_cast %158 : vector<8x16x128xbf16> to vector<128x128xbf16>
    %c0_195 = arith.constant 0 : index
    %c0_196 = arith.constant 0 : index
    %160 = vector.load %arg10[%c0_195, %c0_196] : memref<128x128xf32, #tpu.memory_space<vmem>>, vector<128x128xf32>
    %c6_197 = arith.constant 6 : index
    %c0_198 = arith.constant 0 : index
    %c0_199 = arith.constant 0 : index
    %161 = vector.load %arg5[%c6_197, %c0_198, %c0_199] : memref<9x128x128xbf16, #tpu.memory_space<vmem>>, vector<1x128x128xbf16>
    %162 = vector.shape_cast %161 : vector<1x128x128xbf16> to vector<128x128xbf16>
    %cst_200 = arith.constant dense<0.000000e+00> : vector<128x128xf32>
    %163 = tpu.matmul %159, %162, %cst_200 {dimension_numbers = #tpu.dot_dimension_numbers<[1], [0], [0], [1], [0, 0, 1, 1], [], []>} : vector<128x128xbf16>, vector<128x128xbf16>, vector<128x128xf32> -> vector<128x128xf32>
    %164 = arith.addf %160, %163 : vector<128x128xf32>
    %c0_201 = arith.constant 0 : index
    %c0_202 = arith.constant 0 : index
    %165 = vector.load %arg10[%c0_201, %c0_202] : memref<128x128xf32, #tpu.memory_space<vmem>>, vector<128x128xf32>
    tpu.vector_store %arg10[%c0_201, %c0_202], %164 {strides = array<i32>} : memref<128x128xf32, #tpu.memory_space<vmem>>, vector<128x128xf32>,
    %c2_203 = arith.constant 2 : index
    %c1_204 = arith.constant 1 : index
    %c0_205 = arith.constant 0 : index
    %166 = vector.load %arg9[%c2_203, %c1_204, %c0_205] : memref<10x18x128xbf16, #tpu.memory_space<vmem>>, vector<8x16x128xbf16>
    %167 = vector.shape_cast %166 : vector<8x16x128xbf16> to vector<128x128xbf16>
    %c0_206 = arith.constant 0 : index
    %c0_207 = arith.constant 0 : index
    %168 = vector.load %arg10[%c0_206, %c0_207] : memref<128x128xf32, #tpu.memory_space<vmem>>, vector<128x128xf32>
    %c7_208 = arith.constant 7 : index
    %c0_209 = arith.constant 0 : index
    %c0_210 = arith.constant 0 : index
    %169 = vector.load %arg5[%c7_208, %c0_209, %c0_210] : memref<9x128x128xbf16, #tpu.memory_space<vmem>>, vector<1x128x128xbf16>
    %170 = vector.shape_cast %169 : vector<1x128x128xbf16> to vector<128x128xbf16>
    %cst_211 = arith.constant dense<0.000000e+00> : vector<128x128xf32>
    %171 = tpu.matmul %167, %170, %cst_211 {dimension_numbers = #tpu.dot_dimension_numbers<[1], [0], [0], [1], [0, 0, 1, 1], [], []>} : vector<128x128xbf16>, vector<128x128xbf16>, vector<128x128xf32> -> vector<128x128xf32>
    %172 = arith.addf %168, %171 : vector<128x128xf32>
    %c0_212 = arith.constant 0 : index
    %c0_213 = arith.constant 0 : index
    %173 = vector.load %arg10[%c0_212, %c0_213] : memref<128x128xf32, #tpu.memory_space<vmem>>, vector<128x128xf32>
    tpu.vector_store %arg10[%c0_212, %c0_213], %172 {strides = array<i32>} : memref<128x128xf32, #tpu.memory_space<vmem>>, vector<128x128xf32>,
    %c2_214 = arith.constant 2 : index
    %c2_215 = arith.constant 2 : index
    %c0_216 = arith.constant 0 : index
    %174 = vector.load %arg9[%c2_214, %c2_215, %c0_216] : memref<10x18x128xbf16, #tpu.memory_space<vmem>>, vector<8x16x128xbf16>
    %175 = vector.shape_cast %174 : vector<8x16x128xbf16> to vector<128x128xbf16>
    %c0_217 = arith.constant 0 : index
    %c0_218 = arith.constant 0 : index
    %176 = vector.load %arg10[%c0_217, %c0_218] : memref<128x128xf32, #tpu.memory_space<vmem>>, vector<128x128xf32>
    %c8_219 = arith.constant 8 : index
    %c0_220 = arith.constant 0 : index
    %c0_221 = arith.constant 0 : index
    %177 = vector.load %arg5[%c8_219, %c0_220, %c0_221] : memref<9x128x128xbf16, #tpu.memory_space<vmem>>, vector<1x128x128xbf16>
    %178 = vector.shape_cast %177 : vector<1x128x128xbf16> to vector<128x128xbf16>
    %cst_222 = arith.constant dense<0.000000e+00> : vector<128x128xf32>
    %179 = tpu.matmul %175, %178, %cst_222 {dimension_numbers = #tpu.dot_dimension_numbers<[1], [0], [0], [1], [0, 0, 1, 1], [], []>} : vector<128x128xbf16>, vector<128x128xbf16>, vector<128x128xf32> -> vector<128x128xf32>
    %180 = arith.addf %176, %179 : vector<128x128xf32>
    %c0_223 = arith.constant 0 : index
    %c0_224 = arith.constant 0 : index
    %181 = vector.load %arg10[%c0_223, %c0_224] : memref<128x128xf32, #tpu.memory_space<vmem>>, vector<128x128xf32>
    tpu.vector_store %arg10[%c0_223, %c0_224], %180 {strides = array<i32>} : memref<128x128xf32, #tpu.memory_space<vmem>>, vector<128x128xf32>,
    %c0_225 = arith.constant 0 : index
    %c0_226 = arith.constant 0 : index
    %c2_227 = arith.constant 2 : index
    %c1_228 = arith.constant 1 : index
    %c0_229 = arith.constant 0 : index
    %182 = vector.load %arg2[%c0_225, %c0_226, %c2_227, %c1_228, %c0_229] : memref<1x1x12x18x128xbf16, #tpu.memory_space<vmem>>, vector<1x1x8x16x128xbf16>
    %183 = vector.shape_cast %182 : vector<1x1x8x16x128xbf16> to vector<8x16x128xbf16>
    %184 = arith.extf %183 : vector<8x16x128xbf16> to vector<8x16x128xf32>
    %185 = vector.shape_cast %184 : vector<8x16x128xf32> to vector<128x128xf32>
    %c0_230 = arith.constant 0 : index
    %c0_231 = arith.constant 0 : index
    %186 = vector.load %arg10[%c0_230, %c0_231] : memref<128x128xf32, #tpu.memory_space<vmem>>, vector<128x128xf32>
    %c0_232 = arith.constant 0 : index
    %c0_233 = arith.constant 0 : index
    %187 = vector.load %arg6[%c0_232, %c0_233] : memref<1x128xf32, #tpu.memory_space<vmem>>, vector<1x128xf32>
    %188 = vector.broadcast %187 : vector<1x128xf32> to vector<128x128xf32>
    %189 = arith.addf %186, %188 : vector<128x128xf32>
    %190 = arith.addf %189, %185 : vector<128x128xf32>
    %cst_234 = arith.constant 0.000000e+00 : f32
    %191 = vector.broadcast %cst_234 : f32 to vector<128x128xf32>
    %192 = arith.maximumf %190, %191 : vector<128x128xf32>
    %193 = vector.shape_cast %192 : vector<128x128xf32> to vector<8x16x128xf32>
    %c0_235 = arith.constant 0 : index
    %c0_236 = arith.constant 0 : index
    %c0_237 = arith.constant 0 : index
    %c0_238 = arith.constant 0 : index
    %c0_239 = arith.constant 0 : index
    %194 = vector.load %arg7[%c0_235, %c0_236, %c0_237, %c0_238, %c0_239] : memref<1x1x8x16x128xf32, #tpu.memory_space<vmem>>, vector<1x1x8x16x128xf32>
    %195 = vector.shape_cast %194 : vector<1x1x8x16x128xf32> to vector<8x16x128xf32>
    %196 = vector.shape_cast %193 : vector<8x16x128xf32> to vector<1x1x8x16x128xf32>
    tpu.vector_store %arg7[%c0_235, %c0_236, %c0_237, %c0_238, %c0_239], %196 {strides = array<i32>} : memref<1x1x8x16x128xf32, #tpu.memory_space<vmem>>, vector<1x1x8x16x128xf32>,
    return
  }
  func.func @transform_0(%arg0: i32, %arg1: i32) -> (i32, i32, i32, i32, i32) {
    %c0_i32 = arith.constant 0 : i32
    %c0_i32_0 = arith.constant 0 : i32
    %c0_i32_1 = arith.constant 0 : i32
    %c0_i32_2 = arith.constant 0 : i32
    return %arg0, %arg1, %c0_i32, %c0_i32_0, %c0_i32_1 : i32, i32, i32, i32, i32
  }
  func.func @transform_1(%arg0: i32, %arg1: i32) -> (i32, i32, i32) {
    %c0_i32 = arith.constant 0 : i32
    %c0_i32_0 = arith.constant 0 : i32
    %c0_i32_1 = arith.constant 0 : i32
    %c0_i32_2 = arith.constant 0 : i32
    return %c0_i32, %c0_i32_0, %c0_i32_1 : i32, i32, i32
  }
  func.func @transform_2(%arg0: i32, %arg1: i32) -> (i32, i32) {
    %c0_i32 = arith.constant 0 : i32
    %c0_i32_0 = arith.constant 0 : i32
    %c0_i32_1 = arith.constant 0 : i32
    return %c0_i32, %c0_i32_0 : i32, i32
  }
  func.func @transform_3(%arg0: i32, %arg1: i32) -> (i32, i32, i32) {
    %c0_i32 = arith.constant 0 : i32
    %c0_i32_0 = arith.constant 0 : i32
    %c0_i32_1 = arith.constant 0 : i32
    %c0_i32_2 = arith.constant 0 : i32
    return %c0_i32, %c0_i32_0, %c0_i32_1 : i32, i32, i32
  }
  func.func @transform_4(%arg0: i32, %arg1: i32) -> (i32, i32) {
    %c0_i32 = arith.constant 0 : i32
    %c0_i32_0 = arith.constant 0 : i32
    %c0_i32_1 = arith.constant 0 : i32
    return %c0_i32, %c0_i32_0 : i32, i32
  }
  func.func @transform_5(%arg0: i32, %arg1: i32) -> (i32, i32, i32, i32, i32) {
    %c0_i32 = arith.constant 0 : i32
    %c0_i32_0 = arith.constant 0 : i32
    %c0_i32_1 = arith.constant 0 : i32
    %c0_i32_2 = arith.constant 0 : i32
    return %arg0, %arg1, %c0_i32, %c0_i32_0, %c0_i32_1 : i32, i32, i32, i32, i32
  }
}

</mosaic_0001>

<bundles_post_ra>
// kernel: _lambda_.1
= control target key start
LH: loop header
LB: loop body
LE: loop exit
PB: predicated region body
PF: predicated region fallthrough
CT: control target
= control target key end

     0   :  { %s10583_s18 = smov 0   ;;  %s10585_s19 = smov 0   ;;  %s12605_s0 = inlined_call_operand.vmem [shape: bf16[2,2,12,18,128], index: 0, kind: input, shape index: {}]   ;;  %s12606_s1 = inlined_call_operand.vmem [shape: bf16[9,128,128], index: 1, kind: input, shape index: {}]   ;;  %s12607_s2 = inlined_call_operand.vmem [shape: f32[1,128], index: 2, kind: input, shape index: {}]   ;;  %s12608_s3 = inlined_call_operand.vmem [shape: bf16[9,128,128], index: 3, kind: input, shape index: {}]   ;;  %s12609_s4 = inlined_call_operand.vmem [shape: f32[1,128], index: 4, kind: input, shape index: {}]   ;;  %s12610_s5 = inlined_call_operand.vmem [shape: f32[2,2,8,16,128], index: 5, kind: output, shape index: {}]  }
   0x1   :  { %s10587_s20 = smov 0   ;;  %s10589_s21 = smov 0  }
   0x2   :  { %s10591_s22 = smov 0  }
   0x3 LB: > { %s24_s23 = sadd.s32 1, %s10542_s20  ;;  %s27_s24 = sadd.s32 1, %s10546_s21  ;;  %s10550_s22 = sphi %s10591_s22, %s15_s22   ;;  %s10546_s21 = sphi %s10589_s21, %s12644_s21   ;;  %s10542_s20 = sphi %s10587_s20, %s12643_s20   ;;  %s10538_s19 = sphi %s10585_s19, %s12642_s19   ;;  %s10534_s18 = sphi %s10583_s18, %s12641_s18  }
   0x4   : > { %p25_p0 = scmp.ge.s32.totalorder %s24_s23, 2  ;;  %p8194_p1 = scmp.ge.s32.totalorder %s10550_s22, 1 }
   0x5   : > { %p207_p2 = scmp.lt.s32.totalorder %s10550_s22, 5 }
   0x6   : > { %s12646_s23 = smov (%p25_p0, %s24_s23), 0  ;;  %s12648_s24 = smov (!%p25_p0, %s27_s24), %s10546_s21 }
   0x7   : > { %p208_p3 = pnand %p8194_p1, %p207_p2  ;;  %p29_p4 = scmp.ge.s32.totalorder %s12648_s24, 2 }
   0x8   : > { %v10314_v0 = vld [vmem:[%s12606_s1 + $0x40] sm:$0xff] (!%p208_p3)   ;;  %p243_p5 = scmp.lt.s32.totalorder (!%p208_p3), %s10538_s19, 1  ;;  %v10315_v1 = vld [vmem:[%s12606_s1 + $0x48] sm:$0xff] (!%p208_p3)   ;;  %p245_p6 = scmp.lt.s32.totalorder (!%p208_p3), %s10534_s18, 1  ;;  %v10316_v2 = vld [vmem:[%s12606_s1 + $0x50] sm:$0xff] (!%p208_p3)   ;;  %vm1210_vm3 = vcmask (!%p208_p3), 1042432  }
   0x9   : > { %s12650_s24 = smov (%p29_p4, %s12648_s24), 0  ;;  %211 = sbr.rel (%p208_p3) target bundleno = 1085 (0x43d), region = 40 }
   0xa   : > { %9407 = vmatprep.subr.bf16.mxu0 (!%p208_p3), %v10314_v0  ;;  %v10317_v3 = vld [vmem:[%s12606_s1 + $0x58] sm:$0xff] (!%p208_p3)   ;;  %vm629_vm0 = vsmask.f32 (!%p208_p3), 3328  ;;  %vm630_vm1 = vsmask.f32 (!%p208_p3), 7440  ;;  %v10318_v4 = vld [vmem:[%s12606_s1 + $0x60] sm:$0xff] (!%p208_p3)  }
   0xb   : > { %9408 = vmatpush3.bf16.msra.mxu0 (!%p208_p3), %v10314_v0  ;;  %v10319_v30 = vld [vmem:[%s12606_s1 + $0x68] sm:$0xff] (!%p208_p3)   ;;  %vm10655_vm2 = vmor (!%p208_p3), %vm629_vm0, %vm630_vm1  ;;  %v10320_v50 = vld [vmem:[%s12606_s1 + $0x70] sm:$0xff] (!%p208_p3)   ;;  %vm1211_vm4 = vcmask (!%p208_p3), 1046532   ;;  %vm4553_vm10 = vcmask (!%p208_p3), 1043456   ;;  %vm4554_vm13 = vsmask.f32 (!%p208_p3), 7938 }
   0xc   : > { %9409 = vmatprep.subr.bf16.mxu0 (!%p208_p3), %v10315_v1  ;;  %vm10752_vm5 = vmor (!%p208_p3), %vm1210_vm3, %vm1211_vm4  ;;  %vm4350_vm14 = vsmask.f32 (!%p208_p3), 256  ;;  %vm4351_vm0 = vsmask.f32 (!%p208_p3), 4368  ;;  %vm4560_vm1 = vcmask (!%p208_p3), 1040384  }
   0xf   : > { %9410 = vmatpush3.bf16.msra.mxu0 (!%p208_p3), %v10315_v1 }
  0x10   : > { %s12652_s19 = smov (!%p243_p5, %s10538_s19), 1  ;;  %9411 = vmatprep.subr.bf16.mxu0 %v10316_v2 }
  0x11   : > { %s10625_s29 = scalar_select %p245_p6, %s10534_s18, 1 }
  0x12   : > { %s10272_s7 = smul.u32 72, %s12652_s19  ;;  %s8197_s28 = sshll.u32 %s12652_s19, 5 }
  0x13   : > { %s10271_s8 = smul.u32 36, %s10625_s29  ;;  %9412 = vmatpush3.bf16.msra.mxu0 %v10316_v2  ;;  %s8196_s27 = sshll.u32 %s10625_s29, 4 }
  0x14   : > { %9413 = vmatprep.subr.bf16.mxu0 %v10317_v3  ;;  %s258_s30 = sadd.s32 %s8197_s28, %s8196_s27 }
  0x15   : > { %s249_s9 = sadd.s32 %s10272_s7, %s10271_s8  ;;  %s8198_s19 = sshll.u32 %s258_s30, 3 }
  0x16   : > { %s8195_s12 = sshll.u32 %s249_s9, 2  ;;  %s8680_s9 = sshll.u32 %s10534_s18, 3 }
  0x17   : > { %s10638_s15 = scalar_lea.vmem %s12605_s0, %s8195_s12  ;;  %9414 = vmatpush3.bf16.msra.mxu0 %v10317_v3  ;;  %s8681_s10 = sadd.s32 4294967295, %s8680_s9 }
  0x18   : > { %v599_v5 = vld [vmem:[%s10638_s15] sm:$0xf]  ;;  %v600_v6 = vld [vmem:[%s10638_s15 + $0x4] sm:$0xf]  ;;  %v601_v7 = vld [vmem:[%s10638_s15 + $0x8] sm:$0x1]  ;;  %9415 = vmatprep.subr.bf16.mxu0 %v10318_v4  ;;  %s12539_s9 = scalar_lea.vmem %s12610_s5, %s8198_s19 }
  0x19   : > { %v633_v8 = vshrl.u32 %v599_v5, 16  ;;  %v636_v9 = vshll.u32 %v599_v5, 16  ;;  %v642_v10 = vshll.u32 %v600_v6, 16  ;;  %v646_v11 = vshrl.u32 %v600_v6, 16  ;;  %v602_v12 = vld [vmem:[%s10638_s15 + $0xc] sm:$0xf] }
  0x1a   : > { %v652_v13 = vshll.u32 %v601_v7, 16  ;;  %v603_v14 = vld [vmem:[%s10638_s15 + $0x10] sm:$0xf]  ;;  %v604_v15 = vld [vmem:[%s10638_s15 + $0x14] sm:$0x1]  ;;  %v657_v16 = vshrl.u32 %v602_v12, 16 }
  0x1b   : > { %v635_v17 = vrot.slane %v633_v8, 4  ;;  %v638_v18 = vrot.slane %v636_v9, 5  ;;  %v644_v19 = vrot.slane %v642_v10, 5  ;;  %v648_v20 = vrot.slane %v646_v11, 4  ;;  %v605_v29 = vld [vmem:[%s10638_s15 + $0x18] sm:$0xf]  ;;  %9416 = vmatpush3.bf16.msra.mxu0 %v10318_v4 }
  0x1c   : > { %v654_v21 = vrot.slane %v652_v13, 5  ;;  %v659_v22 = vrot.slane %v657_v16, 4  ;;  %v660_v23 = vshll.u32 %v602_v12, 16  ;;  %v666_v24 = vshll.u32 %v603_v14, 16  ;;  %v606_v34 = vld [vmem:[%s10638_s15 + $0x1c] sm:$0xf]  ;;  %9417 = vmatprep.subr.bf16.mxu0 %v10319_v30 }
  0x1d   : > { %v639_v25 = vor.u32 %v638_v18, %v635_v17  ;;  %v649_v26 = vor.u32 %v648_v20, %v644_v19  ;;  %v670_v27 = vshrl.u32 %v603_v14, 16  ;;  %v676_v28 = vshll.u32 %v604_v15, 16  ;;  %v607_v39 = vld [vmem:[%s10638_s15 + $0x20] sm:$0x1]  ;;  %v608_v44 = vld [vmem:[%s10638_s15 + $0x24] sm:$0xf] }
  0x1e   : > { %v662_v32 = vrot.slane %v660_v23, 5  ;;  %v668_v33 = vrot.slane %v666_v24, 5  ;;  %v681_v41 = vshrl.u32 %v605_v29, 16  ;;  %v684_v42 = vshll.u32 %v605_v29, 16  ;;  %v609_v49 = vld [vmem:[%s10638_s15 + $0x28] sm:$0xf] }
  0x1f   : > { %v640_v35 = vrot.slane %v639_v25, 4  ;;  %v650_v36 = vrot.slane %v649_v26, 4  ;;  %v672_v37 = vrot.slane %v670_v27, 4  ;;  %v678_v38 = vrot.slane %v676_v28, 5  ;;  %v610_v61 = vld [vmem:[%s10638_s15 + $0x2c] sm:$0x1]  ;;  %9418 = vmatpush3.bf16.msra.mxu0 %v10319_v30 }
  0x20   : > { %v663_v40 = vor.u32 %v662_v32, %v659_v22  ;;  %v690_v43 = vshll.u32 %v606_v34, 16  ;;  %v694_v48 = vshrl.u32 %v606_v34, 16  ;;  %v683_v53 = vrot.slane %v681_v41, 4  ;;  %v611_v0 = vld [vmem:[%s10638_s15 + $0x30] sm:$0xf]  ;;  %9419 = vmatprep.subr.bf16.mxu0 %v10320_v50  ;;  %v10321_v5 = vld [vmem:[%s12606_s1 + $0x78] sm:$0xff]  }
  0x21   : > { %v645_v45 = vsel %vm10655_vm2, %v640_v35, %v644_v19  ;;  %v655_v46 = vsel %vm10655_vm2, %v650_v36, %v654_v21  ;;  %v673_v47 = vor.u32 %v672_v37, %v668_v33  ;;  %v686_v54 = vrot.slane %v684_v42, 5  ;;  %v612_v10 = vld [vmem:[%s10638_s15 + $0x34] sm:$0xf]  ;;  %v613_v15 = vld [vmem:[%s10638_s15 + $0x38] sm:$0x1]  ;;  %v10322_v25 = vld [vmem:[%s12606_s1 + $0x80] sm:$0xff]  }
  0x22   : > { %v8233_v51 = vcombine.low %v645_v45, %v655_v46  ;;  %v664_v52 = vrot.slane %v663_v40, 4  ;;  %v692_v56 = vrot.slane %v690_v43, 5  ;;  %v696_v57 = vrot.slane %v694_v48, 4  ;;  %v614_v20 = vld [vmem:[%s10638_s15 + $0x3c] sm:$0xf]  ;;  %v10323_v36 = vld [vmem:[%s12606_s1 + $0x88] sm:$0xff]  }
  0x23   : > { %v674_v55 = vrot.slane %v673_v47, 4  ;;  %v700_v58 = vshll.u32 %v607_v39, 16  ;;  %v687_v60 = vor.u32 %v686_v54, %v683_v53  ;;  %v705_v62 = vshrl.u32 %v608_v44, 16  ;;  %9420 = vmatpush3.bf16.msra.mxu0 %v10320_v50  ;;  %v615_v30 = vld [vmem:[%s10638_s15 + $0x40] sm:$0xf] }
  0x24   : > { %9423 = vmatprep.mubr.bf16.mxu0 %v8233_v51  ;;  %v669_v59 = vsel %vm10655_vm2, %v664_v52, %v668_v33  ;;  %v708_v63 = vshll.u32 %v608_v44, 16  ;;  %v697_v2 = vor.u32 %v696_v57, %v692_v56  ;;  %v714_v4 = vshll.u32 %v609_v49, 16  ;;  %9421 = vmatprep.subr.bf16.mxu0 %v10321_v5  ;;  %v616_v39 = vld [vmem:[%s10638_s15 + $0x44] sm:$0x1]  ;;  %v617_v42 = vld [vmem:[%s10638_s15 + $0x48] sm:$0xf] }
  0x25   : > { %v679_v1 = vsel %vm10655_vm2, %v674_v55, %v678_v38  ;;  %v702_v3 = vrot.slane %v700_v58, 5  ;;  %v688_v7 = vrot.slane %v687_v60, 4  ;;  %v707_v8 = vrot.slane %v705_v62, 4  ;;  %v618_v47 = vld [vmem:[%s10638_s15 + $0x4c] sm:$0xf] }
  0x26   : > { %v8234_v6 = vcombine.low %v669_v59, %v679_v1  ;;  %v710_v9 = vrot.slane %v708_v63, 5  ;;  %v698_v11 = vrot.slane %v697_v2, 4  ;;  %v716_v12 = vrot.slane %v714_v4, 5  ;;  %v619_v52 = vld [vmem:[%s10638_s15 + $0x50] sm:$0x1] }
  0x27   : > { %v718_v13 = vshrl.u32 %v609_v49, 16  ;;  %v724_v14 = vshll.u32 %v610_v61, 16  ;;  %v693_v16 = vsel %vm10655_vm2, %v688_v7, %v692_v56  ;;  %v729_v18 = vshrl.u32 %v611_v0, 16  ;;  %9422 = vmatpush3.bf16.msra.mxu0 %v10321_v5  ;;  %v10324_v1 = vld [vmem:[%s12606_s1 + $0x90] sm:$0xff]  }
  0x28   : > { %v711_v17 = vor.u32 %v710_v9, %v707_v8  ;;  %v732_v19 = vshll.u32 %v611_v0, 16  ;;  %v703_v21 = vsel %vm10655_vm2, %v698_v11, %v702_v3  ;;  %v738_v24 = vshll.u32 %v612_v10, 16  ;;  %9443 = vmatprep.subr.bf16.mxu0 %v10322_v25  ;;  %v621_v11 = vld [vmem:[%s10638_s15 + $0x58] sm:$0xf] }
  0x29   : > { %v720_v22 = vrot.slane %v718_v13, 4  ;;  %v726_v23 = vrot.slane %v724_v14, 5  ;;  %v8235_v26 = vcombine.low %v693_v16, %v703_v21  ;;  %v731_v28 = vrot.slane %v729_v18, 4  ;;  %v622_v16 = vld [vmem:[%s10638_s15 + $0x5c] sm:$0x1] }
  0x2a   : > { %v712_v27 = vrot.slane %v711_v17, 4  ;;  %v734_v29 = vrot.slane %v732_v19, 5  ;;  %v740_v33 = vrot.slane %v738_v24, 5  ;;  %v742_v34 = vshrl.u32 %v612_v10, 16  ;;  %9424 = vmatmul.mubr.bf16.vlgmr.msra.gmra.mrb[0].mxu0 %v8234_v6  ;;  %v620_v6 = vld [vmem:[%s10638_s15 + $0x54] sm:$0xf] }
  0x2b   : > { %v721_v32 = vor.u32 %v720_v22, %v716_v12  ;;  %v748_v35 = vshll.u32 %v613_v15, 16  ;;  %v753_v40 = vshrl.u32 %v614_v20, 16  ;;  %v756_v41 = vshll.u32 %v614_v20, 16  ;;  %9444 = vmatpush3.bf16.msra.mxu0 %v10322_v25  ;;  %9427 = vmatprep.mubr.bf16.mxu0 %v8235_v26  ;;  %v623_v21 = vld [vmem:[%s10638_s15 + $0x60] sm:$0xf]  ;;  %v10325_v22 = vld [vmem:[%s12606_s1 + $0x98] sm:$0xff]  }
  0x2c   : > { %v717_v37 = vsel %vm10655_vm2, %v712_v27, %v716_v12  ;;  %v735_v38 = vor.u32 %v734_v29, %v731_v28  ;;  %v744_v44 = vrot.slane %v742_v34, 4  ;;  %v762_v46 = vshll.u32 %v615_v30, 16  ;;  %9445 = vmatprep.subr.bf16.mxu0 %v10323_v36 }
  0x2d   : > { %v722_v43 = vrot.slane %v721_v32, 4  ;;  %v750_v45 = vrot.slane %v748_v35, 5  ;;  %v755_v49 = vrot.slane %v753_v40, 4  ;;  %v758_v50 = vrot.slane %v756_v41, 5  ;;  %v624_v32 = vld [vmem:[%s10638_s15 + $0x64] sm:$0xf] }
  0x2e   : > { %v736_v48 = vrot.slane %v735_v38, 4  ;;  %v766_v51 = vshrl.u32 %v615_v30, 16  ;;  %v745_v54 = vor.u32 %v744_v44, %v740_v33  ;;  %v764_v55 = vrot.slane %v762_v46, 5 }
  0x2f   : > { %v727_v53 = vsel %vm10655_vm2, %v722_v43, %v726_v23  ;;  %v772_v56 = vshll.u32 %v616_v39, 16  ;;  %v759_v59 = vor.u32 %v758_v50, %v755_v49  ;;  %v777_v63 = vshrl.u32 %v617_v42, 16  ;;  %9446 = vmatpush3.bf16.msra.mxu0 %v10323_v36 }
  0x30   : > { %v8236_v57 = vcombine.low %v717_v37, %v727_v53  ;;  %v741_v58 = vsel %vm10655_vm2, %v736_v48, %v740_v33  ;;  %v768_v60 = vrot.slane %v766_v51, 4  ;;  %v746_v61 = vrot.slane %v745_v54, 4  ;;  %9447 = vmatprep.subr.bf16.mxu0 %v10324_v1  ;;  %v10326_v37 = vld [vmem:[%s12606_s1 + $0xa0] sm:$0xff]  }
  0x31   : > { %v774_v62 = vrot.slane %v772_v56, 5  ;;  %v780_v0 = vshll.u32 %v617_v42, 16  ;;  %v760_v2 = vrot.slane %v759_v59, 4  ;;  %v786_v4 = vshll.u32 %v618_v47, 16 }
  0x32   : > { %v769_v3 = vor.u32 %v768_v60, %v764_v55  ;;  %v790_v5 = vshrl.u32 %v618_v47, 16  ;;  %v751_v7 = vsel %vm10655_vm2, %v746_v61, %v750_v45  ;;  %v779_v8 = vrot.slane %v777_v63, 4  ;;  %9428 = vmatmul.mubr.bf16.gmra.mrb[4].mxu0 %v8236_v57  ;;  %v625_v45 = vld [vmem:[%s10638_s15 + $0x68] sm:$0x1]  ;;  %v626_v47 = vld [vmem:[%s10638_s15 + $0x6c] sm:$0xf] }
  0x33   : > { %v782_v9 = vrot.slane %v780_v0, 5  ;;  %v796_v10 = vshll.u32 %v619_v52, 16  ;;  %v8237_v12 = vcombine.low %v741_v58, %v751_v7  ;;  %v765_v13 = vsel %vm10655_vm2, %v760_v2, %v764_v55  ;;  %9448 = vmatpush3.bf16.msra.mxu0 %v10324_v1  ;;  %v627_v52 = vld [vmem:[%s10638_s15 + $0x70] sm:$0xf]  ;;  %v628_v57 = vld [vmem:[%s10638_s15 + $0x74] sm:$0x1] }
  0x34   : > { %v770_v14 = vrot.slane %v769_v3, 4  ;;  %v788_v15 = vrot.slane %v786_v4, 5  ;;  %v792_v18 = vrot.slane %v790_v5, 4  ;;  %v801_v20 = vshrl.u32 %v620_v6, 16  ;;  %9449 = vmatprep.subr.bf16.mxu0 %v10325_v22  ;;  %v10327_v58 = vld [vmem:[%s12606_s1 + $0xa8] sm:$0xff]  }
  0x35   : > { %v783_v17 = vor.u32 %v782_v9, %v779_v8  ;;  %v798_v19 = vrot.slane %v796_v10, 5  ;;  %v804_v24 = vshll.u32 %v620_v6, 16  ;;  %v810_v25 = vshll.u32 %v621_v11, 16  ;;  %9431 = vmatprep.mubr.bf16.mxu0 %v8237_v12  ;;  %v1151_v4 = vld [vmem:[%s10638_s15 + $0x4] sm:$0xf] }
  0x36   : > { %v775_v23 = vsel %vm10655_vm2, %v770_v14, %v774_v62  ;;  %v814_v26 = vshrl.u32 %v621_v11, 16  ;;  %v793_v29 = vor.u32 %v792_v18, %v788_v15  ;;  %v803_v30 = vrot.slane %v801_v20, 4  ;;  %v1152_v20 = vld [vmem:[%s10638_s15 + $0x8] sm:$0x1] }
  0x37   : > { %v8238_v27 = vcombine.low %v765_v13, %v775_v23  ;;  %v784_v28 = vrot.slane %v783_v17, 4  ;;  %v806_v33 = vrot.slane %v804_v24, 5  ;;  %v812_v34 = vrot.slane %v810_v25, 5  ;;  %9450 = vmatpush3.bf16.msra.mxu0 %v10325_v22  ;;  %v10328_v13 = vld [vmem:[%s12606_s1 + $0xb0] sm:$0xff]  }
  0x38   : > { %v816_v35 = vrot.slane %v814_v26, 4  ;;  %v820_v36 = vshll.u32 %v622_v16, 16  ;;  %v794_v39 = vrot.slane %v793_v29, 4  ;;  %v825_v40 = vshrl.u32 %v623_v21, 16  ;;  %9451 = vmatprep.subr.bf16.mxu0 %v10326_v37  ;;  %v1154_v26 = vld [vmem:[%s10638_s15 + $0x10] sm:$0xf] }
  0x39   : > { %v789_v38 = vsel %vm10655_vm2, %v784_v28, %v788_v15  ;;  %v828_v41 = vshll.u32 %v623_v21, 16  ;;  %v807_v42 = vor.u32 %v806_v33, %v803_v30  ;;  %v834_v46 = vshll.u32 %v624_v32, 16  ;;  %v10329_v28 = vld [vmem:[%s12606_s1 + $0xb8] sm:$0xff]  }
  0x3a   : > { %v817_v43 = vor.u32 %v816_v35, %v812_v34  ;;  %v822_v44 = vrot.slane %v820_v36, 5  ;;  %v799_v48 = vsel %vm10655_vm2, %v794_v39, %v798_v19  ;;  %v827_v49 = vrot.slane %v825_v40, 4  ;;  %9432 = vmatmul.mubr.bf16.gmra.mrb[8].mxu0 %v8238_v27  ;;  %v1150_v19 = vld [vmem:[%s10638_s15] sm:$0xe]  ;;  %v1155_v39 = vld [vmem:[%s10638_s15 + $0x14] sm:$0x1] }
  0x3b   : > { %v830_v50 = vrot.slane %v828_v41, 5  ;;  %v838_v51 = vshrl.u32 %v624_v32, 16  ;;  %v8239_v53 = vcombine.low %v789_v38, %v799_v48  ;;  %v808_v54 = vrot.slane %v807_v42, 4  ;;  %9452 = vmatpush3.bf16.msra.mxu0 %v10326_v37  ;;  %v1153_v38 = vld [vmem:[%s10638_s15 + $0xc] sm:$0xe]  ;;  %v10330_v42 = vld [vmem:[%s12606_s1 + $0xc0] sm:$0xff]  }
  0x3c   : > { %v818_v55 = vrot.slane %v817_v43, 4  ;;  %v836_v56 = vrot.slane %v834_v46, 5  ;;  %v844_v61 = vshll.u32 %v625_v45, 16  ;;  %v849_v62 = vshrl.u32 %v626_v47, 16  ;;  %9453 = vmatprep.subr.bf16.mxu0 %v10327_v58  ;;  %v1156_v43 = vld [vmem:[%s10638_s15 + $0x18] sm:$0xe] }
  0x3d   : > { %v831_v59 = vor.u32 %v830_v50, %v827_v49  ;;  %v840_v60 = vrot.slane %v838_v51, 4  ;;  %v852_v63 = vshll.u32 %v626_v47, 16  ;;  %v858_v0 = vshll.u32 %v627_v52, 16  ;;  %9435 = vmatprep.mubr.bf16.mxu0 %v8239_v53  ;;  %v1158_v45 = vld [vmem:[%s10638_s15 + $0x20] sm:$0x1] }
  0x3e   : > { %v846_v3 = vrot.slane %v844_v61, 5  ;;  %v851_v5 = vrot.slane %v849_v62, 4  ;;  %v862_v8 = vshrl.u32 %v627_v52, 16  ;;  %v813_v9 = vsel %vm10655_vm2, %v808_v54, %v812_v34  ;;  %v1157_v34 = vld [vmem:[%s10638_s15 + $0x1c] sm:$0xf] }
  0x3f   : > { %v832_v1 = vrot.slane %v831_v59, 4  ;;  %v841_v2 = vor.u32 %v840_v60, %v836_v56  ;;  %v854_v6 = vrot.slane %v852_v63, 5  ;;  %v860_v7 = vrot.slane %v858_v0, 5  ;;  %9454 = vmatpush3.bf16.msra.mxu0 %v10327_v58  ;;  %v1159_v49 = vld [vmem:[%s10638_s15 + $0x24] sm:$0xe] }
  0x40   : > { %v823_v10 = vsel %vm10655_vm2, %v818_v55, %v822_v44  ;;  %v868_v12 = vshll.u32 %v628_v57, 16  ;;  %v864_v16 = vrot.slane %v862_v8, 4  ;;  %v1215_v17 = vrot.slane %v1151_v4, 5  ;;  %9455 = vmatprep.subr.bf16.mxu0 %v10328_v13  ;;  %v1160_v50 = vld [vmem:[%s10638_s15 + $0x28] sm:$0xf] }
  0x41   : > { %v842_v11 = vrot.slane %v841_v2, 4  ;;  %v837_v14 = vsel %vm10655_vm2, %v832_v1, %v836_v56  ;;  %v855_v15 = vor.u32 %v854_v6, %v851_v5  ;;  %v8240_v21 = vcombine.low %v813_v9, %v823_v10  ;;  %v1163_v51 = vld [vmem:[%s10638_s15 + $0x34] sm:$0xf]  ;;  %v1161_v55 = vld [vmem:[%s10638_s15 + $0x2c] sm:$0x1] }
  0x42   : > { %v865_v22 = vor.u32 %v864_v16, %v860_v7  ;;  %v870_v25 = vrot.slane %v868_v12, 5  ;;  %v8251_v29 = vrot.slane %v1150_v19, 9  ;;  %v1217_v30 = vrot.slane %v1215_v17, 4  ;;  %v1162_v56 = vld [vmem:[%s10638_s15 + $0x30] sm:$0xe]  ;;  %v10331_v16 = vld [vmem:[%s12606_s1 + $0xc8] sm:$0xff]  }
  0x43   : > { %v847_v18 = vsel %vm10655_vm2, %v842_v11, %v846_v3  ;;  %v856_v24 = vrot.slane %v855_v15, 4  ;;  %v1218_v32 = vrot.slane %v1152_v20, 5  ;;  %9436 = vmatmul.mubr.bf16.gmra.mrb[12].mxu0 %v8240_v21  ;;  %v1222_v35 = vrot.slane %v1154_v26, 5  ;;  %v1166_v57 = vld [vmem:[%s10638_s15 + $0x40] sm:$0xf] }
  0x44   : > { %v8241_v23 = vcombine.low %v837_v14, %v847_v18  ;;  %v866_v27 = vrot.slane %v865_v22, 4  ;;  %9456 = vmatpush3.bf16.msra.mxu0 %v10328_v13  ;;  %v1216_v40 = vsel %vm10752_vm5, %v8251_v29, %v1215_v17  ;;  %v1229_v44 = vrot.slane %v1157_v34, 5  ;;  %v1164_v60 = vld [vmem:[%s10638_s15 + $0x38] sm:$0x1]  ;;  %v1165_v63 = vld [vmem:[%s10638_s15 + $0x3c] sm:$0xe] }
  0x45   : > { %v861_v36 = vsel %vm10655_vm2, %v856_v24, %v860_v7  ;;  %9457 = vmatprep.subr.bf16.mxu0 %v10329_v28  ;;  %v1219_v41 = vsel %vm10752_vm5, %v1217_v30, %v1218_v32  ;;  %v8252_v47 = vrot.slane %v1153_v38, 9  ;;  %v1224_v48 = vrot.slane %v1222_v35, 4  ;;  %v1167_v4 = vld [vmem:[%s10638_s15 + $0x44] sm:$0x1]  ;;  %v1168_v9 = vld [vmem:[%s10638_s15 + $0x48] sm:$0xe] }
  0x46   : > { %9439 = vmatprep.mubr.bf16.mxu0 %v8241_v23  ;;  %v871_v37 = vsel %vm10655_vm2, %v866_v27, %v870_v25  ;;  %v8277_v52 = vcombine.low %v1216_v40, %v1219_v41  ;;  %v1225_v53 = vrot.slane %v1155_v39, 5  ;;  %v8253_v54 = vrot.slane %v1156_v43, 9  ;;  %v1169_v10 = vld [vmem:[%s10638_s15 + $0x4c] sm:$0xf]  ;;  %v10332_v22 = vld [vmem:[%s12606_s1 + $0xd0] sm:$0xff]   ;;  %v10333_v29 = vld [vmem:[%s12606_s1 + $0xd8] sm:$0xff]  }
  0x47   : > { %v8242_v46 = vcombine.low %v861_v36, %v871_v37  ;;  %v1231_v58 = vrot.slane %v1229_v44, 4  ;;  %v1232_v59 = vrot.slane %v1158_v45, 5  ;;  %v1236_v61 = vrot.slane %v1160_v50, 5  ;;  %v1170_v25 = vld [vmem:[%s10638_s15 + $0x50] sm:$0x1] }
  0x48   : > { %9458 = vmatpush3.bf16.msra.mxu0 %v10329_v28  ;;  %v1243_v62 = vrot.slane %v1163_v51, 5  ;;  %v1250_v0 = vrot.slane %v1166_v57, 5  ;;  %v1223_v1 = vsel %vm10752_vm5, %v8252_v47, %v1222_v35  ;;  %v1226_v2 = vsel %vm10752_vm5, %v1224_v48, %v1225_v53  ;;  %v1172_v32 = vld [vmem:[%s10638_s15 + $0x58] sm:$0xf]  ;;  %v1175_v36 = vld [vmem:[%s10638_s15 + $0x64] sm:$0xf] }
  0x49   : > { %9479 = vmatprep.subr.bf16.mxu0 %v10330_v42  ;;  %v8254_v3 = vrot.slane %v1159_v49, 9  ;;  %v1230_v5 = vsel %vm10752_vm5, %v8253_v54, %v1229_v44  ;;  %v1233_v6 = vsel %vm10752_vm5, %v1231_v58, %v1232_v59  ;;  %v1239_v7 = vrot.slane %v1161_v55, 5  ;;  %v1171_v37 = vld [vmem:[%s10638_s15 + $0x54] sm:$0xe]  ;;  %v1173_v38 = vld [vmem:[%s10638_s15 + $0x5c] sm:$0x1] }
  0x4a   : > { %v8255_v8 = vrot.slane %v1162_v56, 9  ;;  %v1238_v11 = vrot.slane %v1236_v61, 4  ;;  %v1245_v12 = vrot.slane %v1243_v62, 4  ;;  %v1246_v13 = vrot.slane %v1164_v60, 5  ;;  %v1176_v47 = vld [vmem:[%s10638_s15 + $0x68] sm:$0x1] }
  0x4b   : > { %9440 = vmatmul.mubr.bf16.gmra.mrb[16].mxu0 %v8242_v46  ;;  %v8256_v14 = vrot.slane %v1165_v63, 9  ;;  %v8278_v15 = vcombine.low %v1223_v1, %v1226_v2  ;;  %v1252_v17 = vrot.slane %v1250_v0, 4  ;;  %v1253_v18 = vrot.slane %v1167_v4, 5  ;;  %v1174_v46 = vld [vmem:[%s10638_s15 + $0x60] sm:$0xe]  ;;  %v10335_v53 = vld [vmem:[%s12606_s1 + $0xe8] sm:$0xff]  }
  0x4c   : > { %9459 = vmatprep.mubr.bf16.mxu0 %v8277_v52  ;;  %v8279_v19 = vcombine.low %v1230_v5, %v1233_v6  ;;  %v8257_v20 = vrot.slane %v1168_v9, 9  ;;  %v1257_v21 = vrot.slane %v1169_v10, 5  ;;  %v1237_v23 = vsel %vm10752_vm5, %v8254_v3, %v1236_v61  ;;  %v1178_v57 = vld [vmem:[%s10638_s15 + $0x70] sm:$0xf]  ;;  %v1179_v1 = vld [vmem:[%s10638_s15 + $0x74] sm:$0x1] }
  0x4d   : > { %v1240_v24 = vsel %vm10752_vm5, %v1238_v11, %v1239_v7  ;;  %v1244_v26 = vsel %vm10752_vm5, %v8255_v8, %v1243_v62  ;;  %v1247_v27 = vsel %vm10752_vm5, %v1245_v12, %v1246_v13  ;;  %v1260_v35 = vrot.slane %v1170_v25, 5  ;;  %v10336_v61 = vld [vmem:[%s12606_s1 + $0xf0] sm:$0xff]   ;;  %v10337_v7 = vld [vmem:[%s12606_s1 + $0xf8] sm:$0xff]   ;;  %v10340_v10 = vld [vmem:[%s12606_s1 + $0x100] sm:$0xff]  }
  0x4e   : > { %v8280_v28 = vcombine.low %v1237_v23, %v1240_v24  ;;  %v8281_v30 = vcombine.low %v1244_v26, %v1247_v27  ;;  %v1259_v34 = vrot.slane %v1257_v21, 4  ;;  %v1251_v39 = vsel %vm10752_vm5, %v8256_v14, %v1250_v0  ;;  %v1177_v0 = vld [vmem:[%s10638_s15 + $0x6c] sm:$0xe]  ;;  %v10339_v13 = vld [vmem:[%s10638_s15 + $0x18] sm:$0xff]   ;;  %v10343_v27 = vld [vmem:[%s10638_s15 + $0x30] sm:$0xff]  }
  0x4f   : > { %v1254_v40 = vsel %vm10752_vm5, %v1252_v17, %v1253_v18  ;;  %v1264_v41 = vrot.slane %v1172_v32, 5  ;;  %v1258_v43 = vsel %vm10752_vm5, %v8257_v20, %v1257_v21  ;;  %v1271_v45 = vrot.slane %v1175_v36, 5  ;;  %v10338_v12 = vld [vmem:[%s10638_s15 + $0xc] sm:$0xff]   ;;  %v8352_v18 = vld [vmem:[%s10638_s15 + $0x18] sm:$0xf] }
  0x50   : > { %v1261_v44 = vsel %vm10752_vm5, %v1259_v34, %v1260_v35  ;;  %v8282_v48 = vcombine.low %v1251_v39, %v1254_v40  ;;  %v8258_v50 = vrot.slane %v1171_v37, 9  ;;  %v1267_v52 = vrot.slane %v1173_v38, 5  ;;  %v8349_v14 = vld [vmem:[%s10638_s15 + $0xc] sm:$0xf]  ;;  %v8351_v20 = vld [vmem:[%s10638_s15 + $0x14] sm:$0x1] }
  0x51   : > { %v8283_v49 = vcombine.low %v1258_v43, %v1261_v44  ;;  %v1266_v51 = vrot.slane %v1264_v41, 4  ;;  %v8259_v54 = vrot.slane %v1174_v46, 9  ;;  %v1273_v55 = vrot.slane %v1271_v45, 4  ;;  %v10341_v17 = vld [vmem:[%s12606_s1 + $0x108] sm:$0xff]   ;;  %v8353_v24 = vld [vmem:[%s10638_s15 + $0x1c] sm:$0xf] }
  0x52   : > { %v1274_v56 = vrot.slane %v1176_v47, 5  ;;  %v1265_v58 = vsel %vm10752_vm5, %v8258_v50, %v1264_v41  ;;  %v1278_v60 = vrot.slane %v1178_v57, 5  ;;  %v8260_v4 = vrot.slane %v1177_v0, 9  ;;  %v8356_v35 = vld [vmem:[%s10638_s15 + $0x28] sm:$0xf]  ;;  %v10348_v50 = vld [vmem:[%s12606_s1 + $0x120] sm:$0xff]  }
  0x53   : > { %9460 = vmatmul.mubr.bf16.vlgmr.msra.gmra.mrb[0].mxu0 %v8278_v15  ;;  %v1268_v59 = vsel %vm10752_vm5, %v1266_v51, %v1267_v52  ;;  %v1272_v62 = vsel %vm10752_vm5, %v8259_v54, %v1271_v45  ;;  %v1281_v6 = vrot.slane %v1179_v1, 5  ;;  %v10342_v15 = vld [vmem:[%s10638_s15 + $0x24] sm:$0xff]   ;;  %v1914_v21 = vshll.u32 %v8349_v14, 16  ;;  %v8354_v40 = vld [vmem:[%s10638_s15 + $0x20] sm:$0x1]  ;;  %v10346_v45 = vld [vmem:[%s12606_s1 + $0x118] sm:$0xff]  }
  0x54   : > { %9480 = vmatpush3.bf16.msra.mxu0 %v10330_v42  ;;  %9463 = vmatprep.mubr.bf16.mxu0 %v8279_v19  ;;  %v10334_v42 = vld [vmem:[%s12606_s1 + $0xe0] sm:$0xff]   ;;  %v1275_v63 = vsel %vm10752_vm5, %v1273_v55, %v1274_v56  ;;  %v8284_v2 = vcombine.low %v1265_v58, %v1268_v59  ;;  %v1280_v5 = vrot.slane %v1278_v60, 4  ;;  %v1279_v8 = vsel %vm10752_vm5, %v8260_v4, %v1278_v60  ;;  %v8359_v55 = vld [vmem:[%s10638_s15 + $0x34] sm:$0xf]  ;;  %v8357_v59 = vld [vmem:[%s10638_s15 + $0x2c] sm:$0x1] }
  0x55   : > { %9481 = vmatprep.subr.bf16.mxu0 %v10331_v16  ;;  %v8285_v3 = vcombine.low %v1272_v62, %v1275_v63  ;;  %v1911_v19 = vshrl.u32 %v8349_v14, 16  ;;  %v1935_v25 = vshrl.u32 %v8352_v18, 16  ;;  %v1938_v26 = vshll.u32 %v8352_v18, 16  ;;  %v8362_v18 = vld [vmem:[%s10638_s15 + $0x40] sm:$0xf] }
  0x56   : > { %v1282_v9 = vsel %vm10752_vm5, %v1280_v5, %v1281_v6  ;;  %v1930_v34 = vshll.u32 %v8351_v20, 16  ;;  %v1916_v36 = vrot.slane %v1914_v21, 5  ;;  %v1944_v39 = vshll.u32 %v8353_v24, 16  ;;  %v8360_v5 = vld [vmem:[%s10638_s15 + $0x38] sm:$0x1] }
  0x57   : > { %v8286_v11 = vcombine.low %v1279_v8, %v1282_v9  ;;  %v1913_v32 = vrot.slane %v1911_v19, 4  ;;  %v1937_v41 = vrot.slane %v1935_v25, 4  ;;  %v1948_v43 = vshrl.u32 %v8353_v24, 16  ;;  %v10349_v8 = vld [vmem:[%s10638_s15 + $0x54] sm:$0xff]   ;;  %v10351_v9 = vld [vmem:[%s12606_s1 + $0x128] sm:$0xff]  }
  0x58   : > { %9482 = vmatpush3.bf16.msra.mxu0 %v10331_v16  ;;  %v8350_v16 = vld [vmem:[%s10638_s15 + $0x10] sm:$0xf]  ;;  %v1968_v47 = vshll.u32 %v8356_v35, 16  ;;  %v10881_v52 = vrot.slane %v1930_v34, 5  ;;  %v1954_v54 = vshll.u32 %v8354_v40, 16  ;;  %v1996_v6 = vshrl.u32 %v8359_v55, 16 }
  0x59   : > { %9483 = vmatprep.subr.bf16.mxu0 %v10332_v22  ;;  %v1924_v23 = vshrl.u32 %v8350_v16, 16  ;;  %v1917_v51 = vor.u32 %v1916_v36, %v1913_v32  ;;  %v1950_v58 = vrot.slane %v1948_v43, 4  ;;  %v8364_v19 = vld [vmem:[%s10638_s15 + $0x48] sm:$0xf]  ;;  %v10352_v32 = vld [vmem:[%s12606_s1 + $0x130] sm:$0xff]  }
  0x5a   : > { %v10889_v63 = vrot.slane %v1968_v47, 5  ;;  %v1998_v24 = vrot.slane %v1996_v6, 4  ;;  %v10353_v43 = vld [vmem:[%s10638_s15 + $0x6c] sm:$0xff]  }
  0x5b   : > { %9464 = vmatmul.mubr.bf16.gmra.mrb[4].mxu0 %v8280_v28  ;;  %v10344_v28 = vld [vmem:[%s12606_s1 + $0x110] sm:$0xff]   ;;  %v1926_v38 = vrot.slane %v1924_v23, 4  ;;  %v10891_v4 = vrot.slane %v1917_v51, 4 }
  0x5c   : > { %9484 = vmatpush3.bf16.msra.mxu0 %v10332_v22  ;;  %9467 = vmatprep.mubr.bf16.mxu0 %v8281_v30  ;;  %v1920_v22 = vshll.u32 %v8350_v16, 16  ;;  %v10345_v30 = vld [vmem:[%s10638_s15 + $0x3c] sm:$0xff]   ;;  %v1978_v16 = vshll.u32 %v8357_v59, 16 }
  0x5d   : > { %9485 = vmatprep.subr.bf16.mxu0 %v10333_v29 }
  0x5e   : > { %v10871_v37 = vrot.slane %v1920_v22, 5  ;;  %v2002_v22 = vshll.u32 %v8360_v5, 16  ;;  %v8370_v5 = vld [vmem:[%s10638_s15 + $0x60] sm:$0xf] }
  0x60   : > { %9486 = vmatpush3.bf16.msra.mxu0 %v10333_v29  ;;  %v8355_v29 = vld [vmem:[%s10638_s15 + $0x24] sm:$0xf]  ;;  %v1927_v56 = vor.u32 %v1926_v38, %v10871_v37  ;;  %v10921_v38 = vrot.slane %v1978_v16, 5 }
  0x61   : > { %9487 = vmatprep.subr.bf16.mxu0 %v10334_v42  ;;  %v1959_v44 = vshrl.u32 %v8355_v29, 16  ;;  %v1962_v46 = vshll.u32 %v8355_v29, 16  ;;  %v2031_v29 = vshrl.u32 %v8364_v19, 16 }
  0x63   : > { %9468 = vmatmul.mubr.bf16.gmra.mrb[8].mxu0 %v8282_v48  ;;  %v1972_v48 = vshrl.u32 %v8356_v35, 16  ;;  %v1961_v60 = vrot.slane %v1959_v44, 4  ;;  %v1964_v62 = vrot.slane %v1962_v46, 5  ;;  %v10355_v44 = vld [vmem:[%s12606_s1 + $0x138] sm:$0xff]   ;;  %v10929_v46 = vrot.slane %v2002_v22, 5 }
  0x64   : > { %9488 = vmatpush3.bf16.msra.mxu0 %v10334_v42  ;;  %9471 = vmatprep.mubr.bf16.mxu0 %v8283_v49  ;;  %v1940_v42 = vrot.slane %v1938_v26, 5  ;;  %v8358_v49 = vld [vmem:[%s10638_s15 + $0x30] sm:$0xf]  ;;  %v8365_v26 = vld [vmem:[%s10638_s15 + $0x4c] sm:$0xf]  ;;  %v2082_v22 = vshll.u32 %v8370_v5, 16 }
  0x65   : > { %9489 = vmatprep.subr.bf16.mxu0 %v10335_v53  ;;  %v1974_v0 = vrot.slane %v1972_v48, 4  ;;  %v1983_v1 = vshrl.u32 %v8358_v49, 16  ;;  %v1965_v14 = vor.u32 %v1964_v62, %v1961_v60  ;;  %v2040_v40 = vshll.u32 %v8365_v26, 16  ;;  %v8367_v60 = vld [vmem:[%s10638_s15 + $0x54] sm:$0xf] }
  0x66   : > { %v1941_v57 = vor.u32 %v1940_v42, %v1937_v41  ;;  %v2044_v41 = vshrl.u32 %v8365_v26, 16  ;;  %v10350_v42 = vld [vmem:[%s10638_s15 + $0x60] sm:$0xff]  }
  0x67   : > { %v10917_v35 = vrot.slane %v1965_v14, 4 }
  0x68   : > { %9490 = vmatpush3.bf16.msra.mxu0 %v10335_v53  ;;  %v10883_v53 = vrot.slane %v1944_v39, 5  ;;  %v2046_v59 = vrot.slane %v2044_v41, 4 }
  0x69   : > { %9491 = vmatprep.subr.bf16.mxu0 %v10336_v61 }
  0x6b   : > { %9472 = vmatmul.mubr.bf16.gmra.mrb[12].mxu0 %v8284_v2  ;;  %v1986_v2 = vshll.u32 %v8358_v49, 16  ;;  %v8363_v49 = vld [vmem:[%s10638_s15 + $0x44] sm:$0x1] }
  0x6c   : > { %9475 = vmatprep.mubr.bf16.mxu0 %v8285_v3  ;;  %9492 = vmatpush3.bf16.msra.mxu0 %v10336_v61  ;;  %v10347_v61 = vld [vmem:[%s10638_s15 + $0x48] sm:$0xff]   ;;  %v1992_v3 = vshll.u32 %v8359_v55, 16 }
  0x6d   : > { %9493 = vmatprep.subr.bf16.mxu0 %v10337_v7  ;;  %v1988_v20 = vrot.slane %v1986_v2, 5  ;;  %v2026_v2 = vshll.u32 %v8363_v49, 16 }
  0x6e   : > { %v10909_v21 = vrot.slane %v1992_v3, 5  ;;  %v8369_v3 = vld [vmem:[%s10638_s15 + $0x5c] sm:$0x1] }
  0x70   : > { %9494 = vmatpush3.bf16.msra.mxu0 %v10337_v7  ;;  %v8361_v7 = vld [vmem:[%s10638_s15 + $0x3c] sm:$0xf] }
  0x71   : > { %9515 = vmatprep.subr.bf16.mxu0 %v10340_v10  ;;  %v2007_v23 = vshrl.u32 %v8361_v7, 16  ;;  %v2010_v25 = vshll.u32 %v8361_v7, 16 }
  0x73   : > { %9476 = vmatmul.mubr.bf16.gmra.mrb[16].mxu0 %v8286_v11  ;;  %v10901_v11 = vrot.slane %v1941_v57, 4  ;;  %v2009_v47 = vrot.slane %v2007_v23, 4  ;;  %v2012_v48 = vrot.slane %v2010_v25, 5  ;;  %v1923_v57 = vsel %vm10655_vm2, %v10891_v4, %v10871_v37  ;;  %v10356_v37 = vld [vmem:[%s12606_s1 + $0x140] sm:$0xff]  }
  0x74   : > { %9495 = vmatprep.mubr.bf16.mxu0 %v10338_v12  ;;  %v1951_v12 = vor.u32 %v1950_v58, %v10883_v53  ;;  %v10939_v58 = vrot.slane %v2040_v40, 5 }
  0x76   : > { %v10915_v34 = vrot.slane %v1951_v12, 4  ;;  %v2047_v16 = vor.u32 %v2046_v59, %v10939_v58 }
  0x7b   : > { %9496 = vmatmul.mubr.bf16.vlgmr.msra.gmra.mrb[0].mxu0 %v10339_v13  ;;  %v10904_v13 = vrot.slane %v1954_v54, 5  ;;  %v2033_v54 = vrot.slane %v2031_v29, 4 }
  0x7c   : > { %9516 = vmatpush3.bf16.msra.mxu0 %v10340_v10  ;;  %9499 = vmatprep.mubr.bf16.mxu0 %v10342_v15  ;;  %v10899_v10 = vrot.slane %v1927_v56, 4  ;;  %v1975_v15 = vor.u32 %v1974_v0, %v10889_v63  ;;  %v8366_v56 = vld [vmem:[%s10638_s15 + $0x50] sm:$0x1] }
  0x7d   : > { %9517 = vmatprep.subr.bf16.mxu0 %v10341_v17 }
  0x7e   : > { %v10919_v36 = vrot.slane %v1975_v15, 4  ;;  %v1933_v62 = vsel %vm10655_vm2, %v10899_v10, %v10881_v52  ;;  %v10354_v52 = vld [vmem:[%s10638_s15 + $0x78] sm:$0xff]   ;;  %v2058_v10 = vshll.u32 %v8367_v60, 16  ;;  %v8371_v15 = vld [vmem:[%s10638_s15 + $0x64] sm:$0xf] }
  0x80   : > { %9518 = vmatpush3.bf16.msra.mxu0 %v10341_v17  ;;  %v1985_v17 = vrot.slane %v1983_v1, 4  ;;  %v2013_v1 = vor.u32 %v2012_v48, %v2009_v47  ;;  %v1947_v47 = vsel %vm10655_vm2, %v10901_v11, %v10883_v53  ;;  %v1957_v48 = vsel %vm10655_vm2, %v10915_v34, %v10904_v13  ;;  %v10357_v11 = vld [vmem:[%s12606_s1 + $0x148] sm:$0xff]  }
  0x81   : > { %9519 = vmatprep.subr.bf16.mxu0 %v10344_v28  ;;  %v8396_v53 = vcombine.low %v1947_v47, %v1957_v48 }
  0x82   : > { %v1989_v39 = vor.u32 %v1988_v20, %v1985_v17  ;;  %v2074_v17 = vshll.u32 %v8369_v3, 16  ;;  %v2028_v20 = vrot.slane %v2026_v2, 5  ;;  %v2014_v23 = vrot.slane %v2013_v1, 4  ;;  %v8372_v1 = vld [vmem:[%s10638_s15 + $0x68] sm:$0x1] }
  0x83   : > { %9500 = vmatmul.mubr.bf16.gmra.mrb[4].mxu0 %v10343_v27  ;;  %v2016_v27 = vshll.u32 %v8362_v18, 16  ;;  %v8376_v2 = vld [vmem:[%s10638_s15 + $0x78] sm:$0xf] }
  0x84   : > { %9520 = vmatpush3.bf16.msra.mxu0 %v10344_v28  ;;  %9503 = vmatprep.mubr.bf16.mxu0 %v10345_v30  ;;  %v2020_v28 = vshrl.u32 %v8362_v18, 16  ;;  %v2034_v30 = vshll.u32 %v8364_v19, 16  ;;  %v10947_v0 = vrot.slane %v1989_v39, 4  ;;  %v2079_v18 = vshrl.u32 %v8370_v5, 16  ;;  %v8377_v5 = vld [vmem:[%s10638_s15 + $0x7c] sm:$0xf] }
  0x85   : > { %9521 = vmatprep.subr.bf16.mxu0 %v10346_v45  ;;  %v8395_v19 = vcombine.low %v1923_v57, %v1933_v62  ;;  %v10967_v39 = vrot.slane %v2047_v16, 4  ;;  %v10969_v40 = vrot.slane %v2074_v17, 5  ;;  %v2130_v16 = vshll.u32 %v8376_v2, 16 }
  0x86   : > { %v2022_v51 = vrot.slane %v2020_v28, 4  ;;  %v2036_v55 = vrot.slane %v2034_v30, 5  ;;  %v2060_v28 = vrot.slane %v2058_v10, 5  ;;  %v10971_v41 = vrot.slane %v2079_v18, 4  ;;  %v8375_v10 = vld [vmem:[%s10638_s15 + $0x74] sm:$0x1] }
  0x87   : > { %v2136_v17 = vshll.u32 %v8377_v5, 16  ;;  %v2140_v18 = vshrl.u32 %v8377_v5, 16  ;;  %v10363_v5 = vld [vmem:[%s12606_s1 + $0x178] sm:$0xff]  }
  0x88   : > { %9522 = vmatpush3.bf16.msra.mxu0 %v10346_v45  ;;  %v1999_v45 = vor.u32 %v1998_v24, %v10909_v21  ;;  %v2037_v7 = vor.u32 %v2036_v55, %v2033_v54  ;;  %v1971_v54 = vsel %vm10655_vm2, %v10917_v35, %v10889_v63  ;;  %v1981_v55 = vsel %vm10655_vm2, %v10919_v36, %v10921_v38  ;;  %v10358_v63 = vld [vmem:[%s12606_s1 + $0x150] sm:$0xff]  }
  0x89   : > { %9523 = vmatprep.subr.bf16.mxu0 %v10348_v50  ;;  %v8397_v13 = vcombine.low %v1971_v54, %v1981_v55  ;;  %v1995_v35 = vsel %vm10655_vm2, %v10947_v0, %v10909_v21  ;;  %v10359_v21 = vld [vmem:[%s12606_s1 + $0x158] sm:$0xff]   ;;  %v8415_v55 = vld [vmem:[%s10638_s15 + $0x14] sm:$0x1] }
  0x8a   : > { %v10954_v4 = vrot.slane %v1999_v45, 4  ;;  %v10960_v25 = vrot.slane %v2037_v7, 4  ;;  %v2092_v45 = vshrl.u32 %v8371_v15, 16 }
  0x8b   : > { %9504 = vmatmul.mubr.bf16.gmra.mrb[8].mxu0 %v10347_v61  ;;  %v8368_v61 = vld [vmem:[%s10638_s15 + $0x58] sm:$0xf] }
  0x8c   : > { %9524 = vmatpush3.bf16.msra.mxu0 %v10348_v50  ;;  %9507 = vmatprep.mubr.bf16.mxu0 %v10349_v8  ;;  %v10932_v50 = vrot.slane %v2016_v27, 5  ;;  %v2050_v8 = vshll.u32 %v8366_v56, 16  ;;  %v2064_v12 = vshll.u32 %v8368_v61, 16  ;;  %v2068_v14 = vshrl.u32 %v8368_v61, 16 }
  0x8d   : > { %9525 = vmatprep.subr.bf16.mxu0 %v10351_v9  ;;  %v2005_v36 = vsel %vm10655_vm2, %v10954_v4, %v10929_v46  ;;  %v2094_v46 = vrot.slane %v2092_v45, 4 }
  0x8e   : > { %v2023_v6 = vor.u32 %v2022_v51, %v10932_v50  ;;  %v10962_v26 = vrot.slane %v2050_v8, 5  ;;  %v10964_v29 = vrot.slane %v2064_v12, 5  ;;  %v2070_v30 = vrot.slane %v2068_v14, 4 }
  0x8f   : > { %v2019_v38 = vsel %vm10655_vm2, %v2014_v23, %v10932_v50  ;;  %v8398_v3 = vcombine.low %v1995_v35, %v2005_v36  ;;  %v2043_v8 = vsel %vm10655_vm2, %v10960_v25, %v10939_v58  ;;  %v2098_v14 = vshll.u32 %v8372_v1, 16  ;;  %v10362_v35 = vld [vmem:[%s12606_s1 + $0x170] sm:$0xff]  }
  0x90   : > { %9526 = vmatpush3.bf16.msra.mxu0 %v10351_v9  ;;  %v2055_v9 = vshrl.u32 %v8367_v60, 16  ;;  %v2024_v24 = vrot.slane %v2023_v6, 4  ;;  %v2071_v59 = vor.u32 %v2070_v30, %v10964_v29  ;;  %v10361_v30 = vld [vmem:[%s12606_s1 + $0x168] sm:$0xff]   ;;  %v2493_v1 = vrot.slane %v8415_v55, 5 }
  0x91   : > { %9527 = vmatprep.subr.bf16.mxu0 %v10352_v32 }
  0x92   : > { %v2057_v27 = vrot.slane %v2055_v9, 4  ;;  %v2029_v60 = vsel %vm10655_vm2, %v2024_v24, %v2028_v20  ;;  %v2072_v62 = vrot.slane %v2071_v59, 4  ;;  %v2122_v24 = vshll.u32 %v8375_v10, 16  ;;  %v11066_v59 = vld [vmem:[%s10638_s15 + $0x1c] sm:$0xf] }
  0x93   : > { %9508 = vmatmul.mubr.bf16.gmra.mrb[12].mxu0 %v10350_v42  ;;  %v2088_v42 = vshll.u32 %v8371_v15, 16  ;;  %v2127_v15 = vshrl.u32 %v8376_v2, 16  ;;  %v11104_v10 = vld [vmem:[%s10638_s15 + $0x38] sm:$0x1] }
  0x94   : > { %9511 = vmatprep.mubr.bf16.mxu0 %v10353_v43  ;;  %9528 = vmatpush3.bf16.msra.mxu0 %v10352_v32  ;;  %v8373_v32 = vld [vmem:[%s10638_s15 + $0x6c] sm:$0xf]  ;;  %v8374_v43 = vld [vmem:[%s10638_s15 + $0x70] sm:$0xf]  ;;  %v2061_v34 = vor.u32 %v2060_v28, %v2057_v27  ;;  %v2077_v20 = vsel %vm10655_vm2, %v2072_v62, %v10969_v40  ;;  %v8378_v27 = vld [vmem:[%s10638_s15 + $0x80] sm:$0x1] }
  0x95   : > { %9529 = vmatprep.subr.bf16.mxu0 %v10355_v44  ;;  %v2103_v49 = vshrl.u32 %v8373_v32, 16  ;;  %v2106_v51 = vshll.u32 %v8373_v32, 16  ;;  %v2112_v56 = vshll.u32 %v8374_v43, 16  ;;  %v2116_v57 = vshrl.u32 %v8374_v43, 16  ;;  %v11080_v62 = vld [vmem:[%s10638_s15 + $0x20] sm:$0x1] }
  0x96   : > { %v2062_v61 = vrot.slane %v2061_v34, 4  ;;  %v11015_v0 = vrot.slane %v2088_v42, 5  ;;  %v2129_v32 = vrot.slane %v2127_v15, 4  ;;  %v11046_v42 = vrot.slane %v2136_v17, 5 }
  0x97   : > { %v2105_v50 = vrot.slane %v2103_v49, 4  ;;  %v2108_v4 = vrot.slane %v2106_v51, 5  ;;  %v11018_v6 = vrot.slane %v2112_v56, 5  ;;  %v2118_v7 = vrot.slane %v2116_v57, 4  ;;  %v8413_v49 = vld [vmem:[%s10638_s15 + $0xc] sm:$0xe] }
  0x98   : > { %9530 = vmatpush3.bf16.msra.mxu0 %v10355_v44  ;;  %v2084_v44 = vrot.slane %v2082_v22, 5  ;;  %v2095_v12 = vor.u32 %v2094_v46, %v11015_v0  ;;  %v2067_v58 = vsel %vm10655_vm2, %v2062_v61, %v10964_v29  ;;  %v2100_v29 = vrot.slane %v2098_v14, 5  ;;  %v10392_v51 = vld [vmem:[%s12606_s1] sm:$0xff]   ;;  %v11054_v56 = vld [vmem:[%s10638_s15 + $0x18] sm:$0xe]  ;;  %v10393_v57 = vld [vmem:[%s12606_s1 + $0x8] sm:$0xff]  }
  0x99   : > { %9551 = vmatprep.subr.bf16.mxu0 %v10356_v37  ;;  %v2109_v22 = vor.u32 %v2108_v4, %v2105_v50  ;;  %v2119_v23 = vor.u32 %v2118_v7, %v11018_v6  ;;  %v8401_v40 = vcombine.low %v2067_v58, %v2077_v20  ;;  %v2142_v43 = vrot.slane %v2140_v18, 4  ;;  %9371 = vmatprep.subr.bf16.mxu1 %v10392_v51  ;;  %v11094_v50 = vld [vmem:[%s10638_s15 + $0x2c] sm:$0x1]  ;;  %v11114_v58 = vld [vmem:[%s10638_s15 + $0x3c] sm:$0xe] }
  0x9a   : > { %v2085_v9 = vor.u32 %v2084_v44, %v10971_v41  ;;  %v2096_v28 = vrot.slane %v2095_v12, 4  ;;  %v8414_v41 = vld [vmem:[%s10638_s15 + $0x10] sm:$0xf]  ;;  %v2124_v47 = vrot.slane %v2122_v24, 5  ;;  %v2146_v48 = vshll.u32 %v8378_v27, 16  ;;  %9372 = vmatpush3.bf16.msra.mxu1 %v10392_v51  ;;  %v10397_v24 = vld [vmem:[%s12606_s1 + $0x18] sm:$0xff]  }
  0x9b   : > { %9512 = vmatmul.mubr.bf16.gmra.mrb[16].mxu0 %v10354_v52  ;;  %v2053_v52 = vsel %vm10655_vm2, %v10967_v39, %v10962_v26  ;;  %v2132_v39 = vrot.slane %v2130_v16, 5  ;;  %v2110_v44 = vrot.slane %v2109_v22, 4  ;;  %v2120_v45 = vrot.slane %v2119_v23, 4  ;;  %9373 = vmatprep.subr.bf16.mxu1 %v10393_v57  ;;  %v11107_v12 = vld [vmem:[%s10638_s15 + $0x40] sm:$0xf] }
  0x9c   : > { %9531 = vmatprep.mubr.bf16.mxu0 %v8395_v19  ;;  %v10360_v19 = vld [vmem:[%s12606_s1 + $0x160] sm:$0xff]   ;;  %v8400_v25 = vcombine.low %v2043_v8, %v2053_v52  ;;  %v2086_v26 = vrot.slane %v2085_v9, 4  ;;  %v2490_v34 = vrot.slane %v8414_v41, 5  ;;  %v8443_v61 = vrot.slane %v8413_v49, 9  ;;  %v11101_v9 = vld [vmem:[%s10638_s15 + $0x30] sm:$0xe] }
  0x9d   : > { %v2133_v54 = vor.u32 %v2132_v39, %v2129_v32  ;;  %v2115_v36 = vsel %vm10655_vm2, %v2110_v44, %v11018_v6  ;;  %v8444_v2 = vrot.slane %v11054_v56, 9  ;;  %v10395_v6 = vld [vmem:[%s12606_s1 + $0x10] sm:$0xff]   ;;  %v2500_v15 = vrot.slane %v11080_v62, 5  ;;  %v11130_v23 = vld [vmem:[%s10638_s15 + $0x44] sm:$0x1]  ;;  %v10401_v62 = vld [vmem:[%s12606_s1 + $0x28] sm:$0xff]  }
  0x9e   : > { %v2492_v52 = vrot.slane %v2490_v34, 4  ;;  %v2491_v14 = vsel %vm10752_vm5, %v8443_v61, %v2490_v34  ;;  %9374 = vmatpush3.bf16.msra.mxu1 %v10393_v57  ;;  %v2507_v27 = vrot.slane %v11094_v50, 5  ;;  %v11148_v32 = vld [vmem:[%s10638_s15 + $0x50] sm:$0x1]  ;;  %v8446_v39 = vrot.slane %v11101_v9, 9  ;;  %v10399_v49 = vld [vmem:[%s12606_s1 + $0x20] sm:$0xff]  }
  0x9f   : > { %v2134_v46 = vrot.slane %v2133_v54, 4  ;;  %9375 = vmatprep.subr.bf16.mxu1 %v10395_v6  ;;  %v2528_v57 = vrot.slane %v11148_v32, 5  ;;  %v8541_v61 = vld [vmem:[%s10638_s15 + $0x18] sm:$0xf]  ;;  %v8550_v32 = vld [vmem:[%s10638_s15 + $0x3c] sm:$0xf] }
  0xa0   : > { %v3189_v50 = vshll.u32 %v8541_v61, 16 }
  0xa1   : > { %v2139_v17 = vsel %vm10655_vm2, %v2134_v46, %v11046_v42  ;;  %v11213_v46 = vld [vmem:[%s10638_s15 + $0x70] sm:$0xf] }
  0xa2   : > { %9376 = vmatpush3.bf16.msra.mxu1 %v10395_v6  ;;  %v10365_v6 = vld [vmem:[%s12606_s1 + $0x188] sm:$0xff]  }
  0xa3   : > { %9532 = vmatmul.mubr.bf16.vlgmr.msra.gmra.mrb[0].mxu0 %v8396_v53  ;;  %v2091_v53 = vsel %vm10655_vm2, %v2086_v26, %v11015_v0  ;;  %v2494_v26 = vsel %vm10752_vm5, %v2492_v52, %v2493_v1  ;;  %9377 = vmatprep.subr.bf16.mxu1 %v10397_v24 }
  0xa4   : > { %9552 = vmatpush3.bf16.msra.mxu0 %v10356_v37  ;;  %9535 = vmatprep.mubr.bf16.mxu0 %v8397_v13  ;;  %v8399_v37 = vcombine.low %v2019_v38, %v2029_v60  ;;  %v2143_v13 = vor.u32 %v2142_v43, %v11046_v42  ;;  %v2125_v38 = vsel %vm10655_vm2, %v2120_v45, %v2124_v47  ;;  %v2148_v60 = vrot.slane %v2146_v48, 5  ;;  %v11157_v47 = vld [vmem:[%s10638_s15 + $0x54] sm:$0xe]  ;;  %v11160_v48 = vld [vmem:[%s10638_s15 + $0x58] sm:$0xf] }
  0xa5   : > { %9553 = vmatprep.subr.bf16.mxu0 %v10357_v11  ;;  %v8403_v7 = vcombine.low %v2115_v36, %v2125_v38  ;;  %v8447_v42 = vrot.slane %v11114_v58, 9  ;;  %v8469_v44 = vcombine.low %v2491_v14, %v2494_v26  ;;  %v2521_v45 = vrot.slane %v11130_v23, 5  ;;  %v11251_v26 = vld [vmem:[%s10638_s15 + $0x7c] sm:$0xf]  ;;  %v8547_v23 = vld [vmem:[%s10638_s15 + $0x30] sm:$0xf] }
  0xa6   : > { %v2144_v8 = vrot.slane %v2143_v13, 4  ;;  %v8449_v13 = vrot.slane %v11157_v47, 9  ;;  %v2532_v34 = vrot.slane %v11160_v48, 5  ;;  %9378 = vmatpush3.bf16.msra.mxu1 %v10397_v24  ;;  %v8545_v24 = vld [vmem:[%s10638_s15 + $0x28] sm:$0xf]  ;;  %v10368_v48 = vld [vmem:[%s12606_s1 + $0x1a0] sm:$0xff]  }
  0xa7   : > { %9379 = vmatprep.subr.bf16.mxu1 %v10399_v49 }
  0xa8   : > { %9554 = vmatpush3.bf16.msra.mxu0 %v10357_v11  ;;  %v2101_v11 = vsel %vm10655_vm2, %v2096_v28, %v2100_v29  ;;  %v2518_v28 = vrot.slane %v11107_v12, 5  ;;  %v11142_v29 = vld [vmem:[%s10638_s15 + $0x48] sm:$0xe] }
  0xa9   : > { %9555 = vmatprep.subr.bf16.mxu0 %v10358_v63  ;;  %v8402_v0 = vcombine.low %v2091_v53, %v2101_v11  ;;  %v8448_v54 = vrot.slane %v11142_v29, 9  ;;  %v11171_v53 = vld [vmem:[%s10638_s15 + $0x64] sm:$0xf]  ;;  %v11175_v11 = vld [vmem:[%s10638_s15 + $0x5c] sm:$0x1] }
  0xaa   : > { %v2520_v51 = vrot.slane %v2518_v28, 4  ;;  %9380 = vmatpush3.bf16.msra.mxu1 %v10399_v49  ;;  %v10367_v29 = vld [vmem:[%s12606_s1 + $0x198] sm:$0xff]  }
  0xab   : > { %9536 = vmatmul.mubr.bf16.gmra.mrb[4].mxu0 %v8398_v3  ;;  %v11084_v3 = vld [vmem:[%s10638_s15 + $0x24] sm:$0xe]  ;;  %9381 = vmatprep.subr.bf16.mxu1 %v10401_v62 }
  0xac   : > { %9556 = vmatpush3.bf16.msra.mxu0 %v10358_v63  ;;  %9539 = vmatprep.mubr.bf16.mxu0 %v8399_v37  ;;  %v11069_v63 = vld [vmem:[%s10638_s15 + $0x28] sm:$0xf]  ;;  %v2497_v37 = vrot.slane %v11066_v59, 5  ;;  %v8445_v20 = vrot.slane %v11084_v3, 9  ;;  %v2535_v3 = vrot.slane %v11175_v11, 5  ;;  %v2522_v12 = vsel %vm10752_vm5, %v2520_v51, %v2521_v45 }
  0xad   : > { %9557 = vmatprep.subr.bf16.mxu0 %v10359_v21  ;;  %v2504_v4 = vrot.slane %v11069_v63, 5  ;;  %v11196_v59 = vld [vmem:[%s10638_s15 + $0x68] sm:$0x1]  ;;  %v3186_v63 = vshrl.u32 %v8541_v61, 16  ;;  %v11276_v61 = vld [vmem:[%s10638_s15 + $0x80] sm:$0x1] }
  0xae   : > { %v2499_v18 = vrot.slane %v2497_v37, 4  ;;  %v2498_v36 = vsel %vm10752_vm5, %v8444_v2, %v2497_v37  ;;  %v8542_v37 = vld [vmem:[%s10638_s15 + $0x1c] sm:$0xf]  ;;  %v2542_v9 = vrot.slane %v11196_v59, 5  ;;  %9382 = vmatpush3.bf16.msra.mxu1 %v10401_v62  ;;  %v10369_v59 = vld [vmem:[%s12606_s1 + $0x1a8] sm:$0xff]  }
  0xaf   : > { %v2506_v22 = vrot.slane %v2504_v4, 4  ;;  %v2505_v56 = vsel %vm10752_vm5, %v8445_v20, %v2504_v4  ;;  %v8544_v4 = vld [vmem:[%s10638_s15 + $0x24] sm:$0xf]  ;;  %v2546_v20 = vrot.slane %v11213_v46, 5  ;;  %v3188_v49 = vrot.slane %v3186_v63, 4 }
  0xb0   : > { %9558 = vmatpush3.bf16.msra.mxu0 %v10359_v21  ;;  %v11087_v21 = vld [vmem:[%s10638_s15 + $0x34] sm:$0xf]  ;;  %v2501_v38 = vsel %vm10752_vm5, %v2499_v18, %v2500_v15  ;;  %v3213_v58 = vshll.u32 %v8544_v4, 16 }
  0xb1   : > { %9559 = vmatprep.subr.bf16.mxu0 %v10360_v19  ;;  %v2511_v16 = vrot.slane %v11087_v21, 5  ;;  %v2508_v1 = vsel %vm10752_vm5, %v2506_v22, %v2507_v27  ;;  %v11245_v22 = vld [vmem:[%s10638_s15 + $0x78] sm:$0xe]  ;;  %v3195_v27 = vshll.u32 %v8542_v37, 16  ;;  %v3199_v21 = vshrl.u32 %v8542_v37, 16 }
  0xb2   : > { %v8471_v14 = vcombine.low %v2505_v56, %v2508_v1  ;;  %v8452_v51 = vrot.slane %v11245_v22, 9  ;;  %v2553_v37 = vrot.slane %v11251_v26, 5  ;;  %v8548_v63 = vld [vmem:[%s10638_s15 + $0x34] sm:$0xf]  ;;  %v10412_v26 = vld [vmem:[%s10638_s15 + $0x48] sm:$0xff]   ;;  %v11430_v22 = vld [vmem:[%s12606_s1 + $0x1c0] sm:$0xff]  }
  0xb3   : > { %9540 = vmatmul.mubr.bf16.gmra.mrb[8].mxu0 %v8400_v25  ;;  %v2149_v25 = vsel %vm10655_vm2, %v2144_v8, %v2148_v60  ;;  %v2513_v41 = vrot.slane %v2511_v16, 4  ;;  %v2539_v60 = vrot.slane %v11171_v53, 5  ;;  %v11237_v15 = vsel %vm10752_vm5, %v8446_v39, %v2511_v16  ;;  %v8543_v39 = vld [vmem:[%s10638_s15 + $0x20] sm:$0x1] }
  0xb4   : > { %9560 = vmatpush3.bf16.msra.mxu0 %v10360_v19  ;;  %9543 = vmatprep.mubr.bf16.mxu0 %v8401_v40  ;;  %v11124_v19 = vld [vmem:[%s12606_s1 + $0x180] sm:$0xff]   ;;  %v2514_v40 = vrot.slane %v11104_v10, 5  ;;  %v8404_v43 = vcombine.low %v2139_v17, %v2149_v25  ;;  %v10402_v10 = vld [vmem:[%s12606_s1 + $0x30] sm:$0xff]   ;;  %v11260_v16 = vsel %vm10752_vm5, %v8447_v42, %v2518_v28  ;;  %v3223_v28 = vshrl.u32 %v8545_v24, 16  ;;  %v10404_v42 = vld [vmem:[%s12606_s1 + $0x38] sm:$0xff]  }
  0xb5   : > { %9561 = vmatprep.subr.bf16.mxu0 %v10361_v30  ;;  %v11227_v52 = vrot.slane %v2539_v60, 4  ;;  %v11240_v17 = vld [vmem:[%s10638_s15 + $0x74] sm:$0x1]  ;;  %9383 = vmatprep.subr.bf16.mxu1 %v10402_v10  ;;  %v11281_v62 = vrot.slane %v3195_v27, 5  ;;  %v3201_v56 = vrot.slane %v3199_v21, 4  ;;  %v8473_v1 = vcombine.low %v11260_v16, %v2522_v12  ;;  %v10408_v12 = vld [vmem:[%s10638_s15 + $0x18] sm:$0xff]  }
  0xb6   : > { %v2515_v25 = vsel %vm10752_vm5, %v2513_v41, %v2514_v40  ;;  %v10366_v41 = vld [vmem:[%s12606_s1 + $0x190] sm:$0xff]   ;;  %v3219_v40 = vshll.u32 %v8545_v24, 16  ;;  %v2549_v45 = vrot.slane %v11240_v17, 5  ;;  %9384 = vmatpush3.bf16.msra.mxu1 %v10402_v10  ;;  %v3225_v24 = vrot.slane %v3223_v28, 4  ;;  %v8549_v21 = vld [vmem:[%s10638_s15 + $0x38] sm:$0x1] }
  0xb7   : > { %9385 = vmatprep.subr.bf16.mxu1 %v10404_v42  ;;  %v3237_v10 = vshll.u32 %v8547_v23, 16  ;;  %v3202_v27 = vor.u32 %v3201_v56, %v11281_v62  ;;  %v11331_v47 = vrot.slane %v2553_v37, 4 }
  0xb8   : > { %9562 = vmatpush3.bf16.msra.mxu0 %v10361_v30  ;;  %v11145_v30 = vld [vmem:[%s10638_s15 + $0x4c] sm:$0xf] }
  0xb9   : > { %9563 = vmatprep.subr.bf16.mxu0 %v10362_v35  ;;  %v2525_v55 = vrot.slane %v11145_v30, 5 }
  0xba   : > { %9386 = vmatpush3.bf16.msra.mxu1 %v10404_v42 }
  0xbb   : > { %9544 = vmatmul.mubr.bf16.gmra.mrb[12].mxu0 %v8402_v0  ;;  %v11206_v2 = vrot.slane %v2525_v55, 4  ;;  %v11210_v0 = vld [vmem:[%s10638_s15 + $0x6c] sm:$0xe] }
  0xbc   : > { %9547 = vmatprep.mubr.bf16.mxu0 %v8403_v7  ;;  %9564 = vmatpush3.bf16.msra.mxu0 %v10362_v35  ;;  %v11180_v35 = vld [vmem:[%s10638_s15 + $0x60] sm:$0xe]  ;;  %v11222_v7 = vrot.slane %v2532_v34, 4  ;;  %v8451_v18 = vrot.slane %v11210_v0, 9 }
  0xbd   : > { %9565 = vmatprep.subr.bf16.mxu0 %v10363_v5  ;;  %v8450_v8 = vrot.slane %v11180_v35, 9  ;;  %v2529_v16 = vsel %vm10752_vm5, %v11206_v2, %v2528_v57  ;;  %v8559_v0 = vld [vmem:[%s10638_s15 + $0x60] sm:$0xf] }
  0xc0   : > { %9566 = vmatpush3.bf16.msra.mxu0 %v10363_v5  ;;  %v8470_v5 = vcombine.low %v2498_v36, %v2501_v38  ;;  %v3191_v36 = vrot.slane %v3189_v50, 5  ;;  %v8472_v38 = vcombine.low %v11237_v15, %v2515_v25  ;;  %v3234_v15 = vshrl.u32 %v8547_v23, 16 }
  0xc1   : > { %9587 = vmatprep.subr.bf16.mxu0 %v11124_v19  ;;  %v2556_v25 = vrot.slane %v11276_v61, 5 }
  0xc2   : > { %v3192_v50 = vor.u32 %v3191_v36, %v3188_v49  ;;  %v2536_v49 = vsel %vm10752_vm5, %v11222_v7, %v2535_v3  ;;  %v3239_v3 = vrot.slane %v3237_v10, 5  ;;  %v3253_v7 = vshll.u32 %v8549_v21, 16  ;;  %v10370_v21 = vld [vmem:[%s12606_s1 + $0x1b0] sm:$0xff]  }
  0xc3   : > { %9548 = vmatmul.mubr.bf16.gmra.mrb[16].mxu0 %v8404_v43  ;;  %v3210_v43 = vshrl.u32 %v8544_v4, 16  ;;  %v3205_v4 = vshll.u32 %v8543_v39, 16  ;;  %v2533_v39 = vsel %vm10752_vm5, %v8449_v13, %v2532_v34  ;;  %v3236_v13 = vrot.slane %v3234_v15, 4  ;;  %v10409_v15 = vld [vmem:[%s10638_s15 + $0x24] sm:$0xff]  }
  0xc4   : > { %9567 = vmatprep.mubr.bf16.mxu0 %v8469_v44  ;;  %v10406_v44 = vld [vmem:[%s10638_s15] sm:$0xff]   ;;  %v11333_v57 = vrot.slane %v3192_v50, 4  ;;  %v2543_v50 = vsel %vm10752_vm5, %v11227_v52, %v2542_v9 }
  0xc5   : > { %9387 = vmatprep.mubr.bf16.mxu1 %v10406_v44  ;;  %v3212_v30 = vrot.slane %v3210_v43, 4  ;;  %v3243_v43 = vshll.u32 %v8548_v63, 16  ;;  %v3247_v44 = vshrl.u32 %v8548_v63, 16  ;;  %v11335_v11 = vrot.slane %v3205_v4, 5  ;;  %v11360_v4 = vld [vmem:[%s10638_s15 + $0x44] sm:$0x1] }
  0xc6   : > { %v11352_v63 = vsel %vm10752_vm5, %v8450_v8, %v2539_v60  ;;  %v11367_v60 = vrot.slane %v3253_v7, 5 }
  0xc7   : > { %v11341_v28 = vrot.slane %v3243_v43, 5  ;;  %v3249_v42 = vrot.slane %v3247_v44, 4  ;;  %v8556_v43 = vld [vmem:[%s10638_s15 + $0x54] sm:$0xf]  ;;  %v8476_v44 = vcombine.low %v11352_v63, %v2543_v50 }
  0xc9   : > { %v3250_v8 = vor.u32 %v3249_v42, %v11341_v28  ;;  %v3333_v42 = vshll.u32 %v8559_v0, 16 }
  0xcb   : > { %9568 = vmatmul.mubr.bf16.vlgmr.msra.gmra.mrb[0].mxu0 %v8470_v5  ;;  %v11294_v5 = vrot.slane %v2546_v20, 4 }
  0xcc   : > { %9588 = vmatpush3.bf16.msra.mxu0 %v11124_v19  ;;  %9571 = vmatprep.mubr.bf16.mxu0 %v8471_v14  ;;  %v11290_v19 = vsel %vm10752_vm5, %v8448_v54, %v2525_v55  ;;  %v8546_v14 = vld [vmem:[%s10638_s15 + $0x2c] sm:$0x1]  ;;  %v3215_v54 = vrot.slane %v3213_v58, 5  ;;  %v11302_v55 = vrot.slane %v3219_v40, 5  ;;  %v8551_v58 = vld [vmem:[%s10638_s15 + $0x40] sm:$0xf] }
  0xcd   : > { %9589 = vmatprep.subr.bf16.mxu0 %v10365_v6  ;;  %v3229_v36 = vshll.u32 %v8546_v14, 16  ;;  %v11339_v40 = vrot.slane %v3202_v27, 4  ;;  %v8474_v56 = vcombine.low %v11290_v19, %v2529_v16  ;;  %v8553_v19 = vld [vmem:[%s10638_s15 + $0x48] sm:$0xf]  ;;  %v3240_v14 = vor.u32 %v3239_v3, %v3236_v13  ;;  %v10410_v27 = vld [vmem:[%s10638_s15 + $0x30] sm:$0xff]  }
  0xce   : > { %v3216_v34 = vor.u32 %v3215_v54, %v3212_v30  ;;  %v3226_v2 = vor.u32 %v3225_v24, %v11302_v55  ;;  %v3267_v9 = vshll.u32 %v8551_v58, 16  ;;  %v3271_v30 = vshrl.u32 %v8551_v58, 16  ;;  %v8554_v24 = vld [vmem:[%s10638_s15 + $0x4c] sm:$0xf] }
  0xcf   : > { %v11343_v23 = vrot.slane %v3229_v36, 5  ;;  %v3277_v54 = vshll.u32 %v11360_v4, 16  ;;  %v3282_v10 = vshrl.u32 %v8553_v19, 16  ;;  %v2550_v16 = vsel %vm10752_vm5, %v11294_v5, %v2549_v45  ;;  %v10371_v45 = vld [vmem:[%s12606_s1 + $0x1b8] sm:$0xff]   ;;  %v8555_v5 = vld [vmem:[%s10638_s15 + $0x50] sm:$0x1] }
  0xd0   : > { %9590 = vmatpush3.bf16.msra.mxu0 %v10365_v6  ;;  %v10407_v6 = vld [vmem:[%s10638_s15 + $0xc] sm:$0xff]   ;;  %v11363_v53 = vrot.slane %v3216_v34, 4  ;;  %v11365_v35 = vrot.slane %v3226_v2, 4  ;;  %v11400_v36 = vrot.slane %v3250_v8, 4  ;;  %v3273_v46 = vrot.slane %v3271_v30, 4 }
  0xd1   : > { %9591 = vmatprep.subr.bf16.mxu0 %v10366_v41  ;;  %9388 = vmatmul.mubr.bf16.vlgmr.msra.gmra.mrb[0].mxu1 %v10407_v6  ;;  %v2547_v6 = vsel %vm10752_vm5, %v8451_v18, %v2546_v20  ;;  %v3285_v18 = vshll.u32 %v8553_v19, 16  ;;  %v3291_v17 = vshll.u32 %v8554_v24, 16  ;;  %v3295_v20 = vshrl.u32 %v8554_v24, 16  ;;  %v8561_v30 = vld [vmem:[%s10638_s15 + $0x68] sm:$0x1] }
  0xd2   : > { %9391 = vmatprep.mubr.bf16.mxu1 %v10408_v12  ;;  %v11405_v12 = vrot.slane %v3282_v10, 4  ;;  %v3306_v13 = vshrl.u32 %v8556_v43, 16  ;;  %v3309_v34 = vshll.u32 %v8556_v43, 16  ;;  %v8477_v7 = vcombine.low %v2547_v6, %v2550_v16  ;;  %v8562_v24 = vld [vmem:[%s10638_s15 + $0x6c] sm:$0xf] }
  0xd3   : > { %9572 = vmatmul.mubr.bf16.gmra.mrb[4].mxu0 %v8472_v38  ;;  %v3258_v38 = vshrl.u32 %v8550_v32, 16  ;;  %v3330_v58 = vshrl.u32 %v8559_v0, 16  ;;  %v3287_v63 = vrot.slane %v3285_v18, 5  ;;  %v11424_v50 = vrot.slane %v3291_v17, 5  ;;  %v10372_v0 = vld [vmem:[%s10638_s15 + $0x18] sm:$0xff]  }
  0xd4   : > { %9592 = vmatpush3.bf16.msra.mxu0 %v10366_v41  ;;  %9575 = vmatprep.mubr.bf16.mxu0 %v8473_v1  ;;  %v3261_v41 = vshll.u32 %v8550_v32, 16  ;;  %v8475_v1 = vcombine.low %v2533_v39, %v2536_v49  ;;  %v8557_v39 = vld [vmem:[%s10638_s15 + $0x58] sm:$0xf]  ;;  %v11398_v49 = vrot.slane %v3240_v14, 4  ;;  %v11402_v32 = vrot.slane %v3267_v9, 5 }
  0xd5   : > { %9593 = vmatprep.subr.bf16.mxu0 %v10367_v29  ;;  %v11373_v52 = vrot.slane %v3258_v38, 4  ;;  %v3315_v2 = vshll.u32 %v8557_v39, 16  ;;  %v3319_v3 = vshrl.u32 %v8557_v39, 16  ;;  %v2554_v38 = vsel %vm10752_vm5, %v8452_v51, %v2553_v37  ;;  %v8558_v51 = vld [vmem:[%s10638_s15 + $0x5c] sm:$0x1] }
  0xd6   : > { %v3297_v19 = vrot.slane %v3295_v20, 4  ;;  %v3301_v61 = vshll.u32 %v8555_v5, 16  ;;  %v3308_v37 = vrot.slane %v3306_v13, 4  ;;  %v3274_v8 = vor.u32 %v3273_v46, %v11402_v32  ;;  %v8563_v39 = vld [vmem:[%s10638_s15 + $0x70] sm:$0xf]  ;;  %v10417_v46 = vld [vmem:[%s12608_s3 + $0x8] sm:$0xff]  }
  0xd7   : > { %v3321_v9 = vrot.slane %v3319_v3, 4  ;;  %v3335_v10 = vrot.slane %v3333_v42, 5  ;;  %v3325_v16 = vshll.u32 %v8558_v51, 16  ;;  %v3349_v20 = vshll.u32 %v8561_v30, 16  ;;  %v10413_v13 = vld [vmem:[%s10638_s15 + $0x54] sm:$0xff]   ;;  %v10414_v3 = vld [vmem:[%s10638_s15 + $0x60] sm:$0xff]  }
  0xd8   : > { %9594 = vmatpush3.bf16.msra.mxu0 %v10367_v29  ;;  %v11376_v29 = vrot.slane %v3261_v41, 5  ;;  %v2557_v41 = vsel %vm10752_vm5, %v11331_v47, %v2556_v25  ;;  %v3311_v25 = vrot.slane %v3309_v34, 5  ;;  %v11433_v47 = vrot.slane %v3315_v2, 5 }
  0xd9   : > { %9595 = vmatprep.subr.bf16.mxu0 %v10368_v48  ;;  %9392 = vmatmul.mubr.bf16.gmra.mrb[4].mxu1 %v10409_v15  ;;  %v3332_v15 = vrot.slane %v3330_v58, 4  ;;  %v8478_v43 = vcombine.low %v2554_v38, %v2557_v41  ;;  %v3298_v6 = vor.u32 %v3297_v19, %v11424_v50  ;;  %v11458_v17 = vrot.slane %v3274_v8, 4  ;;  %v10375_v8 = vld [vmem:[%s12606_s1 + $0x1c8] sm:$0xff]  }
  0xda   : > { %9395 = vmatprep.mubr.bf16.mxu1 %v10410_v27  ;;  %v3312_v4 = vor.u32 %v3311_v25, %v3308_v37  ;;  %v3357_v5 = vshll.u32 %v8562_v24, 16  ;;  %v3363_v2 = vshll.u32 %v8563_v39, 16  ;;  %v11471_v42 = vrot.slane %v3325_v16, 5  ;;  %v10382_v16 = vld [vmem:[%s12606_s1 + $0x1e0] sm:$0xff]  }
  0xdb   : > { %9576 = vmatmul.mubr.bf16.gmra.mrb[8].mxu0 %v8474_v56  ;;  %v11469_v58 = vrot.slane %v3298_v6, 4  ;;  %v3367_v38 = vshrl.u32 %v8563_v39, 16  ;;  %v10380_v6 = vld [vmem:[%s12606_s1 + $0x1d8] sm:$0xff]   ;;  %v10383_v39 = vld [vmem:[%s10638_s15 + $0x60] sm:$0xff]  }
  0xdc   : > { %9596 = vmatpush3.bf16.msra.mxu0 %v10368_v48  ;;  %9579 = vmatprep.mubr.bf16.mxu0 %v8475_v1  ;;  %v8560_v48 = vld [vmem:[%s10638_s15 + $0x64] sm:$0xf]  ;;  %v10411_v1 = vld [vmem:[%s10638_s15 + $0x3c] sm:$0xff]   ;;  %v11473_v41 = vrot.slane %v3312_v4, 4  ;;  %v11493_v25 = vrot.slane %v3357_v5, 5  ;;  %v10384_v4 = vld [vmem:[%s10638_s15 + $0x6c] sm:$0xff]  }
  0xdd   : > { %9597 = vmatprep.subr.bf16.mxu0 %v10369_v59  ;;  %v3339_v56 = vshll.u32 %v8560_v48, 16  ;;  %v3343_v14 = vshrl.u32 %v8560_v48, 16  ;;  %v3354_v48 = vshrl.u32 %v8562_v24, 16  ;;  %v10388_v5 = vld [vmem:[%s10638_s15 + $0x84] sm:$0xff]  }
  0xdf   : > { %v11440_v27 = vrot.slane %v3339_v56, 5  ;;  %v11482_v19 = vrot.slane %v3354_v48, 4  ;;  %v10390_v48 = vld [vmem:[%s12606_s1 + $0x200] sm:$0xff]  }
  0xe0   : > { %9598 = vmatpush3.bf16.msra.mxu0 %v10369_v59  ;;  %v3264_v59 = vor.u32 %v11376_v29, %v11373_v52  ;;  %v10416_v52 = vld [vmem:[%s12608_s3] sm:$0xff]   ;;  %v11447_v29 = vrot.slane %v3277_v54, 5  ;;  %v3322_v54 = vor.u32 %v3321_v9, %v11433_v47  ;;  %v11500_v9 = vrot.slane %v3367_v38, 4 }
  0xe1   : > { %9599 = vmatprep.subr.bf16.mxu0 %v10370_v21  ;;  %9396 = vmatmul.mubr.bf16.gmra.mrb[8].mxu1 %v10411_v1  ;;  %v11478_v1 = vld [vmem:[%s10638_s15 + $0x78] sm:$0xf]  ;;  %v3318_v38 = vsel %vm10655_vm2, %v11473_v41, %v11433_v47  ;;  %v3360_v47 = vor.u32 %v11493_v25, %v11482_v19 }
  0xe2   : > { %9399 = vmatprep.mubr.bf16.mxu1 %v10412_v26  ;;  %v11456_v18 = vrot.slane %v3264_v59, 4  ;;  %9695 = vmatprep.subr.bf16.mxu1 %v10416_v52  ;;  %v11475_v56 = vrot.slane %v3322_v54, 4  ;;  %v10373_v26 = vld [vmem:[%s10638_s15 + $0x24] sm:$0xff]   ;;  %v11495_v59 = vrot.slane %v3363_v2, 5  ;;  %v3378_v30 = vshrl.u32 %v11478_v1, 16  ;;  %v10387_v54 = vld [vmem:[%s10638_s15 + $0x78] sm:$0xff]  }
  0xe3   : > { %9580 = vmatmul.mubr.bf16.gmra.mrb[12].mxu0 %v8476_v44  ;;  %v3345_v44 = vrot.slane %v3343_v14, 4  ;;  %9696 = vmatpush3.bf16.msra.mxu1 %v10416_v52  ;;  %v11485_v14 = vld [vmem:[%s10638_s15 + $0x7c] sm:$0xf]  ;;  %v3222_v2 = vsel %vm10655_vm2, %v11363_v53, %v11302_v55  ;;  %v10391_v55 = vld [vmem:[%s12606_s1 + $0x208] sm:$0xff]   ;;  %v3361_v25 = vrot.slane %v3360_v47, 4 }
  0xe4   : > { %9583 = vmatprep.mubr.bf16.mxu0 %v8477_v7  ;;  %9600 = vmatpush3.bf16.msra.mxu0 %v10370_v21  ;;  %v3288_v21 = vor.u32 %v3287_v63, %v11405_v12  ;;  %v11462_v12 = vrot.slane %v3301_v61, 5  ;;  %v11480_v63 = vrot.slane %v3349_v20, 5  ;;  %v10376_v61 = vld [vmem:[%s10638_s15 + $0x30] sm:$0xff]   ;;  %v3387_v24 = vshll.u32 %v11485_v14, 16  ;;  %v10377_v52 = vld [vmem:[%s10638_s15 + $0x3c] sm:$0xff]  }
  0xe5   : > { %9601 = vmatprep.subr.bf16.mxu0 %v10371_v45  ;;  %v3346_v34 = vor.u32 %v3345_v44, %v11440_v27  ;;  %9697 = vmatprep.subr.bf16.mxu1 %v10417_v46  ;;  %v10378_v44 = vld [vmem:[%s12606_s1 + $0x1d0] sm:$0xff]   ;;  %v10389_v20 = vld [vmem:[%s12606_s1 + $0x1f8] sm:$0xff]   ;;  %v3370_v41 = vor.u32 %v11500_v9, %v11495_v59 }
  0xe6   : > { %v11467_v7 = vrot.slane %v3288_v21, 4  ;;  %v10379_v21 = vld [vmem:[%s10638_s15 + $0x48] sm:$0xff]  }
  0xe7   : > { %v11491_v37 = vrot.slane %v3346_v34, 4  ;;  %9698 = vmatpush3.bf16.msra.mxu1 %v10417_v46  ;;  %v10385_v46 = vld [vmem:[%s12606_s1 + $0x1e8] sm:$0xff]   ;;  %v3371_v9 = vrot.slane %v3370_v41, 4 }
  0xe8   : > { %9602 = vmatpush3.bf16.msra.mxu0 %v10371_v45  ;;  %v3336_v45 = vor.u32 %v3335_v10, %v3332_v15  ;;  %v3381_v15 = vshll.u32 %v11478_v1, 16  ;;  %v3391_v10 = vshrl.u32 %v11485_v14, 16  ;;  %v8567_v1 = vld [vmem:[%s10638_s15 + $0x80] sm:$0x1] }
  0xe9   : > { %9623 = vmatprep.subr.bf16.mxu0 %v11430_v22  ;;  %9400 = vmatmul.mubr.bf16.gmra.mrb[12].mxu1 %v10413_v13  ;;  %v3198_v13 = vsel %vm10655_vm2, %v11333_v57, %v11281_v62  ;;  %v3232_v62 = vsel %vm10655_vm2, %v11365_v35, %v11343_v23  ;;  %v3246_v57 = vsel %vm10655_vm2, %v11398_v49, %v11341_v28  ;;  %v10394_v23 = vld [vmem:[%s12606_s1 + $0x210] sm:$0xff]  }
  0xea   : > { %v11489_v51 = vrot.slane %v3336_v45, 4  ;;  %9403 = vmatprep.mubr.bf16.mxu1 %v10414_v3  ;;  %v3208_v45 = vsel %vm10655_vm2, %v11339_v40, %v11335_v11  ;;  %v3256_v11 = vsel %vm10655_vm2, %v11400_v36, %v11367_v60  ;;  %v8588_v40 = vcombine.low %v3222_v2, %v3232_v62  ;;  %v8564_v36 = vld [vmem:[%s10638_s15 + $0x74] sm:$0x1]  ;;  %v8605_v2 = vld [vmem:[%s10638_s15 + $0x18] sm:$0xe] }
  0xeb   : > { %9584 = vmatmul.mubr.bf16.gmra.mrb[16].mxu0 %v8478_v43  ;;  %v10415_v43 = vld [vmem:[%s10638_s15 + $0x6c] sm:$0xff]   ;;  %v8587_v34 = vcombine.low %v3198_v13, %v3208_v45  ;;  %v8589_v53 = vcombine.low %v3246_v57, %v3256_v11  ;;  %v3270_v28 = vsel %vm10655_vm2, %v11456_v18, %v11402_v32  ;;  %v3280_v35 = vsel %vm10655_vm2, %v11458_v17, %v11447_v29  ;;  %v10396_v29 = vld [vmem:[%s12606_s1 + $0x218] sm:$0xff]   ;;  %v8568_v17 = vld [vmem:[%s10638_s15 + $0x84] sm:$0xf] }
  0xec   : > { %9603 = vmatprep.mubr.bf16.mxu0 %v10372_v0  ;;  %v10386_v0 = vld [vmem:[%s12606_s1 + $0x1f0] sm:$0xff]   ;;  %v3294_v60 = vsel %vm10655_vm2, %v11467_v7, %v11424_v50  ;;  %v3304_v49 = vsel %vm10655_vm2, %v11469_v58, %v11462_v12  ;;  %v8590_v32 = vcombine.low %v3270_v28, %v3280_v35  ;;  %v3380_v3 = vrot.slane %v3378_v30, 4  ;;  %v8569_v58 = vld [vmem:[%s10638_s15 + $0x88] sm:$0xf]  ;;  %v8607_v62 = vld [vmem:[%s10638_s15 + $0x20] sm:$0x1] }
  0xed   : > { %v8591_v18 = vcombine.low %v3294_v60, %v3304_v49  ;;  %v3383_v50 = vrot.slane %v3381_v15, 5  ;;  %v3389_v12 = vrot.slane %v3387_v24, 5  ;;  %v3393_v7 = vrot.slane %v3391_v10, 4  ;;  %v10403_v13 = vld [vmem:[%s12606_s1 + $0x230] sm:$0xff]   ;;  %v8609_v49 = vld [vmem:[%s10638_s15 + $0x28] sm:$0xf] }
  0xee   : > { %v3342_v14 = vsel %vm10655_vm2, %v11489_v51, %v11440_v27  ;;  %v3411_v30 = vshll.u32 %v8569_v58, 16  ;;  %v3415_v15 = vshrl.u32 %v8569_v58, 16  ;;  %v10398_v27 = vld [vmem:[%s12606_s1 + $0x220] sm:$0xff]   ;;  %v8635_v28 = vrot.slane %v8605_v2, 9  ;;  %v8611_v58 = vld [vmem:[%s10638_s15 + $0x30] sm:$0xe] }
  0xef   : > { %v3384_v51 = vor.u32 %v3383_v50, %v3380_v3  ;;  %v3394_v24 = vor.u32 %v3393_v7, %v3389_v12  ;;  %v3768_v60 = vrot.slane %v8607_v62, 5  ;;  %v8608_v50 = vld [vmem:[%s10638_s15 + $0x24] sm:$0xe]  ;;  %v8637_v47 = vrot.slane %v8611_v58, 9  ;;  %v8625_v2 = vld [vmem:[%s10638_s15 + $0x68] sm:$0x1] }
  0xf1   : > { %9404 = vmatmul.mubr.bf16.gmra.mrb[16].mxu1 %v10415_v43 }
  0xf3   : > { %9604 = vmatmul.mubr.bf16.vlgmr.msra.gmra.mrb[0].mxu0 %v10373_v26  ;;  %v3328_v26 = vsel %vm10655_vm2, %v11475_v56, %v11471_v42  ;;  %v3402_v42 = vshrl.u32 %v8568_v17, 16  ;;  %v3405_v56 = vshll.u32 %v8568_v17, 16 }
  0xf4   : > { %9624 = vmatpush3.bf16.msra.mxu0 %v11430_v22  ;;  %9607 = vmatprep.mubr.bf16.mxu0 %v10376_v61  ;;  %v10381_v22 = vld [vmem:[%s10638_s15 + $0x54] sm:$0xff]   ;;  %v3373_v61 = vshll.u32 %v8564_v36, 16 }
  0xf5   : > { %9625 = vmatprep.subr.bf16.mxu0 %v10375_v8  ;;  %v3404_v43 = vrot.slane %v3402_v42, 4  ;;  %v8612_v36 = vld [vmem:[%s10638_s15 + $0x34] sm:$0xf] }
  0xf6   : > { %v3375_v10 = vrot.slane %v3373_v61, 5  ;;  %v3779_v7 = vrot.slane %v8612_v36, 5 }
  0xf8   : > { %9626 = vmatpush3.bf16.msra.mxu0 %v10375_v8  ;;  %v3352_v8 = vsel %vm10655_vm2, %v11491_v37, %v11480_v63  ;;  %v3397_v63 = vshll.u32 %v8567_v1, 16  ;;  %v8592_v37 = vcombine.low %v3318_v38, %v3328_v26  ;;  %v8613_v38 = vld [vmem:[%s10638_s15 + $0x38] sm:$0x1]  ;;  %v8636_v1 = vrot.slane %v8608_v50, 9 }
  0xf9   : > { %9627 = vmatprep.subr.bf16.mxu0 %v10378_v44  ;;  %v8593_v19 = vcombine.low %v3342_v14, %v3352_v8  ;;  %v3781_v41 = vrot.slane %v3779_v7, 4  ;;  %v3782_v42 = vrot.slane %v8613_v38, 5 }
  0xfb   : > { %9608 = vmatmul.mubr.bf16.gmra.mrb[4].mxu0 %v10377_v52  ;;  %v3413_v52 = vrot.slane %v3411_v30, 5  ;;  %v8618_v30 = vld [vmem:[%s10638_s15 + $0x4c] sm:$0xf] }
  0xfc   : > { %9628 = vmatpush3.bf16.msra.mxu0 %v10378_v44  ;;  %9611 = vmatprep.mubr.bf16.mxu0 %v10379_v21  ;;  %v3407_v44 = vrot.slane %v3405_v56, 5  ;;  %v3417_v21 = vrot.slane %v3415_v15, 4  ;;  %v8615_v56 = vld [vmem:[%s10638_s15 + $0x40] sm:$0xf] }
  0xfd   : > { %9629 = vmatprep.subr.bf16.mxu0 %v10380_v6 }
 0x100   : > { %9630 = vmatpush3.bf16.msra.mxu0 %v10380_v6  ;;  %v10400_v6 = vld [vmem:[%s12606_s1 + $0x228] sm:$0xff]  }
 0x101   : > { %9631 = vmatprep.subr.bf16.mxu0 %v10382_v16 }
 0x103   : > { %9612 = vmatmul.mubr.bf16.gmra.mrb[8].mxu0 %v10381_v22  ;;  %v3395_v22 = vrot.slane %v3394_v24, 4  ;;  %v3780_v24 = vsel %vm10752_vm5, %v8637_v47, %v3779_v7  ;;  %v8631_v7 = vld [vmem:[%s10638_s15 + $0x80] sm:$0x1] }
 0x104   : > { %9632 = vmatpush3.bf16.msra.mxu0 %v10382_v16  ;;  %9615 = vmatprep.mubr.bf16.mxu0 %v10383_v39  ;;  %v3385_v16 = vrot.slane %v3384_v51, 4  ;;  %v3399_v39 = vrot.slane %v3397_v63, 5  ;;  %v3786_v51 = vrot.slane %v8615_v56, 5  ;;  %v3783_v63 = vsel %vm10752_vm5, %v3781_v41, %v3782_v42  ;;  %v8633_v41 = vld [vmem:[%s10638_s15 + $0x88] sm:$0xf] }
 0x105   : > { %9633 = vmatprep.subr.bf16.mxu0 %v10385_v46  ;;  %v3824_v47 = vrot.slane %v8631_v7, 5 }
 0x106   : > { %v3390_v45 = vsel %vm10655_vm2, %v3385_v16, %v3389_v12  ;;  %v8610_v12 = vld [vmem:[%s10638_s15 + $0x2c] sm:$0x1] }
 0x107   : > { %v3775_v8 = vrot.slane %v8610_v12, 5  ;;  %v8629_v12 = vld [vmem:[%s10638_s15 + $0x78] sm:$0xe] }
 0x108   : > { %9634 = vmatpush3.bf16.msra.mxu0 %v10385_v46  ;;  %v8570_v46 = vld [vmem:[%s10638_s15 + $0x8c] sm:$0x1] }
 0x109   : > { %9635 = vmatprep.subr.bf16.mxu0 %v10386_v0 }
 0x10b   : > { %9616 = vmatmul.mubr.bf16.gmra.mrb[12].mxu0 %v10384_v4  ;;  %v3366_v4 = vsel %vm10655_vm2, %v3361_v25, %v11495_v59  ;;  %v3400_v59 = vsel %vm10655_vm2, %v3395_v22, %v3399_v39  ;;  %v3793_v25 = vrot.slane %v8618_v30, 5  ;;  %v3828_v30 = vrot.slane %v8633_v41, 5 }
 0x10c   : > { %9619 = vmatprep.mubr.bf16.mxu0 %v10387_v54  ;;  %9636 = vmatpush3.bf16.msra.mxu0 %v10386_v0  ;;  %v8606_v0 = vld [vmem:[%s10638_s15 + $0x1c] sm:$0xf]  ;;  %v3376_v54 = vsel %vm10655_vm2, %v3371_v9, %v3375_v10  ;;  %v8595_v11 = vcombine.low %v3390_v45, %v3400_v59  ;;  %v8617_v9 = vld [vmem:[%s10638_s15 + $0x48] sm:$0xe]  ;;  %v8619_v10 = vld [vmem:[%s10638_s15 + $0x50] sm:$0x1] }
 0x10d   : > { %9637 = vmatprep.subr.bf16.mxu0 %v10389_v20  ;;  %v8594_v57 = vcombine.low %v3366_v4, %v3376_v54  ;;  %v8639_v16 = vrot.slane %v8617_v9, 9  ;;  %v3795_v22 = vrot.slane %v3793_v25, 4  ;;  %v3796_v39 = vrot.slane %v8619_v10, 5  ;;  %v8622_v45 = vld [vmem:[%s10638_s15 + $0x5c] sm:$0x1] }
 0x110   : > { %9638 = vmatpush3.bf16.msra.mxu0 %v10389_v20  ;;  %v3408_v20 = vor.u32 %v3407_v44, %v3404_v43  ;;  %v8663_v44 = vcombine.low %v3780_v24, %v3783_v63  ;;  %v8634_v24 = vld [vmem:[%s10638_s15 + $0x8c] sm:$0x1] }
 0x111   : > { %9659 = vmatprep.subr.bf16.mxu0 %v10390_v48  ;;  %v3831_v9 = vrot.slane %v8634_v24, 5 }
 0x113   : > { %9620 = vmatmul.mubr.bf16.gmra.mrb[16].mxu0 %v10388_v5  ;;  %v3421_v5 = vshll.u32 %v8570_v46, 16  ;;  %v8621_v46 = vld [vmem:[%s10638_s15 + $0x58] sm:$0xf] }
 0x114   : > { %9639 = vmatprep.mubr.bf16.mxu0 %v8587_v34  ;;  %v3765_v34 = vrot.slane %v8606_v0, 5  ;;  %v8624_v0 = vld [vmem:[%s10638_s15 + $0x64] sm:$0xf] }
 0x115   : > { %v3807_v59 = vrot.slane %v8624_v0, 5  ;;  %v10420_v0 = vld [vmem:[%s12608_s3 + $0x20] sm:$0xff]  }
 0x116   : > { %v3767_v35 = vrot.slane %v3765_v34, 4  ;;  %v3766_v17 = vsel %vm10752_vm5, %v8635_v28, %v3765_v34  ;;  %v8623_v34 = vld [vmem:[%s10638_s15 + $0x60] sm:$0xe]  ;;  %v3810_v28 = vrot.slane %v8625_v2, 5 }
 0x118   : > { %v3769_v3 = vsel %vm10752_vm5, %v3767_v35, %v3768_v60  ;;  %v8627_v35 = vld [vmem:[%s10638_s15 + $0x70] sm:$0xf]  ;;  %v8630_v60 = vld [vmem:[%s10638_s15 + $0x7c] sm:$0xf] }
 0x119   : > { %v8661_v61 = vcombine.low %v3766_v17, %v3769_v3  ;;  %v8626_v17 = vld [vmem:[%s10638_s15 + $0x6c] sm:$0xe]  ;;  %v8628_v3 = vld [vmem:[%s10638_s15 + $0x74] sm:$0x1]  ;;  %v3821_v50 = vrot.slane %v8630_v60, 5 }
 0x11b   : > { %9640 = vmatmul.mubr.bf16.vlgmr.msra.gmra.mrb[0].mxu0 %v8588_v40  ;;  %v3409_v40 = vrot.slane %v3408_v20, 4  ;;  %v3800_v20 = vrot.slane %v8621_v46, 5 }
 0x11c   : > { %9660 = vmatpush3.bf16.msra.mxu0 %v10390_v48  ;;  %9643 = vmatprep.mubr.bf16.mxu0 %v8589_v53  ;;  %v3418_v48 = vor.u32 %v3417_v21, %v3413_v52  ;;  %v3423_v53 = vrot.slane %v3421_v5, 5  ;;  %v3788_v21 = vrot.slane %v3786_v51, 4  ;;  %v3797_v5 = vsel %vm10752_vm5, %v3795_v22, %v3796_v39 }
 0x11d   : > { %9661 = vmatprep.subr.bf16.mxu0 %v10391_v55 }
 0x120   : > { %9662 = vmatpush3.bf16.msra.mxu0 %v10391_v55  ;;  %v3419_v55 = vrot.slane %v3418_v48, 4  ;;  %v3794_v48 = vsel %vm10752_vm5, %v8639_v16, %v3793_v25  ;;  %v3830_v25 = vrot.slane %v3828_v30, 4 }
 0x121   : > { %9663 = vmatprep.subr.bf16.mxu0 %v10394_v23 }
 0x123   : > { %9644 = vmatmul.mubr.bf16.gmra.mrb[4].mxu0 %v8590_v32  ;;  %v3414_v32 = vsel %vm10655_vm2, %v3409_v40, %v3413_v52  ;;  %v3802_v40 = vrot.slane %v3800_v20, 4 }
 0x124   : > { %9664 = vmatpush3.bf16.msra.mxu0 %v10394_v23  ;;  %9647 = vmatprep.mubr.bf16.mxu0 %v8591_v18  ;;  %v10405_v23 = vld [vmem:[%s12606_s1 + $0x238] sm:$0xff]   ;;  %v3424_v18 = vsel %vm10655_vm2, %v3419_v55, %v3423_v53  ;;  %v3803_v55 = vrot.slane %v8622_v45, 5  ;;  %v8641_v53 = vrot.slane %v8623_v34, 9 }
 0x125   : > { %9665 = vmatprep.subr.bf16.mxu0 %v10396_v29  ;;  %v8596_v26 = vcombine.low %v3414_v32, %v3424_v18  ;;  %v3814_v32 = vrot.slane %v8627_v35, 5 }
 0x126   : > { %v3804_v36 = vsel %vm10752_vm5, %v3802_v40, %v3803_v55  ;;  %v3808_v18 = vsel %vm10752_vm5, %v8641_v53, %v3807_v59 }
 0x128   : > { %9666 = vmatpush3.bf16.msra.mxu0 %v10396_v29  ;;  %v3772_v29 = vrot.slane %v8609_v49, 5 }
 0x129   : > { %9667 = vmatprep.subr.bf16.mxu0 %v10398_v27 }
 0x12a   : > { %v3774_v14 = vrot.slane %v3772_v29, 4  ;;  %v3773_v15 = vsel %vm10752_vm5, %v8636_v1, %v3772_v29  ;;  %v3817_v1 = vrot.slane %v8628_v3, 5 }
 0x12b   : > { %9648 = vmatmul.mubr.bf16.gmra.mrb[8].mxu0 %v8592_v37  ;;  %v8614_v37 = vld [vmem:[%s10638_s15 + $0x3c] sm:$0xe] }
 0x12c   : > { %9668 = vmatpush3.bf16.msra.mxu0 %v10398_v27  ;;  %9651 = vmatprep.mubr.bf16.mxu0 %v8593_v19  ;;  %v3776_v27 = vsel %vm10752_vm5, %v3774_v14, %v3775_v8  ;;  %v8616_v19 = vld [vmem:[%s10638_s15 + $0x44] sm:$0x1]  ;;  %v8638_v52 = vrot.slane %v8614_v37, 9  ;;  %v8643_v14 = vrot.slane %v8629_v12, 9  ;;  %v3823_v8 = vrot.slane %v3821_v50, 4 }
 0x12d   : > { %9669 = vmatprep.subr.bf16.mxu0 %v10400_v6  ;;  %v8662_v43 = vcombine.low %v3773_v15, %v3776_v27 }
 0x12e   : > { %v3787_v4 = vsel %vm10752_vm5, %v8638_v52, %v3786_v51  ;;  %v3822_v15 = vsel %vm10752_vm5, %v8643_v14, %v3821_v50  ;;  %v3825_v27 = vsel %vm10752_vm5, %v3823_v8, %v3824_v47  ;;  %v8632_v51 = vld [vmem:[%s10638_s15 + $0x84] sm:$0xe]  ;;  %v10418_v52 = vld [vmem:[%s12608_s3 + $0x10] sm:$0xff]  }
 0x12f   : > { %v8669_v37 = vcombine.low %v3822_v15, %v3825_v27  ;;  %9699 = vmatprep.subr.bf16.mxu1 %v10418_v52 }
 0x130   : > { %9670 = vmatpush3.bf16.msra.mxu0 %v10400_v6  ;;  %v3789_v6 = vrot.slane %v8616_v19, 5  ;;  %v8644_v19 = vrot.slane %v8632_v51, 9  ;;  %9700 = vmatpush3.bf16.msra.mxu1 %v10418_v52 }
 0x131   : > { %9671 = vmatprep.subr.bf16.mxu0 %v10403_v13 }
 0x132   : > { %v3790_v54 = vsel %vm10752_vm5, %v3788_v21, %v3789_v6  ;;  %v3829_v10 = vsel %vm10752_vm5, %v8644_v19, %v3828_v30  ;;  %v10552_v21 = vmov 0   ;;  %v10419_v6 = vld [vmem:[%s12608_s3 + $0x18] sm:$0xff]  }
 0x133   : > { %9652 = vmatmul.mubr.bf16.gmra.mrb[12].mxu0 %v8594_v57  ;;  %v8664_v62 = vcombine.low %v3787_v4, %v3790_v54  ;;  %v8665_v57 = vcombine.low %v3794_v48, %v3797_v5  ;;  %4263 = vst [vmem:[#allocation3 + $0xc] sm:$0xf] %v10552_v21  ;;  %4260 = vst [vmem:[#allocation3] sm:$0xf] %v10552_v21  ;;  %9701 = vmatprep.subr.bf16.mxu1 %v10419_v6  ;;  %v10421_v4 = vld [vmem:[%s12608_s3 + $0x28] sm:$0xff]  }
 0x134   : > { %9655 = vmatprep.mubr.bf16.mxu0 %v8595_v11  ;;  %9672 = vmatpush3.bf16.msra.mxu0 %v10403_v13  ;;  %v8620_v13 = vld [vmem:[%s10638_s15 + $0x54] sm:$0xe]  ;;  %4261 = vst [vmem:[#allocation3 + $0x4] sm:$0xf] %v10552_v21  ;;  %4262 = vst [vmem:[#allocation3 + $0x8] sm:$0x1] %v10552_v21 }
 0x135   : > { %9673 = vmatprep.subr.bf16.mxu0 %v10405_v23  ;;  %v8640_v11 = vrot.slane %v8620_v13, 9  ;;  %4264 = vst [vmem:[#allocation3 + $0x10] sm:$0xf] %v10552_v21  ;;  %4265 = vst [vmem:[#allocation3 + $0x14] sm:$0x1] %v10552_v21  ;;  %9702 = vmatpush3.bf16.msra.mxu1 %v10419_v6  ;;  %v10422_v13 = vld [vmem:[%s12608_s3 + $0x30] sm:$0xff]  }
 0x136   : > { %4266 = vst [vmem:[#allocation3 + $0x18] sm:$0xf] %v10552_v21  ;;  %4267 = vst [vmem:[#allocation3 + $0x1c] sm:$0xf] %v10552_v21  ;;  %9703 = vmatprep.subr.bf16.mxu1 %v10420_v0 }
 0x137   : > { %v3801_v49 = vsel %vm10752_vm5, %v8640_v11, %v3800_v20  ;;  %4268 = vst [vmem:[#allocation3 + $0x20] sm:$0x1] %v10552_v21  ;;  %4269 = vst [vmem:[#allocation3 + $0x24] sm:$0xf] %v10552_v21 }
 0x138   : > { %9674 = vmatpush3.bf16.msra.mxu0 %v10405_v23  ;;  %v3809_v23 = vrot.slane %v3807_v59, 4  ;;  %v8666_v58 = vcombine.low %v3801_v49, %v3804_v36  ;;  %4270 = vst [vmem:[#allocation3 + $0x28] sm:$0xf] %v10552_v21  ;;  %4271 = vst [vmem:[#allocation3 + $0x2c] sm:$0x1] %v10552_v21  ;;  %v4180_v49 = vstv %s8681_s10 }
 0x139   : > { %4272 = vst [vmem:[#allocation3 + $0x30] sm:$0xf] %v10552_v21  ;;  %4273 = vst [vmem:[#allocation3 + $0x34] sm:$0xf] %v10552_v21  ;;  %9704 = vmatpush3.bf16.msra.mxu1 %v10420_v0  ;;  %v4181_v36 = vadd.s32 1, %v4180_v49  ;;  %vm4190_vm8 = vcmp.ge.s32.totalorder %v4180_v49, 0 }
 0x13a   : > { %v3811_v29 = vsel %vm10752_vm5, %v3809_v23, %v3810_v28  ;;  %4274 = vst [vmem:[#allocation3 + $0x38] sm:$0x1] %v10552_v21  ;;  %4275 = vst [vmem:[#allocation3 + $0x3c] sm:$0xf] %v10552_v21  ;;  %9705 = vmatprep.subr.bf16.mxu1 %v10421_v4  ;;  %vm4200_vm9 = vcmp.lt.s32.totalorder %v4180_v49, 16  ;;  %v11775_v50 = vadd.s32 2, %v4180_v49 }
 0x13b   : > { %9656 = vmatmul.mubr.bf16.gmra.mrb[16].mxu0 %v8596_v26  ;;  %v8667_v38 = vcombine.low %v3808_v18, %v3811_v29  ;;  %v8642_v26 = vrot.slane %v8626_v17, 9  ;;  %4276 = vst [vmem:[#allocation3 + $0x40] sm:$0xf] %v10552_v21  ;;  %4277 = vst [vmem:[#allocation3 + $0x44] sm:$0x1] %v10552_v21  ;;  %vm4191_vm6 = vcmp.ge.s32.totalorder %v4181_v36, 0 }
 0x13c   : > { %9675 = vmatprep.mubr.bf16.mxu0 %v8661_v61  ;;  %v3816_v61 = vrot.slane %v3814_v32, 4  ;;  %4278 = vst [vmem:[#allocation3 + $0x48] sm:$0xf] %v10552_v21  ;;  %4279 = vst [vmem:[#allocation3 + $0x4c] sm:$0xf] %v10552_v21  ;;  %vm4201_vm7 = vcmp.lt.s32.totalorder %v4181_v36, 16 }
 0x13d   : > { %v3815_v42 = vsel %vm10752_vm5, %v8642_v26, %v3814_v32  ;;  %4280 = vst [vmem:[#allocation3 + $0x50] sm:$0x1] %v10552_v21  ;;  %4281 = vst [vmem:[#allocation3 + $0x54] sm:$0xf] %v10552_v21  ;;  %9706 = vmatpush3.bf16.msra.mxu1 %v10421_v4  ;;  %v4183_v32 = vadd.s32 3, %v4180_v49  ;;  %vm4192_vm4 = vcmp.ge.s32.totalorder %v11775_v50, 0 }
 0x13e   : > { %v3818_v56 = vsel %vm10752_vm5, %v3816_v61, %v3817_v1  ;;  %4282 = vst [vmem:[#allocation3 + $0x58] sm:$0xf] %v10552_v21  ;;  %4283 = vst [vmem:[#allocation3 + $0x5c] sm:$0x1] %v10552_v21  ;;  %9707 = vmatprep.subr.bf16.mxu1 %v10422_v13  ;;  %v11773_v29 = vld [vmem:[%s12607_s2] ss:$0 sm:$0xff] }
 0x13f   : > { %v8668_v63 = vcombine.low %v3815_v42, %v3818_v56  ;;  %4284 = vst [vmem:[#allocation3 + $0x60] sm:$0xf] %v10552_v21  ;;  %4285 = vst [vmem:[#allocation3 + $0x64] sm:$0xf] %v10552_v21  ;;  %vm4193_vm11 = vcmp.ge.s32.totalorder %v4183_v32, 0  ;;  %vm4203_vm12 = vcmp.lt.s32.totalorder %v4183_v32, 16 }
 0x140   : > { %4286 = vst [vmem:[#allocation3 + $0x68] sm:$0x1] %v10552_v21  ;;  %4287 = vst [vmem:[#allocation3 + $0x6c] sm:$0xf] %v10552_v21  ;;  %v11795_v30 = vadd.s32 5, %v4180_v49  ;;  %v11797_v15 = vadd.s32 4, %v4180_v49 }
 0x141   : > { %4288 = vst [vmem:[#allocation3 + $0x70] sm:$0xf] %v10552_v21  ;;  %4289 = vst [vmem:[#allocation3 + $0x74] sm:$0x1] %v10552_v21  ;;  %9708 = vmatpush3.bf16.msra.mxu1 %v10422_v13  ;;  %v11801_v24 = vadd.s32 7, %v4180_v49  ;;  %v11812_v6 = vadd.s32 8, %v4180_v49 }
 0x142   : > { %vm11780_vm15 = vmand %vm4191_vm6, %vm4201_vm7  ;;  %vm4202_vm6 = vcmp.lt.s32.totalorder %v11775_v50, 16 }
 0x143   : > { %9676 = vmatmul.mubr.bf16.vlgmr.msra.gmra.mrb[0].mxu0 %v8662_v43  ;;  %v3832_v43 = vsel %vm10752_vm5, %v3830_v25, %v3831_v9  ;;  %vm11787_vm3 = vmand %vm4190_vm8, %vm4200_vm9  ;;  %vm4195_vm8 = vcmp.ge.s32.totalorder %v11795_v30, 0  ;;  %vm4205_vm9 = vcmp.lt.s32.totalorder %v11795_v30, 16 }
 0x144   : > { %9679 = vmatprep.mubr.bf16.mxu0 %v8663_v44  ;;  %v8670_v44 = vcombine.low %v3829_v10, %v3832_v43  ;;  %v11807_v10 = vadd.s32 9, %v4180_v49  ;;  %vm11819_vm7 = vmand %vm4193_vm11, %vm4203_vm12  ;;  %vm4194_vm11 = vcmp.ge.s32.totalorder %v11797_v15, 0  ;;  %vm4204_vm12 = vcmp.lt.s32.totalorder %v11797_v15, 16 }
 0x14b   : > { %9680 = vmatmul.mubr.bf16.gmra.mrb[4].mxu0 %v8664_v62  ;;  %v10423_v62 = vld [vmem:[%s12608_s3 + $0x38] sm:$0xff]  }
 0x14c   : > { %9683 = vmatprep.mubr.bf16.mxu0 %v8665_v57  ;;  %9709 = vmatprep.subr.bf16.mxu1 %v10423_v62  ;;  %v11750_v57 = vld [vmem:[%s12608_s3 + $0x40] sm:$0xff]  }
 0x14d   : > { %9710 = vmatpush3.bf16.msra.mxu1 %v10423_v62 }
 0x14e   : > { %9727 = vmatprep.subr.bf16.mxu1 %v11750_v57 }
 0x153   : > { %9684 = vmatmul.mubr.bf16.gmra.mrb[8].mxu0 %v8666_v58 }
 0x154   : > { %9687 = vmatprep.mubr.bf16.mxu0 %v8667_v38 }
 0x15b   : > { %9688 = vmatmul.mubr.bf16.gmra.mrb[12].mxu0 %v8668_v63  ;;  %v11803_v63 = vadd.s32 6, %v4180_v49 }
 0x15c   : > { %9691 = vmatprep.mubr.bf16.mxu0 %v8669_v37 }
 0x163   : > { %9692 = vmatmul.mubr.bf16.gmra.mrb[16].mxu0 %v8670_v44 }
 0x1a4   : > { %v9389_v16 = vpop.f32.mrb[0].mxu1 }
 0x1a5   : > { %v480_v22 = vpop.f32.mrb[1].mxu1 }
 0x1a6   : > { %v9390_v39 = vpop.f32.mrb[2].mxu1 }
 0x1a7   : > { %v483_v46 = vpop.f32.mrb[3].mxu1 }
 0x1ac   : > { %v11725_v54 = vpop.f32.mrb[4].mxu1 }
 0x1ad   : > { %v11727_v20 = vpop.f32.mrb[5].mxu1 }
 0x1ae   : > { %v11729_v48 = vpop.f32.mrb[6].mxu1 }
 0x1af   : > { %v11731_v5 = vpop.f32.mrb[7].mxu1 }
 0x1b4   : > { %v11736_v45 = vpop.f32.mrb[8].mxu1 }
 0x1b5   : > { %v11738_v59 = vpop.f32.mrb[9].mxu1 }
 0x1b6   : > { %v11740_v34 = vpop.f32.mrb[10].mxu1 }
 0x1b7   : > { %v11742_v2 = vpop.f32.mrb[11].mxu1 }
 0x1bc   : > { %v11752_v11 = vpop.f32.mrb[12].mxu1 }
 0x1bd   : > { %v11754_v40 = vpop.f32.mrb[13].mxu1 }
 0x1be   : > { %v11757_v55 = vpop.f32.mrb[14].mxu1 }
 0x1bf   : > { %v11759_v53 = vpop.f32.mrb[15].mxu1 }
 0x1c4   : > { %v11761_v23 = vpop.f32.mrb[16].mxu1 }
 0x1c5   : > { %v11763_v28 = vpop.f32.mrb[17].mxu1 }
 0x1c6   : > { %v11765_v35 = vpop.f32.mrb[18].mxu1 }
 0x1c7   : > { %v11767_v60 = vpop.f32.mrb[19].mxu1 }
 0x216   : > { %v9677_v18 = vpop.f32.mrb[0].mxu0 }
 0x217   : > { %v9983_v17 = vadd.f32 %v9677_v18, %v9389_v16  ;;  %v3992_v3 = vpop.f32.mrb[1].mxu0 }
 0x218   : > { %v9984_v12 = vadd.f32 %v3992_v3, %v480_v22  ;;  %v9678_v7 = vpop.f32.mrb[2].mxu0 }
 0x219   : > { %v4140_v58 = vadd.f32 %v9983_v17, %v11773_v29  ;;  %v9985_v38 = vadd.f32 %v9678_v7, %v9390_v39  ;;  %v3995_v26 = vpop.f32.mrb[3].mxu0 }
 0x21a   : > { %v4138_v1 = vadd.f32 %v9984_v12, %v11773_v29  ;;  %v9986_v14 = vadd.f32 %v3995_v26, %v483_v46 }
 0x21b   : > { %v4160_v8 = vmax.f32 %v4140_v58, 0.0  ;;  %v4141_v41 = vadd.f32 %v9985_v38, %v11773_v29  ;;  %v4565_v58 = vld [vmem:[#allocation3 + $0xc] sm:$0xf] }
 0x21c   : > { %v4158_v42 = vmax.f32 %v4138_v1, 0.0  ;;  %v4139_v56 = vadd.f32 %v9986_v14, %v11773_v29  ;;  %v4556_v14 = vld [vmem:[#allocation3] sm:$0xf] }
 0x21d   : > { %v4242_v27 = vsel %vm11780_vm15, %v4160_v8, 0.0  ;;  %v4161_v51 = vmax.f32 %v4141_v41, 0.0 }
 0x21e   : > { %v9027_v37 = vpack.c.bf16 %v4242_v27, %v4242_v27  ;;  %v4240_v19 = vsel %vm11787_vm3, %v4158_v42, 0.0  ;;  %v4159_v25 = vmax.f32 %v4139_v56, 0.0  ;;  %v9681_v9 = vpop.f32.mrb[4].mxu0 }
 0x21f   : > { %v9025_v43 = vpack.c.bf16 %v4240_v19, %v4240_v19  ;;  %v4243_v44 = vsel %vm11780_vm15, %v4161_v51, 0.0  ;;  %v9987_v52 = vadd.f32 %v9681_v9, %v11725_v54  ;;  %v4008_v21 = vpop.f32.mrb[5].mxu0  ;;  %vm11828_vm15 = vmand %vm4553_vm10, %vm4554_vm13  ;;  %v4569_v51 = vld [vmem:[#allocation3 + $0x14] sm:$0x1] }
 0x220   : > { %v4371_v16 = vshrl.u32 %v9027_v37, 16  ;;  %v4374_v22 = vshll.u32 %v9027_v37, 16  ;;  %v9028_v39 = vpack.c.bf16 %v4243_v44, %v4243_v44  ;;  %v4241_v46 = vsel %vm11787_vm3, %v4159_v25, 0.0  ;;  %v9682_v0 = vpop.f32.mrb[6].mxu0  ;;  %vm11836_vm3 = vmor %vm4350_vm14, %vm4351_vm0  ;;  %v4562_v44 = vld [vmem:[#allocation3 + $0x8] sm:$0x1] }
 0x221   : > { %v4354_v4 = vshrl.u32 %v9025_v43, 16  ;;  %v4357_v13 = vshll.u32 %v9025_v43, 16  ;;  %v9026_v62 = vpack.c.bf16 %v4241_v46, %v4241_v46  ;;  %v4144_v36 = vadd.f32 %v9987_v52, %v11773_v29  ;;  %v4011_v18 = vpop.f32.mrb[7].mxu0  ;;  %vm11843_vm10 = vmand %vm4560_vm1, %vm4350_vm14 }
 0x222   : > { %v4373_v17 = vrot.slane %v4371_v16, 7  ;;  %v4379_v3 = vshrl.u32 %v9028_v39, 16  ;;  %v4382_v12 = vshll.u32 %v9028_v39, 16  ;;  %v9988_v49 = vadd.f32 %v4008_v21, %v11727_v20  ;;  %vm11855_vm13 = vmand %vm4192_vm4, %vm4202_vm6 }
 0x223   : > { %v4356_v38 = vrot.slane %v4354_v4, 7  ;;  %v4362_v26 = vshrl.u32 %v9026_v62, 16  ;;  %v4365_v32 = vshll.u32 %v9026_v62, 16  ;;  %v4164_v61 = vmax.f32 %v4144_v36, 0.0  ;;  %vm11888_vm14 = vmand %vm4195_vm8, %vm4205_vm9 }
 0x224   : > { %v4376_v20 = vor.u32 %v4374_v22, %v4373_v17  ;;  %v4377_v1 = vrot.slane %v4373_v17, 4  ;;  %v4381_v47 = vrot.slane %v4379_v3, 7  ;;  %v4142_v41 = vadd.f32 %v9988_v49, %v11773_v29  ;;  %vm11901_vm0 = vmand %vm4194_vm11, %vm4204_vm12 }
 0x225   : > { %v4359_v42 = vor.u32 %v4357_v13, %v4356_v38  ;;  %v4360_v56 = vrot.slane %v4356_v38, 4  ;;  %v4364_v37 = vrot.slane %v4362_v26, 7  ;;  %v4246_v19 = vsel %vm11819_vm7, %v4164_v61, 0.0 }
 0x226   : > { %v4566_v25 = vsel %vm11828_vm15, %v4376_v20, %v4565_v58  ;;  %v4384_v9 = vor.u32 %v4382_v12, %v4381_v47  ;;  %v4386_v43 = vrot.slane %v4381_v47, 4  ;;  %v9031_v52 = vpack.c.bf16 %v4246_v19, %v4246_v19  ;;  %v9685_v16 = vpop.f32.mrb[8].mxu0 }
 0x227   : > { %4567 = vst [vmem:[#allocation3 + $0xc] sm:$0xf] %v4566_v25  ;;  %v4557_v22 = vsel %vm11828_vm15, %v4359_v42, %v4556_v14  ;;  %v4367_v39 = vor.u32 %v4365_v32, %v4364_v37  ;;  %v4369_v46 = vrot.slane %v4364_v37, 4  ;;  %v4162_v4 = vmax.f32 %v4142_v41, 0.0  ;;  %v4024_v13 = vpop.f32.mrb[9].mxu0 }
 0x228   : > { %4558 = vst [vmem:[#allocation3] sm:$0xf] %v4557_v22  ;;  %v4385_v62 = vsel %vm11836_vm3, %v4377_v1, %v4384_v9  ;;  %v4570_v50 = vsel %vm11843_vm10, %v4386_v43, %v4569_v51  ;;  %v4405_v36 = vshrl.u32 %v9031_v52, 16  ;;  %v4408_v17 = vshll.u32 %v9031_v52, 16  ;;  %v9686_v3 = vpop.f32.mrb[10].mxu0 }
 0x229   : > { %4568 = vst [vmem:[#allocation3 + $0x10] sm:$0xf] %v4385_v62  ;;  %4571 = vst [vmem:[#allocation3 + $0x14] sm:$0x1] %v4570_v50  ;;  %v4368_v12 = vsel %vm11836_vm3, %v4360_v56, %v4367_v39  ;;  %v4563_v49 = vsel %vm11843_vm10, %v4369_v46, %v4562_v44  ;;  %v4244_v58 = vsel %vm11855_vm13, %v4162_v4, 0.0  ;;  %v9989_v38 = vadd.f32 %v9682_v0, %v11729_v48  ;;  %v4027_v26 = vpop.f32.mrb[11].mxu0 }
 0x22a   : > { %4559 = vst [vmem:[#allocation3 + $0x4] sm:$0xf] %v4368_v12  ;;  %4564 = vst [vmem:[#allocation3 + $0x8] sm:$0x1] %v4563_v49  ;;  %v11872_v32 = vrot.slane %v4405_v36, 7  ;;  %v9029_v61 = vpack.c.bf16 %v4244_v58, %v4244_v58  ;;  %v9990_v20 = vadd.f32 %v4011_v18, %v11731_v5  ;;  %v9991_v1 = vadd.f32 %v9685_v16, %v11736_v45 }
 0x22b   : > { %v4579_v14 = vld [vmem:[#allocation3 + $0x24] sm:$0xf]  ;;  %v4145_v47 = vadd.f32 %v9989_v38, %v11773_v29  ;;  %v9992_v41 = vadd.f32 %v4024_v13, %v11738_v59  ;;  %v9993_v42 = vadd.f32 %v9686_v3, %v11740_v34  ;;  %v9994_v56 = vadd.f32 %v4027_v26, %v11742_v2  ;;  %v4572_v25 = vld [vmem:[#allocation3 + $0x18] sm:$0xf]  ;;  %v10430_v59 = vld [vmem:[%s12608_s3 + $0x50] sm:$0xff]  }
 0x22c   : > { %v4410_v48 = vor.u32 %v4408_v17, %v11872_v32  ;;  %v4411_v0 = vrot.slane %v11872_v32, 4  ;;  %v4388_v51 = vshrl.u32 %v9029_v61, 16  ;;  %v4391_v37 = vshll.u32 %v9029_v61, 16  ;;  %v10427_v17 = vld [vmem:[%s12608_s3 + $0x48] sm:$0xff]  }
 0x22d   : > { %v4165_v19 = vmax.f32 %v4145_v47, 0.0  ;;  %v4143_v5 = vadd.f32 %v9990_v20, %v11773_v29  ;;  %v4148_v45 = vadd.f32 %v9991_v1, %v11773_v29  ;;  %v4146_v34 = vadd.f32 %v9992_v41, %v11773_v29 }
 0x22e   : > { %v4580_v2 = vsel %vm11828_vm15, %v4410_v48, %v4579_v14  ;;  %v11895_v18 = vrot.slane %v4388_v51, 7  ;;  %v4149_v30 = vadd.f32 %v9993_v42, %v11773_v29  ;;  %v4147_v43 = vadd.f32 %v9994_v56, %v11773_v29  ;;  %v11907_v44 = vpop.f32.mrb[12].mxu0  ;;  %v4583_v56 = vld [vmem:[#allocation3 + $0x2c] sm:$0x1] }
 0x22f   : > { %4581 = vst [vmem:[#allocation3 + $0x24] sm:$0xf] %v4580_v2  ;;  %v4247_v52 = vsel %vm11819_vm7, %v4165_v19, 0.0  ;;  %v4163_v16 = vmax.f32 %v4143_v5, 0.0  ;;  %v4168_v22 = vmax.f32 %v4148_v45, 0.0  ;;  %v4166_v39 = vmax.f32 %v4146_v34, 0.0 }
 0x230   : > { %v11911_v46 = vpop.f32.mrb[13].mxu0  ;;  %v4393_v15 = vor.u32 %v4391_v37, %v11895_v18  ;;  %v4394_v4 = vrot.slane %v11895_v18, 4  ;;  %v9032_v13 = vpack.c.bf16 %v4247_v52, %v4247_v52  ;;  %v4169_v62 = vmax.f32 %v4149_v30, 0.0  ;;  %v10425_v36 = vld [vmem:[#allocation3 + $0xc] sm:$0xff]   ;;  %v4576_v52 = vld [vmem:[#allocation3 + $0x20] sm:$0x1] }
 0x231   : > { %v11915_v50 = vpop.f32.mrb[14].mxu0  ;;  %v4245_v54 = vsel %vm11855_vm13, %v4163_v16, 0.0  ;;  %v4250_v3 = vsel %vm11888_vm14, %v4168_v22, 0.0  ;;  %v4248_v12 = vsel %vm11901_vm0, %v4166_v39, 0.0  ;;  %v4167_v49 = vmax.f32 %v4147_v43, 0.0  ;;  %v10424_v38 = vld [vmem:[#allocation3] sm:$0xff]  }
 0x232   : > { %v11926_v58 = vpop.f32.mrb[15].mxu0  ;;  %v4573_v26 = vsel %vm11828_vm15, %v4393_v15, %v4572_v25  ;;  %v4413_v61 = vshrl.u32 %v9032_v13, 16  ;;  %v4416_v20 = vshll.u32 %v9032_v13, 16  ;;  %v9030_v1 = vpack.c.bf16 %v4245_v54, %v4245_v54  ;;  %9711 = vmatprep.mubr.bf16.mxu1 %v10424_v38 }
 0x233   : > { %vm4197_vm1 = vcmp.ge.s32.totalorder %v11801_v24, 0  ;;  %vm4207_vm4 = vcmp.lt.s32.totalorder %v11801_v24, 16  ;;  %4574 = vst [vmem:[#allocation3 + $0x18] sm:$0xf] %v4573_v26  ;;  %v9035_v21 = vpack.c.bf16 %v4250_v3, %v4250_v3  ;;  %v9033_v14 = vpack.c.bf16 %v4248_v12, %v4248_v12  ;;  %9712 = vmatmul.mubr.bf16.vlgmr.msra.gmra.mrb[20].mxu1 %v10425_v36  ;;  %v4593_v3 = vld [vmem:[#allocation3 + $0x3c] sm:$0xf] }
 0x234   : > { %v4251_v47 = vsel %vm11888_vm14, %v4169_v62, 0.0  ;;  %v4249_v41 = vsel %vm11901_vm0, %v4167_v49, 0.0  ;;  %v4415_v42 = vrot.slane %v4413_v61, 7  ;;  %v4396_v48 = vshrl.u32 %v9030_v1, 16  ;;  %9728 = vmatpush3.bf16.msra.mxu1 %v11750_v57  ;;  %v4586_v12 = vld [vmem:[#allocation3 + $0x30] sm:$0xf]  ;;  %vm11978_vm13 = vmand %vm4197_vm1, %vm4207_vm4 }
 0x235   : > { %v4399_v51 = vshll.u32 %v9030_v1, 16  ;;  %v9036_v37 = vpack.c.bf16 %v4251_v47, %v4251_v47  ;;  %v4439_v19 = vshrl.u32 %v9035_v21, 16  ;;  %v4442_v5 = vshll.u32 %v9035_v21, 16  ;;  %9729 = vmatprep.subr.bf16.mxu1 %v10427_v17  ;;  %v10431_v47 = vld [vmem:[%s12608_s3 + $0x58] sm:$0xff]  }
 0x236   : > { %v4422_v45 = vshrl.u32 %v9033_v14, 16  ;;  %v4425_v34 = vshll.u32 %v9033_v14, 16  ;;  %vm4196_vm6 = vcmp.ge.s32.totalorder %v11803_v63, 0  ;;  %vm4206_vm7 = vcmp.lt.s32.totalorder %v11803_v63, 16  ;;  %v9693_v43 = vpop.f32.mrb[16].mxu0 }
 0x237   : > { %v4418_v2 = vor.u32 %v4416_v20, %v4415_v42  ;;  %v4420_v25 = vrot.slane %v4415_v42, 4  ;;  %v4398_v9 = vrot.slane %v4396_v48, 7  ;;  %v4447_v30 = vshrl.u32 %v9036_v37, 16  ;;  %v4056_v57 = vpop.f32.mrb[17].mxu0  ;;  %vm12005_vm14 = vmand %vm4196_vm6, %vm4206_vm7 }
 0x238   : > { %vm4199_vm8 = vcmp.ge.s32.totalorder %v11807_v10, 0  ;;  %vm4209_vm9 = vcmp.lt.s32.totalorder %v11807_v10, 16  ;;  %v4441_v16 = vrot.slane %v4439_v19, 7  ;;  %v4424_v22 = vrot.slane %v4422_v45, 7  ;;  %v11950_v49 = vpop.f32.mrb[18].mxu0  ;;  %9730 = vmatpush3.bf16.msra.mxu1 %v10427_v17 }
 0x239   : > { %v4450_v39 = vshll.u32 %v9036_v37, 16  ;;  %v9034_v15 = vpack.c.bf16 %v4249_v41, %v4249_v41  ;;  %v4419_v13 = vsel %vm11836_vm3, %v4411_v0, %v4418_v2  ;;  %v4584_v62 = vsel %vm11843_vm10, %v4420_v25, %v4583_v56  ;;  %v11952_v1 = vpop.f32.mrb[19].mxu0  ;;  %9731 = vmatprep.subr.bf16.mxu1 %v10430_v59  ;;  %v4597_v41 = vld [vmem:[#allocation3 + $0x44] sm:$0x1]  ;;  %v4590_v19 = vld [vmem:[#allocation3 + $0x38] sm:$0x1]  ;;  %vm12017_vm0 = vmand %vm4199_vm8, %vm4209_vm9 }
 0x23a   : > { %v4401_v36 = vor.u32 %v4399_v51, %v4398_v9  ;;  %v4403_v54 = vrot.slane %v4398_v9, 4  ;;  %4582 = vst [vmem:[#allocation3 + $0x28] sm:$0xf] %v4419_v13  ;;  %4585 = vst [vmem:[#allocation3 + $0x2c] sm:$0x1] %v4584_v62  ;;  %v4444_v38 = vor.u32 %v4442_v5, %v4441_v16  ;;  %v4445_v26 = vrot.slane %v4441_v16, 4 }
 0x23b   : > { %v4427_v61 = vor.u32 %v4425_v34, %v4424_v22  ;;  %v4428_v20 = vrot.slane %v4424_v22, 4  ;;  %v4449_v21 = vrot.slane %v4447_v30, 7  ;;  %v4430_v14 = vshrl.u32 %v9034_v15, 16  ;;  %v10434_v25 = vld [vmem:[%s12608_s3 + $0x60] sm:$0xff]  }
 0x23c   : > { %v4402_v32 = vsel %vm11836_vm3, %v4394_v4, %v4401_v36  ;;  %v4577_v0 = vsel %vm11843_vm10, %v4403_v54, %v4576_v52  ;;  %v4594_v17 = vsel %vm11828_vm15, %v4444_v38, %v4593_v3  ;;  %v4433_v4 = vshll.u32 %v9034_v15, 16  ;;  %9732 = vmatpush3.bf16.msra.mxu1 %v10430_v59  ;;  %v10435_v36 = vld [vmem:[%s12608_s3 + $0x68] sm:$0xff]  }
 0x23d   : > { %4575 = vst [vmem:[#allocation3 + $0x1c] sm:$0xf] %v4402_v32  ;;  %4578 = vst [vmem:[#allocation3 + $0x20] sm:$0x1] %v4577_v0  ;;  %v4587_v18 = vsel %vm11828_vm15, %v4427_v61, %v4586_v12  ;;  %v9995_v42 = vadd.f32 %v11907_v44, %v11752_v11  ;;  %vm4198_vm11 = vcmp.ge.s32.totalorder %v11812_v6, 0  ;;  %vm4208_vm12 = vcmp.lt.s32.totalorder %v11812_v6, 16  ;;  %9733 = vmatprep.subr.bf16.mxu1 %v10431_v47 }
 0x23e   : > { %4595 = vst [vmem:[#allocation3 + $0x3c] sm:$0xf] %v4594_v17  ;;  %4588 = vst [vmem:[#allocation3 + $0x30] sm:$0xf] %v4587_v18  ;;  %v4452_v56 = vor.u32 %v4450_v39, %v4449_v21  ;;  %v4454_v48 = vrot.slane %v4449_v21, 4  ;;  %v4432_v51 = vrot.slane %v4430_v14, 7  ;;  %v9996_v37 = vadd.f32 %v11911_v46, %v11754_v40 }
 0x23f   : > { %v4152_v5 = vadd.f32 %v9995_v42, %v11773_v29  ;;  %v9997_v44 = vadd.f32 %v11915_v50, %v11757_v55  ;;  %v9998_v45 = vadd.f32 %v11926_v58, %v11759_v53  ;;  %v9999_v34 = vadd.f32 %v9693_v43, %v11761_v23  ;;  %vm12044_vm1 = vmand %vm4198_vm11, %vm4208_vm12  ;;  %v4600_v11 = vld [vmem:[#allocation3 + $0x48] sm:$0xf] }
 0x240   : > { %v4453_v40 = vsel %vm11836_vm3, %v4445_v26, %v4452_v56  ;;  %v4598_v46 = vsel %vm11843_vm10, %v4454_v48, %v4597_v41  ;;  %v4435_v24 = vor.u32 %v4433_v4, %v4432_v51  ;;  %v4437_v2 = vrot.slane %v4432_v51, 4  ;;  %9734 = vmatpush3.bf16.msra.mxu1 %v10431_v47  ;;  %v10438_v48 = vld [vmem:[%s12608_s3 + $0x70] sm:$0xff]  }
 0x241   : > { %4596 = vst [vmem:[#allocation3 + $0x40] sm:$0xf] %v4453_v40  ;;  %4599 = vst [vmem:[#allocation3 + $0x44] sm:$0x1] %v4598_v46  ;;  %v4172_v55 = vmax.f32 %v4152_v5, 0.0  ;;  %v4150_v53 = vadd.f32 %v9996_v37, %v11773_v29  ;;  %v4153_v23 = vadd.f32 %v9997_v44, %v11773_v29  ;;  %v4151_v50 = vadd.f32 %v9998_v45, %v11773_v29 }
 0x242   : > { %v4436_v58 = vsel %vm11836_vm3, %v4428_v20, %v4435_v24  ;;  %v4591_v59 = vsel %vm11843_vm10, %v4437_v2, %v4590_v19  ;;  %v4156_v30 = vadd.f32 %v9999_v34, %v11773_v29  ;;  %v10000_v43 = vadd.f32 %v4056_v57, %v11763_v28  ;;  %9735 = vmatprep.subr.bf16.mxu1 %v10434_v25 }
 0x243   : > { %4589 = vst [vmem:[#allocation3 + $0x34] sm:$0xf] %v4436_v58  ;;  %4592 = vst [vmem:[#allocation3 + $0x38] sm:$0x1] %v4591_v59  ;;  %v4254_v52 = vsel %vm11978_vm13, %v4172_v55, 0.0  ;;  %v4170_v16 = vmax.f32 %v4150_v53, 0.0  ;;  %v10001_v57 = vadd.f32 %v11950_v49, %v11765_v35  ;;  %v12035_v12 = vadd.f32 %v11952_v1, %v11767_v60 }
 0x244   : > { %v4173_v22 = vmax.f32 %v4153_v23, 0.0  ;;  %v4171_v39 = vmax.f32 %v4151_v50, 0.0  ;;  %v9039_v15 = vpack.c.bf16 %v4254_v52, %v4254_v52  ;;  %v4176_v13 = vmax.f32 %v4156_v30, 0.0  ;;  %v10428_v62 = vld [vmem:[#allocation3 + $0x18] sm:$0xff]   ;;  %v10429_v35 = vld [vmem:[#allocation3 + $0x24] sm:$0xff]   ;;  %9736 = vmatpush3.bf16.msra.mxu1 %v10434_v25 }
 0x245   : > { %v4154_v28 = vadd.f32 %v10000_v43, %v11773_v29  ;;  %v4252_v10 = vsel %vm12005_vm14, %v4170_v16, 0.0  ;;  %9715 = vmatprep.mubr.bf16.mxu1 %v10428_v62  ;;  %v4157_v21 = vadd.f32 %v10001_v57, %v11773_v29  ;;  %v4607_v1 = vld [vmem:[#allocation3 + $0x54] sm:$0xf]  ;;  %9737 = vmatprep.subr.bf16.mxu1 %v10435_v36  ;;  %v4611_v55 = vld [vmem:[#allocation3 + $0x5c] sm:$0x1] }
 0x246   : > { %v4255_v54 = vsel %vm11978_vm13, %v4173_v22, 0.0  ;;  %v4253_v3 = vsel %vm12005_vm14, %v4171_v39, 0.0  ;;  %v4473_v49 = vshrl.u32 %v9039_v15, 16  ;;  %v4476_v38 = vshll.u32 %v9039_v15, 16  ;;  %9716 = vmatmul.mubr.bf16.gmra.mrb[24].mxu1 %v10429_v35  ;;  %v4604_v53 = vld [vmem:[#allocation3 + $0x50] sm:$0x1] }
 0x247   : > { %v9037_v26 = vpack.c.bf16 %v4252_v10, %v4252_v10  ;;  %v9040_v61 = vpack.c.bf16 %v4255_v54, %v4255_v54  ;;  %v9038_v20 = vpack.c.bf16 %v4253_v3, %v4253_v3  ;;  %v4258_v32 = vsel %vm12017_vm0, %v4176_v13, 0.0  ;;  %v10439_v30 = vld [vmem:[%s12608_s3 + $0x78] sm:$0xff]   ;;  %v4621_v16 = vld [vmem:[#allocation3 + $0x6c] sm:$0xf]  ;;  %v4917_v15 = vld [vmem:[#allocation3] sm:$0xf] }
 0x248   : > { %v4174_v0 = vmax.f32 %v4154_v28, 0.0  ;;  %v4475_v14 = vrot.slane %v4473_v49, 7  ;;  %v9043_v56 = vpack.c.bf16 %v4258_v32, %v4258_v32  ;;  %9738 = vmatpush3.bf16.msra.mxu1 %v10435_v36  ;;  %v10433_v9 = vld [vmem:[#allocation3 + $0x3c] sm:$0xff]   ;;  %v4177_v39 = vmax.f32 %v4157_v21, 0.0  ;;  %v4918_v36 = vld [vmem:[#allocation3 + $0x4] sm:$0xf] }
 0x249   : > { %v4456_v47 = vshrl.u32 %v9037_v26, 16  ;;  %v4459_v17 = vshll.u32 %v9037_v26, 16  ;;  %v4481_v18 = vshrl.u32 %v9040_v61, 16  ;;  %v4484_v41 = vshll.u32 %v9040_v61, 16  ;;  %9739 = vmatprep.subr.bf16.mxu1 %v10438_v48  ;;  %v4920_v32 = vld [vmem:[#allocation3 + $0xc] sm:$0xf] }
 0x24a   : > { %v4464_v4 = vshrl.u32 %v9038_v20, 16  ;;  %v4467_v42 = vshll.u32 %v9038_v20, 16  ;;  %v4478_v51 = vor.u32 %v4476_v38, %v4475_v14  ;;  %v4479_v37 = vrot.slane %v4475_v14, 4  ;;  %v10432_v6 = vld [vmem:[#allocation3 + $0x30] sm:$0xff]   ;;  %v4614_v38 = vld [vmem:[#allocation3 + $0x60] sm:$0xf] }
 0x24b   : > { %v4458_v19 = vrot.slane %v4456_v47, 7  ;;  %v4483_v5 = vrot.slane %v4481_v18, 7  ;;  %v4507_v45 = vshrl.u32 %v9043_v56, 16  ;;  %v4510_v34 = vshll.u32 %v9043_v56, 16  ;;  %9719 = vmatprep.mubr.bf16.mxu1 %v10432_v6  ;;  %v4919_v21 = vld [vmem:[#allocation3 + $0x8] sm:$0x1] }
 0x24c   : > { %v4466_v44 = vrot.slane %v4464_v4, 7  ;;  %v4256_v40 = vsel %vm12044_vm1, %v4174_v0, 0.0  ;;  %v4608_v46 = vsel %vm11828_vm15, %v4478_v51, %v4607_v1  ;;  %v4259_v35 = vsel %vm12017_vm0, %v4177_v39, 0.0  ;;  %9740 = vmatpush3.bf16.msra.mxu1 %v10438_v48  ;;  %v12081_v0 = vld [vmem:[%s12608_s3 + $0x80] sm:$0xff]   ;;  %v4921_v6 = vld [vmem:[#allocation3 + $0x10] sm:$0xf] }
 0x24d   : > { %v4461_v24 = vor.u32 %v4459_v17, %v4458_v19  ;;  %v4462_v2 = vrot.slane %v4458_v19, 4  ;;  %v4486_v25 = vor.u32 %v4484_v41, %v4483_v5  ;;  %4609 = vst [vmem:[#allocation3 + $0x54] sm:$0xf] %v4608_v46  ;;  %v4488_v23 = vrot.slane %v4483_v5, 4  ;;  %9741 = vmatprep.subr.bf16.mxu1 %v10439_v30  ;;  %v4923_v46 = vld [vmem:[#allocation3 + $0x18] sm:$0xf] }
 0x24e   : > { %v4469_v50 = vor.u32 %v4467_v42, %v4466_v44  ;;  %v4471_v58 = vrot.slane %v4466_v44, 4  ;;  %v12055_v59 = vrot.slane %v4507_v45, 7  ;;  %v9041_v22 = vpack.c.bf16 %v4256_v40, %v4256_v40  ;;  %9720 = vmatmul.mubr.bf16.gmra.mrb[28].mxu1 %v10433_v9  ;;  %v4625_v42 = vld [vmem:[#allocation3 + $0x74] sm:$0x1]  ;;  %v4929_v8 = vld [vmem:[#allocation3 + $0x30] sm:$0xf] }
 0x24f   : > { %v4601_v43 = vsel %vm11828_vm15, %v4461_v24, %v4600_v11  ;;  %v4487_v52 = vsel %vm11836_vm3, %v4479_v37, %v4486_v25  ;;  %v4612_v13 = vsel %vm11843_vm10, %v4488_v23, %v4611_v55  ;;  %v9044_v26 = vpack.c.bf16 %v4259_v35, %v4259_v35 }
 0x250   : > { %4602 = vst [vmem:[#allocation3 + $0x48] sm:$0xf] %v4601_v43  ;;  %4610 = vst [vmem:[#allocation3 + $0x58] sm:$0xf] %v4487_v52  ;;  %v4470_v28 = vsel %vm11836_vm3, %v4462_v2, %v4469_v50  ;;  %v4605_v57 = vsel %vm11843_vm10, %v4471_v58, %v4604_v53  ;;  %v4512_v62 = vor.u32 %v4510_v34, %v12055_v59  ;;  %v4513_v10 = vrot.slane %v12055_v59, 4 }
 0x251   : > { %4613 = vst [vmem:[#allocation3 + $0x5c] sm:$0x1] %v4612_v13  ;;  %4603 = vst [vmem:[#allocation3 + $0x4c] sm:$0xf] %v4470_v28  ;;  %v4490_v54 = vshrl.u32 %v9041_v22, 16  ;;  %v4493_v3 = vshll.u32 %v9041_v22, 16  ;;  %v4155_v61 = vadd.f32 %v12035_v12, %v11773_v29  ;;  %9742 = vmatpush3.bf16.msra.mxu1 %v10439_v30 }
 0x252   : > { %4606 = vst [vmem:[#allocation3 + $0x50] sm:$0x1] %v4605_v57  ;;  %v4622_v49 = vsel %vm11828_vm15, %v4512_v62, %v4621_v16  ;;  %v4942_v20 = vshrl.u32 %v4917_v15, 16  ;;  %v4945_v14 = vshll.u32 %v4917_v15, 16  ;;  %v4951_v47 = vshll.u32 %v4918_v36, 16  ;;  %9759 = vmatprep.subr.bf16.mxu1 %v12081_v0 }
 0x253   : > { %4623 = vst [vmem:[#allocation3 + $0x6c] sm:$0xf] %v4622_v49  ;;  %v12083_v63 = vrot.slane %v4490_v54, 7  ;;  %v4955_v17 = vshrl.u32 %v4918_v36, 16  ;;  %v4515_v18 = vshrl.u32 %v9044_v26, 16  ;;  %v4518_v1 = vshll.u32 %v9044_v26, 16 }
 0x254   : > { %v4175_v41 = vmax.f32 %v4155_v61, 0.0  ;;  %v4944_v4 = vrot.slane %v4942_v20, 4  ;;  %v4947_v56 = vrot.slane %v4945_v14, 5  ;;  %v4953_v48 = vrot.slane %v4951_v47, 5  ;;  %v4922_v34 = vld [vmem:[#allocation3 + $0x14] sm:$0x1] }
 0x255   : > { %v4495_v29 = vor.u32 %v4493_v3, %v12083_v63  ;;  %v4496_v12 = vrot.slane %v12083_v63, 4  ;;  %v4517_v51 = vrot.slane %v4515_v18, 7  ;;  %v4957_v19 = vrot.slane %v4955_v17, 4  ;;  %v4618_v16 = vld [vmem:[#allocation3 + $0x68] sm:$0x1] }
 0x256   : > { %v4257_v37 = vsel %vm12044_vm1, %v4175_v41, 0.0  ;;  %v4961_v5 = vshll.u32 %v4919_v21, 16  ;;  %v4948_v45 = vor.u32 %v4947_v56, %v4944_v4  ;;  %v4966_v40 = vshrl.u32 %v4920_v32, 16  ;;  %v4924_v62 = vld [vmem:[#allocation3 + $0x1c] sm:$0xf] }
 0x257   : > { %v4615_v11 = vsel %vm11828_vm15, %v4495_v29, %v4614_v38  ;;  %v9042_v44 = vpack.c.bf16 %v4257_v37, %v4257_v37  ;;  %v4520_v24 = vor.u32 %v4518_v1, %v4517_v51  ;;  %v4522_v2 = vrot.slane %v4517_v51, 4  ;;  %v10437_v50 = vld [vmem:[#allocation3 + $0x54] sm:$0xff]   ;;  %v4925_v49 = vld [vmem:[#allocation3 + $0x20] sm:$0x1]  ;;  %v4927_v17 = vld [vmem:[#allocation3 + $0x28] sm:$0xf] }
 0x258   : > { %4616 = vst [vmem:[#allocation3 + $0x60] sm:$0xf] %v4615_v11  ;;  %v10436_v25 = vld [vmem:[#allocation3 + $0x48] sm:$0xff]   ;;  %v4958_v55 = vor.u32 %v4957_v19, %v4953_v48  ;;  %v4963_v60 = vrot.slane %v4961_v5, 5  ;;  %v4949_v58 = vrot.slane %v4948_v45, 4  ;;  %v4968_v59 = vrot.slane %v4966_v40, 4 }
 0x259   : > { %v4498_v53 = vshrl.u32 %v9042_v44, 16  ;;  %v4501_v23 = vshll.u32 %v9042_v44, 16  ;;  %v4521_v7 = vsel %vm11836_vm3, %v4513_v10, %v4520_v24  ;;  %v4626_v9 = vsel %vm11843_vm10, %v4522_v2, %v4625_v42  ;;  %9723 = vmatprep.mubr.bf16.mxu1 %v10436_v25  ;;  %v4928_v29 = vld [vmem:[#allocation3 + $0x2c] sm:$0x1]  ;;  %v4930_v5 = vld [vmem:[#allocation3 + $0x34] sm:$0xf] }
 0x25a   : > { %v4959_v30 = vrot.slane %v4958_v55, 4  ;;  %v4969_v43 = vshll.u32 %v4920_v32, 16  ;;  %4624 = vst [vmem:[#allocation3 + $0x70] sm:$0xf] %v4521_v7  ;;  %4627 = vst [vmem:[#allocation3 + $0x74] sm:$0x1] %v4626_v9  ;;  %9724 = vmatmul.mubr.bf16.gmra.mrb[32].mxu1 %v10437_v50  ;;  %v4954_v22 = vsel %vm10655_vm2, %v4949_v58, %v4953_v48 }
 0x25b   : > { %v4500_v52 = vrot.slane %v4498_v53, 7  ;;  %v4975_v39 = vshll.u32 %v4921_v6, 16  ;;  %v4979_v15 = vshrl.u32 %v4921_v6, 16  ;;  %v4985_v57 = vshll.u32 %v4922_v34, 16  ;;  %v4926_v32 = vld [vmem:[#allocation3 + $0x24] sm:$0xf] }
 0x25c   : > { %v4964_v13 = vsel %vm10655_vm2, %v4959_v30, %v4963_v60  ;;  %v4971_v28 = vrot.slane %v4969_v43, 5  ;;  %v4990_v36 = vshrl.u32 %v4923_v46, 16  ;;  %v4993_v14 = vshll.u32 %v4923_v46, 16  ;;  %v10441_v11 = vld [vmem:[%s12608_s3 + $0x88] sm:$0xff]   ;;  %v4932_v50 = vld [vmem:[#allocation3 + $0x3c] sm:$0xf] }
 0x25d   : > { %v4503_v10 = vor.u32 %v4501_v23, %v4500_v52  ;;  %v4505_v54 = vrot.slane %v4500_v52, 4  ;;  %v8734_v3 = vcombine.low %v4954_v22, %v4964_v13  ;;  %v4977_v35 = vrot.slane %v4975_v39, 5  ;;  %v4931_v23 = vld [vmem:[#allocation3 + $0x38] sm:$0x1]  ;;  %v4933_v30 = vld [vmem:[#allocation3 + $0x40] sm:$0xf] }
 0x25e   : > { %v4972_v38 = vor.u32 %v4971_v28, %v4968_v59  ;;  %v4981_v26 = vrot.slane %v4979_v15, 4  ;;  %v4987_v61 = vrot.slane %v4985_v57, 5  ;;  %v4992_v20 = vrot.slane %v4990_v36, 4  ;;  %v10442_v36 = vld [vmem:[%s12608_s3 + $0x90] sm:$0xff]  }
 0x25f   : > { %v4504_v63 = vsel %vm11836_vm3, %v4496_v12, %v4503_v10  ;;  %v4619_v21 = vsel %vm11843_vm10, %v4505_v54, %v4618_v16  ;;  %9743 = vmatprep.mubr.bf16.mxu1 %v8734_v3  ;;  %v4999_v47 = vshll.u32 %v4924_v62, 16  ;;  %v5003_v41 = vshrl.u32 %v4924_v62, 16 }
 0x260   : > { %4617 = vst [vmem:[#allocation3 + $0x64] sm:$0xf] %v4504_v63  ;;  %4620 = vst [vmem:[#allocation3 + $0x68] sm:$0x1] %v4619_v21  ;;  %v4973_v18 = vrot.slane %v4972_v38, 4  ;;  %v4982_v1 = vor.u32 %v4981_v26, %v4977_v35  ;;  %v5009_v4 = vshll.u32 %v4925_v49, 16 }
 0x261   : > { %v4995_v42 = vrot.slane %v4993_v14, 5  ;;  %v5001_v56 = vrot.slane %v4999_v47, 5  ;;  %v5014_v48 = vshrl.u32 %v4926_v32, 16  ;;  %v5017_v51 = vshll.u32 %v4926_v32, 16  ;;  %v4934_v38 = vld [vmem:[#allocation3 + $0x44] sm:$0x1] }
 0x262   : > { %v4978_v27 = vsel %vm10655_vm2, %v4973_v18, %v4977_v35  ;;  %v4983_v12 = vrot.slane %v4982_v1, 4  ;;  %v5005_v37 = vrot.slane %v5003_v41, 4  ;;  %v5011_v19 = vrot.slane %v5009_v4, 5  ;;  %v4935_v63 = vld [vmem:[#allocation3 + $0x48] sm:$0xf]  ;;  %v10443_v4 = vld [vmem:[%s12608_s3 + $0x98] sm:$0xff]  }
 0x263   : > { %v4996_v6 = vor.u32 %v4995_v42, %v4992_v20  ;;  %v5016_v44 = vrot.slane %v5014_v48, 4  ;;  %v5019_v45 = vrot.slane %v5017_v51, 5  ;;  %v5023_v34 = vshll.u32 %v4927_v17, 16  ;;  %v4936_v18 = vld [vmem:[#allocation3 + $0x4c] sm:$0xf] }
 0x264   : > { %v4988_v40 = vsel %vm10655_vm2, %v4983_v12, %v4987_v61  ;;  %v5006_v46 = vor.u32 %v5005_v37, %v5001_v56  ;;  %v5027_v24 = vshrl.u32 %v4927_v17, 16  ;;  %v5033_v2 = vshll.u32 %v4928_v29, 16 }
 0x265   : > { %v8735_v25 = vcombine.low %v4978_v27, %v4988_v40  ;;  %v4997_v55 = vrot.slane %v4996_v6, 4  ;;  %v5020_v60 = vor.u32 %v5019_v45, %v5016_v44  ;;  %v5025_v53 = vrot.slane %v5023_v34, 5  ;;  %v4937_v44 = vld [vmem:[#allocation3 + $0x50] sm:$0x1]  ;;  %v4939_v34 = vld [vmem:[#allocation3 + $0x58] sm:$0xf] }
 0x266   : > { %v5007_v58 = vrot.slane %v5006_v46, 4  ;;  %v5029_v59 = vrot.slane %v5027_v24, 4  ;;  %v5035_v7 = vrot.slane %v5033_v2, 5  ;;  %v5038_v9 = vshrl.u32 %v4929_v8, 16  ;;  %v10444_v2 = vld [vmem:[%s12608_s3 + $0xa0] sm:$0xff]  }
 0x267   : > { %9744 = vmatmul.mubr.bf16.vlgmr.msra.gmra.mrb[20].mxu1 %v8735_v25  ;;  %v5002_v43 = vsel %vm10655_vm2, %v4997_v55, %v5001_v56  ;;  %v5021_v52 = vrot.slane %v5020_v60, 4  ;;  %v5041_v16 = vshll.u32 %v4929_v8, 16  ;;  %v5047_v22 = vshll.u32 %v4930_v5, 16 }
 0x268   : > { %v5012_v39 = vsel %vm10655_vm2, %v5007_v58, %v5011_v19  ;;  %9760 = vmatpush3.bf16.msra.mxu1 %v12081_v0  ;;  %v5030_v15 = vor.u32 %v5029_v59, %v5025_v53  ;;  %v5040_v13 = vrot.slane %v5038_v9, 4  ;;  %v5051_v28 = vshrl.u32 %v4930_v5, 16  ;;  %v4938_v19 = vld [vmem:[#allocation3 + $0x54] sm:$0xf] }
 0x269   : > { %v8736_v57 = vcombine.low %v5002_v43, %v5012_v39  ;;  %9761 = vmatprep.subr.bf16.mxu1 %v10441_v11  ;;  %v5026_v62 = vsel %vm10655_vm2, %v5021_v52, %v5025_v53  ;;  %v5043_v10 = vrot.slane %v5041_v16, 5  ;;  %v5049_v54 = vrot.slane %v5047_v22, 5  ;;  %v5376_v16 = vld [vmem:[#allocation3 + $0x4] sm:$0xf]  ;;  %v10445_v39 = vld [vmem:[%s12608_s3 + $0xa8] sm:$0xff]  }
 0x26a   : > { %v5031_v3 = vrot.slane %v5030_v15, 4  ;;  %v5053_v35 = vrot.slane %v5051_v28, 4  ;;  %v5057_v49 = vshll.u32 %v4931_v23, 16  ;;  %v5062_v26 = vshrl.u32 %v4932_v50, 16  ;;  %v4940_v15 = vld [vmem:[#allocation3 + $0x5c] sm:$0x1] }
 0x26b   : > { %9747 = vmatprep.mubr.bf16.mxu1 %v8736_v57  ;;  %v5044_v0 = vor.u32 %v5043_v10, %v5040_v13  ;;  %v5065_v61 = vshll.u32 %v4932_v50, 16  ;;  %v5071_v20 = vshll.u32 %v4933_v30, 16  ;;  %v5075_v32 = vshrl.u32 %v4933_v30, 16 }
 0x26c   : > { %9762 = vmatpush3.bf16.msra.mxu1 %v10441_v11  ;;  %v5036_v21 = vsel %vm10655_vm2, %v5031_v3, %v5035_v7  ;;  %v5054_v14 = vor.u32 %v5053_v35, %v5049_v54  ;;  %v5059_v47 = vrot.slane %v5057_v49, 5  ;;  %v5064_v17 = vrot.slane %v5062_v26, 4  ;;  %v5377_v26 = vld [vmem:[#allocation3 + $0x8] sm:$0x1] }
 0x26d   : > { %v8737_v1 = vcombine.low %v5026_v62, %v5036_v21  ;;  %9763 = vmatprep.subr.bf16.mxu1 %v10442_v36  ;;  %v5045_v41 = vrot.slane %v5044_v0, 4  ;;  %v5067_v29 = vrot.slane %v5065_v61, 5  ;;  %v5073_v42 = vrot.slane %v5071_v20, 5  ;;  %v10446_v0 = vld [vmem:[%s12608_s3 + $0xb0] sm:$0xff]  }
 0x26e   : > { %v5055_v56 = vrot.slane %v5054_v14, 4  ;;  %v5077_v48 = vrot.slane %v5075_v32, 4  ;;  %v5081_v51 = vshll.u32 %v4934_v38, 16  ;;  %v5086_v8 = vshrl.u32 %v4935_v63, 16  ;;  %v5379_v20 = vld [vmem:[#allocation3 + $0x10] sm:$0xf] }
 0x26f   : > { %9748 = vmatmul.mubr.bf16.gmra.mrb[24].mxu1 %v8737_v1  ;;  %v5068_v27 = vor.u32 %v5067_v29, %v5064_v17  ;;  %v5089_v12 = vshll.u32 %v4935_v63, 16  ;;  %v5095_v37 = vshll.u32 %v4936_v18, 16  ;;  %v5050_v5 = vsel %vm10655_vm2, %v5045_v41, %v5049_v54  ;;  %v5382_v17 = vld [vmem:[#allocation3 + $0x1c] sm:$0xf] }
 0x270   : > { %v5060_v6 = vsel %vm10655_vm2, %v5055_v56, %v5059_v47  ;;  %9764 = vmatpush3.bf16.msra.mxu1 %v10442_v36  ;;  %v5078_v11 = vor.u32 %v5077_v48, %v5073_v42  ;;  %v5088_v45 = vrot.slane %v5086_v8, 4  ;;  %v5083_v24 = vrot.slane %v5081_v51, 5  ;;  %v5375_v47 = vld [vmem:[#allocation3] sm:$0xe]  ;;  %v10447_v48 = vld [vmem:[%s12608_s3 + $0xb8] sm:$0xff]  }
 0x271   : > { %v8738_v40 = vcombine.low %v5050_v5, %v5060_v6  ;;  %9765 = vmatprep.subr.bf16.mxu1 %v10443_v4  ;;  %v5069_v46 = vrot.slane %v5068_v27, 4  ;;  %v5091_v25 = vrot.slane %v5089_v12, 5  ;;  %v5097_v60 = vrot.slane %v5095_v37, 5 }
 0x272   : > { %v5079_v55 = vrot.slane %v5078_v11, 4  ;;  %v5099_v53 = vshrl.u32 %v4936_v18, 16  ;;  %v5110_v23 = vshrl.u32 %v4938_v19, 16  ;;  %v5105_v58 = vshll.u32 %v4937_v44, 16  ;;  %v5383_v11 = vld [vmem:[#allocation3 + $0x20] sm:$0x1] }
 0x273   : > { %9751 = vmatprep.mubr.bf16.mxu1 %v8738_v40  ;;  %v5092_v50 = vor.u32 %v5091_v25, %v5088_v45  ;;  %v5113_v59 = vshll.u32 %v4938_v19, 16  ;;  %v5119_v7 = vshll.u32 %v4939_v34, 16  ;;  %v5074_v9 = vsel %vm10655_vm2, %v5069_v46, %v5073_v42  ;;  %v5380_v19 = vld [vmem:[#allocation3 + $0x14] sm:$0x1]  ;;  %v5378_v44 = vld [vmem:[#allocation3 + $0xc] sm:$0xe] }
 0x274   : > { %9766 = vmatpush3.bf16.msra.mxu1 %v10443_v4  ;;  %v5084_v30 = vsel %vm10655_vm2, %v5079_v55, %v5083_v24  ;;  %v5101_v43 = vrot.slane %v5099_v53, 4  ;;  %v5112_v52 = vrot.slane %v5110_v23, 4  ;;  %v5123_v36 = vshrl.u32 %v4939_v34, 16  ;;  %v10448_v45 = vld [vmem:[%s12608_s3 + $0xc0] sm:$0xff]   ;;  %v5385_v40 = vld [vmem:[#allocation3 + $0x28] sm:$0xf] }
 0x275   : > { %v8739_v22 = vcombine.low %v5074_v9, %v5084_v30  ;;  %9767 = vmatprep.subr.bf16.mxu1 %v10444_v2  ;;  %v5115_v13 = vrot.slane %v5113_v59, 5  ;;  %v5093_v28 = vrot.slane %v5092_v50, 4  ;;  %v5121_v62 = vrot.slane %v5119_v7, 5  ;;  %v5381_v24 = vld [vmem:[#allocation3 + $0x18] sm:$0xe]  ;;  %v10449_v30 = vld [vmem:[%s12608_s3 + $0xc8] sm:$0xff]  }
 0x276   : > { %v5102_v57 = vor.u32 %v5101_v43, %v5097_v60  ;;  %v5425_v54 = vrot.slane %v5376_v16, 5  ;;  %v5107_v35 = vrot.slane %v5105_v58, 5  ;;  %v5125_v49 = vrot.slane %v5123_v36, 4  ;;  %v5384_v43 = vld [vmem:[#allocation3 + $0x24] sm:$0xe]  ;;  %v10450_v36 = vld [vmem:[%s12608_s3 + $0xd0] sm:$0xff]  }
 0x277   : > { %9752 = vmatmul.mubr.bf16.gmra.mrb[28].mxu1 %v8739_v22  ;;  %v5116_v10 = vor.u32 %v5115_v13, %v5112_v52  ;;  %v5129_v38 = vshll.u32 %v4940_v15, 16  ;;  %v5098_v32 = vsel %vm10655_vm2, %v5093_v28, %v5097_v60  ;;  %v5428_v1 = vrot.slane %v5377_v26, 5  ;;  %v5386_v52 = vld [vmem:[#allocation3 + $0x2c] sm:$0x1]  ;;  %v5389_v15 = vld [vmem:[#allocation3 + $0x38] sm:$0x1] }
 0x278   : > { %v5103_v3 = vrot.slane %v5102_v57, 4  ;;  %9768 = vmatpush3.bf16.msra.mxu1 %v10444_v2  ;;  %v5427_v61 = vrot.slane %v5425_v54, 4  ;;  %v5126_v14 = vor.u32 %v5125_v49, %v5121_v62  ;;  %v5432_v29 = vrot.slane %v5379_v20, 5  ;;  %v5388_v2 = vld [vmem:[#allocation3 + $0x34] sm:$0xf] }
 0x279   : > { %9769 = vmatprep.subr.bf16.mxu1 %v10445_v39  ;;  %v5117_v21 = vrot.slane %v5116_v10, 4  ;;  %v5131_v4 = vrot.slane %v5129_v38, 5  ;;  %v8750_v42 = vrot.slane %v5375_v47, 9  ;;  %v5439_v51 = vrot.slane %v5382_v17, 5  ;;  %v5391_v28 = vld [vmem:[#allocation3 + $0x40] sm:$0xf] }
 0x27a   : > { %v5108_v63 = vsel %vm10655_vm2, %v5103_v3, %v5107_v35  ;;  %v5127_v41 = vrot.slane %v5126_v14, 4  ;;  %v5429_v56 = vsel %vm10752_vm5, %v5427_v61, %v5428_v1  ;;  %v5434_v6 = vrot.slane %v5432_v29, 4  ;;  %v10451_v61 = vld [vmem:[%s12608_s3 + $0xd8] sm:$0xff]   ;;  %v5395_v17 = vld [vmem:[#allocation3 + $0x50] sm:$0x1] }
 0x27b   : > { %v8740_v18 = vcombine.low %v5098_v32, %v5108_v63  ;;  %v5122_v8 = vsel %vm10655_vm2, %v5117_v21, %v5121_v62  ;;  %v5426_v37 = vsel %vm10752_vm5, %v8750_v42, %v5425_v54  ;;  %v5441_v34 = vrot.slane %v5439_v51, 4  ;;  %v5394_v62 = vld [vmem:[#allocation3 + $0x4c] sm:$0xf]  ;;  %v5390_v63 = vld [vmem:[#allocation3 + $0x3c] sm:$0xe] }
 0x27c   : > { %9770 = vmatpush3.bf16.msra.mxu1 %v10445_v39  ;;  %v5132_v27 = vsel %vm10655_vm2, %v5127_v41, %v5131_v4  ;;  %v8774_v5 = vcombine.low %v5426_v37, %v5429_v56  ;;  %v5435_v46 = vrot.slane %v5380_v19, 5  ;;  %v5442_v25 = vrot.slane %v5383_v11, 5  ;;  %v5387_v39 = vld [vmem:[#allocation3 + $0x30] sm:$0xe]  ;;  %v5392_v21 = vld [vmem:[#allocation3 + $0x44] sm:$0x1] }
 0x27d   : > { %9755 = vmatprep.mubr.bf16.mxu1 %v8740_v18  ;;  %9771 = vmatprep.subr.bf16.mxu1 %v10446_v0  ;;  %v8741_v12 = vcombine.low %v5122_v8, %v5132_v27  ;;  %v8751_v55 = vrot.slane %v5378_v44, 9  ;;  %v5446_v53 = vrot.slane %v5385_v40, 5  ;;  %v8752_v23 = vrot.slane %v5381_v24, 9  ;;  %v5397_v1 = vld [vmem:[#allocation3 + $0x58] sm:$0xf]  ;;  %v10454_v40 = vld [vmem:[%s12608_s3 + $0xf0] sm:$0xff]  }
 0x27e   : > { %v5436_v60 = vsel %vm10752_vm5, %v5434_v6, %v5435_v46  ;;  %v5443_v50 = vsel %vm10752_vm5, %v5441_v34, %v5442_v25  ;;  %v5453_v58 = vrot.slane %v5388_v2, 5  ;;  %v5449_v57 = vrot.slane %v5386_v52, 5  ;;  %v5393_v4 = vld [vmem:[#allocation3 + $0x48] sm:$0xe]  ;;  %v5398_v6 = vld [vmem:[#allocation3 + $0x5c] sm:$0x1] }
 0x27f   : > { %9756 = vmatmul.mubr.bf16.gmra.mrb[32].mxu1 %v8741_v12  ;;  %v5433_v59 = vsel %vm10752_vm5, %v8751_v55, %v5432_v29  ;;  %v5440_v9 = vsel %vm10752_vm5, %v8752_v23, %v5439_v51  ;;  %v5448_v22 = vrot.slane %v5446_v53, 4  ;;  %v5456_v10 = vrot.slane %v5389_v15, 5  ;;  %v10452_v29 = vld [vmem:[%s12608_s3 + $0xe0] sm:$0xff]   ;;  %v10456_v55 = vld [vmem:[%s12608_s3 + $0xf8] sm:$0xff]  }
 0x280   : > { %9772 = vmatpush3.bf16.msra.mxu1 %v10446_v0  ;;  %9775 = vmatprep.mubr.bf16.mxu1 %v8774_v5  ;;  %v8775_v7 = vcombine.low %v5433_v59, %v5436_v60  ;;  %v8776_v16 = vcombine.low %v5440_v9, %v5443_v50  ;;  %v5455_v13 = vrot.slane %v5453_v58, 4  ;;  %v8753_v54 = vrot.slane %v5384_v43, 9  ;;  %v10453_v5 = vld [vmem:[%s12608_s3 + $0xe8] sm:$0xff]   ;;  %v10457_v23 = vld [vmem:[#allocation3 + $0x18] sm:$0xff]   ;;  %v5997_v59 = vld [vmem:[#allocation3 + $0x10] sm:$0xf] }
 0x281   : > { %9773 = vmatprep.subr.bf16.mxu1 %v10447_v48  ;;  %v5450_v3 = vsel %vm10752_vm5, %v5448_v22, %v5449_v57  ;;  %v5460_v35 = vrot.slane %v5391_v28, 5  ;;  %v8754_v49 = vrot.slane %v5387_v39, 9  ;;  %v5467_v26 = vrot.slane %v5394_v62, 5  ;;  %v10455_v60 = vld [vmem:[#allocation3 + $0xc] sm:$0xff]   ;;  %v6000_v22 = vld [vmem:[#allocation3 + $0x1c] sm:$0xf] }
 0x282   : > { %v5457_v38 = vsel %vm10752_vm5, %v5455_v13, %v5456_v10  ;;  %v5447_v0 = vsel %vm10752_vm5, %v8753_v54, %v5446_v53  ;;  %v5463_v41 = vrot.slane %v5392_v21, 5  ;;  %v5470_v42 = vrot.slane %v5395_v17, 5  ;;  %v10458_v53 = vld [vmem:[%s12608_s3 + $0x100] sm:$0xff]   ;;  %v10460_v50 = vld [vmem:[%s12608_s3 + $0x108] sm:$0xff]   ;;  %v10462_v9 = vld [vmem:[%s12608_s3 + $0x110] sm:$0xff]  }
 0x283   : > { %v8777_v20 = vcombine.low %v5447_v0, %v5450_v3  ;;  %v5454_v32 = vsel %vm10752_vm5, %v8754_v49, %v5453_v58  ;;  %v5462_v47 = vrot.slane %v5460_v35, 4  ;;  %v5469_v18 = vrot.slane %v5467_v26, 4  ;;  %v10459_v58 = vld [vmem:[#allocation3 + $0x24] sm:$0xff]   ;;  %v10461_v39 = vld [vmem:[#allocation3 + $0x30] sm:$0xff]   ;;  %v10464_v15 = vld [vmem:[%s12608_s3 + $0x118] sm:$0xff]  }
 0x284   : > { %9774 = vmatpush3.bf16.msra.mxu1 %v10447_v48  ;;  %v8778_v14 = vcombine.low %v5454_v32, %v5457_v38  ;;  %v8755_v56 = vrot.slane %v5390_v63, 9  ;;  %v5474_v51 = vrot.slane %v5397_v1, 5  ;;  %v8756_v8 = vrot.slane %v5393_v4, 9  ;;  %v5999_v57 = vld [vmem:[#allocation3 + $0x18] sm:$0xf]  ;;  %v10463_v62 = vld [vmem:[#allocation3 + $0x3c] sm:$0xff]  }
 0x285   : > { %9791 = vmatprep.subr.bf16.mxu1 %v10448_v45  ;;  %v5464_v48 = vsel %vm10752_vm5, %v5462_v47, %v5463_v41  ;;  %v5471_v27 = vsel %vm10752_vm5, %v5469_v18, %v5470_v42  ;;  %v5477_v34 = vrot.slane %v5398_v6, 5  ;;  %v6034_v43 = vshrl.u32 %v5997_v59, 16  ;;  %v5998_v49 = vld [vmem:[#allocation3 + $0x14] sm:$0x1]  ;;  %v10466_v0 = vld [vmem:[%s12608_s3 + $0x120] sm:$0xff]   ;;  %v10465_v42 = vld [vmem:[#allocation3 + $0x48] sm:$0xff]  }
 0x286   : > { %v5461_v12 = vsel %vm10752_vm5, %v8755_v56, %v5460_v35  ;;  %v5468_v19 = vsel %vm10752_vm5, %v8756_v8, %v5467_v26  ;;  %v5476_v44 = vrot.slane %v5474_v51, 4  ;;  %v6058_v10 = vshrl.u32 %v6000_v22, 16  ;;  %v6003_v35 = vld [vmem:[#allocation3 + $0x28] sm:$0xf]  ;;  %v6001_v32 = vld [vmem:[#allocation3 + $0x20] sm:$0x1] }
 0x287   : > { %9776 = vmatmul.mubr.bf16.vlgmr.msra.gmra.mrb[20].mxu1 %v8775_v7  ;;  %v8779_v37 = vcombine.low %v5461_v12, %v5464_v48  ;;  %v8780_v11 = vcombine.low %v5468_v19, %v5471_v27  ;;  %v5996_v7 = vld [vmem:[#allocation3 + $0xc] sm:$0xf]  ;;  %v6036_v28 = vrot.slane %v6034_v43, 4  ;;  %v6045_v38 = vshrl.u32 %v5999_v57, 16  ;;  %v10467_v8 = vld [vmem:[#allocation3 + $0x54] sm:$0xff]  }
 0x288   : > { %9779 = vmatprep.mubr.bf16.mxu1 %v8776_v16  ;;  %9792 = vmatpush3.bf16.msra.mxu1 %v10448_v45  ;;  %v5396_v45 = vld [vmem:[#allocation3 + $0x54] sm:$0xe]  ;;  %v5478_v24 = vsel %vm10752_vm5, %v5476_v44, %v5477_v34  ;;  %v6021_v52 = vshrl.u32 %v5996_v7, 16  ;;  %v6024_v16 = vshll.u32 %v5996_v7, 16  ;;  %v6048_v26 = vshll.u32 %v5999_v57, 16  ;;  %v10468_v56 = vld [vmem:[%s12608_s3 + $0x128] sm:$0xff]  }
 0x289   : > { %9793 = vmatprep.subr.bf16.mxu1 %v10449_v30  ;;  %v8757_v46 = vrot.slane %v5396_v45, 9  ;;  %v6060_v21 = vrot.slane %v6058_v10, 4  ;;  %v6082_v47 = vshrl.u32 %v6003_v35, 16  ;;  %v6040_v18 = vshll.u32 %v5998_v49, 16  ;;  %v6006_v6 = vld [vmem:[#allocation3 + $0x34] sm:$0xf] }
 0x28a   : > { %v6023_v54 = vrot.slane %v6021_v52, 4  ;;  %v6026_v3 = vrot.slane %v6024_v16, 5  ;;  %v6047_v1 = vrot.slane %v6045_v38, 4  ;;  %v6050_v41 = vrot.slane %v6048_v26, 5  ;;  %v6012_v38 = vld [vmem:[#allocation3 + $0x4c] sm:$0xf] }
 0x28b   : > { %v5475_v2 = vsel %vm10752_vm5, %v8757_v46, %v5474_v51  ;;  %v6064_v51 = vshll.u32 %v6001_v32, 16  ;;  %v6042_v19 = vrot.slane %v6040_v18, 5  ;;  %v10470_v46 = vld [vmem:[%s12608_s3 + $0x130] sm:$0xff]   ;;  %v6015_v32 = vld [vmem:[#allocation3 + $0x58] sm:$0xf] }
 0x28c   : > { %9794 = vmatpush3.bf16.msra.mxu1 %v10449_v30  ;;  %v8781_v25 = vcombine.low %v5475_v2, %v5478_v24  ;;  %v6030_v30 = vshll.u32 %v5997_v59, 16  ;;  %v6027_v17 = vor.u32 %v6026_v3, %v6023_v54  ;;  %v6051_v44 = vor.u32 %v6050_v41, %v6047_v1  ;;  %v6011_v18 = vld [vmem:[#allocation3 + $0x48] sm:$0xf] }
 0x28d   : > { %9795 = vmatprep.subr.bf16.mxu1 %v10450_v36  ;;  %v6066_v2 = vrot.slane %v6064_v51, 5  ;;  %v6174_v51 = vshll.u32 %v6015_v32, 16 }
 0x28e   : > { %v12222_v13 = vrot.slane %v6030_v30, 5  ;;  %v6052_v43 = vrot.slane %v6051_v44, 4 }
 0x28f   : > { %9780 = vmatmul.mubr.bf16.gmra.mrb[24].mxu1 %v8777_v20  ;;  %v6002_v20 = vld [vmem:[#allocation3 + $0x24] sm:$0xf] }
 0x290   : > { %9783 = vmatprep.mubr.bf16.mxu1 %v8778_v14  ;;  %9796 = vmatpush3.bf16.msra.mxu1 %v10450_v36  ;;  %v6054_v36 = vshll.u32 %v6000_v22, 16  ;;  %v6078_v14 = vshll.u32 %v6003_v35, 16  ;;  %v6069_v4 = vshrl.u32 %v6002_v20, 16  ;;  %v10469_v22 = vld [vmem:[#allocation3 + $0x60] sm:$0xff]  }
 0x291   : > { %9797 = vmatprep.subr.bf16.mxu1 %v10451_v61 }
 0x292   : > { %v12228_v63 = vrot.slane %v6054_v36, 5  ;;  %v12234_v12 = vrot.slane %v6078_v14, 5  ;;  %v6071_v45 = vrot.slane %v6069_v4, 4  ;;  %v6007_v14 = vld [vmem:[#allocation3 + $0x38] sm:$0x1] }
 0x293   : > { %v6010_v4 = vld [vmem:[#allocation3 + $0x44] sm:$0x1] }
 0x294   : > { %9798 = vmatpush3.bf16.msra.mxu1 %v10451_v61  ;;  %v6037_v61 = vor.u32 %v6036_v28, %v12222_v13  ;;  %v6061_v27 = vor.u32 %v6060_v21, %v12228_v63  ;;  %v6057_v26 = vsel %vm10655_vm2, %v6052_v43, %v12228_v63  ;;  %v6150_v63 = vshll.u32 %v6012_v38, 16 }
 0x295   : > { %9799 = vmatprep.subr.bf16.mxu1 %v10452_v29  ;;  %v6136_v44 = vshll.u32 %v6010_v4, 16 }
 0x296   : > { %v6038_v48 = vrot.slane %v6037_v61, 4 }
 0x297   : > { %9784 = vmatmul.mubr.bf16.gmra.mrb[28].mxu1 %v8779_v37  ;;  %v6084_v37 = vrot.slane %v6082_v47, 4 }
 0x298   : > { %9787 = vmatprep.mubr.bf16.mxu1 %v8780_v11  ;;  %9800 = vmatpush3.bf16.msra.mxu1 %v10452_v29  ;;  %v6072_v29 = vshll.u32 %v6002_v20, 16  ;;  %v6028_v11 = vrot.slane %v6027_v17, 4  ;;  %v6043_v24 = vsel %vm10655_vm2, %v6038_v48, %v6042_v19  ;;  %v6141_v19 = vshrl.u32 %v6011_v18, 16 }
 0x299   : > { %9801 = vmatprep.subr.bf16.mxu1 %v10453_v5 }
 0x29a   : > { %v6074_v34 = vrot.slane %v6072_v29, 5  ;;  %v6033_v30 = vsel %vm10655_vm2, %v6028_v11, %v12222_v13  ;;  %v6154_v29 = vshrl.u32 %v6012_v38, 16 }
 0x29c   : > { %9802 = vmatpush3.bf16.msra.mxu1 %v10453_v5  ;;  %v6005_v5 = vld [vmem:[#allocation3 + $0x30] sm:$0xf]  ;;  %v6075_v52 = vor.u32 %v6074_v34, %v6071_v45 }
 0x29d   : > { %9803 = vmatprep.subr.bf16.mxu1 %v10454_v40  ;;  %v6096_v59 = vshll.u32 %v6005_v5, 16 }
 0x29e   : > { %v6076_v61 = vrot.slane %v6075_v52, 4 }
 0x29f   : > { %9788 = vmatmul.mubr.bf16.gmra.mrb[32].mxu1 %v8781_v25  ;;  %v6004_v25 = vld [vmem:[#allocation3 + $0x2c] sm:$0x1]  ;;  %v6098_v3 = vrot.slane %v6096_v59, 5  ;;  %v6143_v59 = vrot.slane %v6141_v19, 4 }
 0x2a0   : > { %9804 = vmatpush3.bf16.msra.mxu1 %v10454_v40  ;;  %9807 = vmatprep.mubr.bf16.mxu1 %v10455_v60  ;;  %v6009_v40 = vld [vmem:[#allocation3 + $0x40] sm:$0xf]  ;;  %v6085_v60 = vor.u32 %v6084_v37, %v12234_v12  ;;  %v6088_v16 = vshll.u32 %v6004_v25, 16  ;;  %v6112_v37 = vshll.u32 %v6007_v14, 16 }
 0x2a1   : > { %9805 = vmatprep.subr.bf16.mxu1 %v10456_v55  ;;  %v6126_v7 = vshll.u32 %v6009_v40, 16 }
 0x2a2   : > { %v6086_v36 = vrot.slane %v6085_v60, 4  ;;  %v6090_v20 = vrot.slane %v6088_v16, 5  ;;  %v6017_v16 = vld [vmem:[#allocation3 + $0x60] sm:$0xf] }
 0x2a3   : > { %v12252_v35 = vrot.slane %v6126_v7, 5  ;;  %v6192_v38 = vshll.u32 %v6017_v16, 16 }
 0x2a4   : > { %9806 = vmatpush3.bf16.msra.mxu1 %v10456_v55  ;;  %v6062_v55 = vrot.slane %v6061_v27, 4  ;;  %v6091_v1 = vsel %vm10655_vm2, %v6086_v36, %v6090_v20  ;;  %v6081_v27 = vsel %vm10655_vm2, %v6076_v61, %v12234_v12 }
 0x2a5   : > { %9823 = vmatprep.subr.bf16.mxu1 %v10458_v53  ;;  %v6194_v4 = vrot.slane %v6192_v38, 5 }
 0x2a7   : > { %9808 = vmatmul.mubr.bf16.vlgmr.msra.gmra.mrb[20].mxu1 %v10457_v23  ;;  %v6106_v23 = vshrl.u32 %v6006_v6, 16 }
 0x2a8   : > { %9811 = vmatprep.mubr.bf16.mxu1 %v10459_v58  ;;  %9824 = vmatpush3.bf16.msra.mxu1 %v10458_v53  ;;  %v6102_v53 = vshll.u32 %v6006_v6, 16  ;;  %v6093_v58 = vshrl.u32 %v6005_v5, 16  ;;  %v6144_v5 = vshll.u32 %v6011_v18, 16  ;;  %v10473_v6 = vld [vmem:[%s12608_s3 + $0x148] sm:$0xff]  }
 0x2a9   : > { %9825 = vmatprep.subr.bf16.mxu1 %v10460_v50  ;;  %v6108_v54 = vrot.slane %v6106_v23, 4  ;;  %v6114_v23 = vrot.slane %v6112_v37, 5 }
 0x2aa   : > { %v12250_v10 = vrot.slane %v6102_v53, 5  ;;  %v6095_v13 = vrot.slane %v6093_v58, 4  ;;  %v6018_v53 = vld [vmem:[#allocation3 + $0x64] sm:$0xf]  ;;  %v6013_v58 = vld [vmem:[#allocation3 + $0x50] sm:$0x1] }
 0x2ab   : > { %v6146_v7 = vrot.slane %v6144_v5, 5 }
 0x2ac   : > { %9826 = vmatpush3.bf16.msra.mxu1 %v10460_v50  ;;  %v6008_v50 = vld [vmem:[#allocation3 + $0x3c] sm:$0xf]  ;;  %v6109_v41 = vor.u32 %v6108_v54, %v12250_v10 }
 0x2ad   : > { %9827 = vmatprep.subr.bf16.mxu1 %v10462_v9  ;;  %v6117_v28 = vshrl.u32 %v6008_v50, 16  ;;  %v6120_v57 = vshll.u32 %v6008_v50, 16  ;;  %v10474_v50 = vld [vmem:[%s12608_s3 + $0x150] sm:$0xff]  }
 0x2af   : > { %9812 = vmatmul.mubr.bf16.gmra.mrb[24].mxu1 %v10461_v39  ;;  %v8838_v39 = vcombine.low %v6033_v30, %v6043_v24  ;;  %v6119_v47 = vrot.slane %v6117_v28, 4  ;;  %v6122_v17 = vrot.slane %v6120_v57, 5  ;;  %v12270_v24 = vrot.slane %v6150_v63, 5  ;;  %v6455_v63 = vld [vmem:[#allocation3 + $0x10] sm:$0xf] }
 0x2b0   : > { %9815 = vmatprep.mubr.bf16.mxu1 %v10463_v62  ;;  %9828 = vmatpush3.bf16.msra.mxu1 %v10462_v9  ;;  %v6130_v9 = vshrl.u32 %v6009_v40, 16  ;;  %v6067_v62 = vsel %vm10655_vm2, %v6062_v55, %v6066_v2  ;;  %v8840_v40 = vcombine.low %v6081_v27, %v6091_v1  ;;  %v6156_v2 = vrot.slane %v6154_v29, 4 }
 0x2b1   : > { %9829 = vmatprep.subr.bf16.mxu1 %v10464_v15  ;;  %v8839_v21 = vcombine.low %v6057_v26, %v6067_v62  ;;  %v6123_v11 = vor.u32 %v6122_v17, %v6119_v47  ;;  %v12272_v55 = vrot.slane %v6174_v51, 5  ;;  %v6138_v30 = vrot.slane %v6136_v44, 5  ;;  %v10477_v44 = vld [vmem:[%s12608_s3 + $0x168] sm:$0xff]  }
 0x2b2   : > { %v6132_v49 = vrot.slane %v6130_v9, 4  ;;  %v6198_v28 = vshll.u32 %v6018_v53, 16  ;;  %v6202_v57 = vshrl.u32 %v6018_v53, 16  ;;  %v6504_v27 = vrot.slane %v6455_v63, 5 }
 0x2b3   : > { %v6124_v9 = vrot.slane %v6123_v11, 4 }
 0x2b4   : > { %9830 = vmatpush3.bf16.msra.mxu1 %v10464_v15  ;;  %v10471_v15 = vld [vmem:[%s12608_s3 + $0x138] sm:$0xff]   ;;  %v6133_v48 = vor.u32 %v6132_v49, %v12252_v35  ;;  %v6189_v49 = vshrl.u32 %v6017_v16, 16  ;;  %v6200_v14 = vrot.slane %v6198_v28, 5  ;;  %v6204_v47 = vrot.slane %v6202_v57, 4  ;;  %v6459_v16 = vld [vmem:[#allocation3 + $0x20] sm:$0x1] }
 0x2b5   : > { %9831 = vmatprep.subr.bf16.mxu1 %v10466_v0  ;;  %v6457_v28 = vld [vmem:[#allocation3 + $0x18] sm:$0xe] }
 0x2b6   : > { %v6134_v12 = vrot.slane %v6133_v48, 4  ;;  %v6205_v51 = vor.u32 %v6204_v47, %v6200_v14  ;;  %v8855_v38 = vrot.slane %v6457_v28, 9  ;;  %v10481_v47 = vld [vmem:[%s12608_s3 + $0x188] sm:$0xff]  }
 0x2b7   : > { %9816 = vmatmul.mubr.bf16.gmra.mrb[28].mxu1 %v10465_v42  ;;  %v6014_v42 = vld [vmem:[#allocation3 + $0x54] sm:$0xf] }
 0x2b8   : > { %9819 = vmatprep.mubr.bf16.mxu1 %v10467_v8  ;;  %9832 = vmatpush3.bf16.msra.mxu1 %v10466_v0  ;;  %v10472_v0 = vld [vmem:[%s12608_s3 + $0x140] sm:$0xff]   ;;  %v6178_v8 = vshrl.u32 %v6015_v32, 16  ;;  %v6165_v45 = vshrl.u32 %v6014_v42, 16  ;;  %v6168_v34 = vshll.u32 %v6014_v42, 16  ;;  %v6139_v36 = vsel %vm10655_vm2, %v6134_v12, %v6138_v30  ;;  %v6454_v12 = vld [vmem:[#allocation3 + $0xc] sm:$0xe] }
 0x2b9   : > { %9833 = vmatprep.subr.bf16.mxu1 %v10468_v56 }
 0x2ba   : > { %v6180_v60 = vrot.slane %v6178_v8, 4  ;;  %v6167_v43 = vrot.slane %v6165_v45, 4  ;;  %v6170_v52 = vrot.slane %v6168_v34, 5  ;;  %v6206_v34 = vrot.slane %v6205_v51, 4 }
 0x2bc   : > { %9834 = vmatpush3.bf16.msra.mxu1 %v10468_v56  ;;  %v6099_v56 = vor.u32 %v6098_v3, %v6095_v13  ;;  %v6181_v54 = vor.u32 %v6180_v60, %v12272_v55  ;;  %v6147_v13 = vor.u32 %v6146_v7, %v6143_v59  ;;  %v6160_v3 = vshll.u32 %v6013_v58, 16  ;;  %v6461_v60 = vld [vmem:[#allocation3 + $0x28] sm:$0xf] }
 0x2bd   : > { %9835 = vmatprep.subr.bf16.mxu1 %v10470_v46  ;;  %v6171_v61 = vor.u32 %v6170_v52, %v6167_v43  ;;  %v8854_v58 = vrot.slane %v6454_v12, 9  ;;  %v6518_v7 = vrot.slane %v6461_v60, 5  ;;  %v10479_v52 = vld [vmem:[%s12608_s3 + $0x178] sm:$0xff]   ;;  %v6476_v60 = vld [vmem:[#allocation3 + $0x64] sm:$0xf] }
 0x2be   : > { %v6100_v25 = vrot.slane %v6099_v56, 4  ;;  %v6182_v17 = vrot.slane %v6181_v54, 4  ;;  %v6148_v18 = vrot.slane %v6147_v13, 4  ;;  %v6162_v1 = vrot.slane %v6160_v3, 5  ;;  %v6019_v56 = vld [vmem:[#allocation3 + $0x68] sm:$0x1] }
 0x2bf   : > { %9820 = vmatmul.mubr.bf16.gmra.mrb[32].mxu1 %v10469_v22  ;;  %v6172_v29 = vrot.slane %v6171_v61, 4  ;;  %v6208_v5 = vshll.u32 %v6019_v56, 16  ;;  %v6505_v43 = vsel %vm10752_vm5, %v8854_v58, %v6504_v27  ;;  %v6520_v57 = vrot.slane %v6518_v7, 4  ;;  %v6460_v54 = vld [vmem:[#allocation3 + $0x24] sm:$0xe] }
 0x2c0   : > { %9836 = vmatpush3.bf16.msra.mxu1 %v10470_v46  ;;  %9839 = vmatprep.mubr.bf16.mxu1 %v8838_v39  ;;  %v6110_v46 = vrot.slane %v6109_v41, 4  ;;  %v6157_v39 = vor.u32 %v6156_v2, %v12270_v24  ;;  %v6105_v62 = vsel %vm10655_vm2, %v6100_v25, %v12250_v10  ;;  %v10475_v10 = vld [vmem:[%s12608_s3 + $0x158] sm:$0xff]   ;;  %v6191_v41 = vrot.slane %v6189_v49, 4  ;;  %v6467_v13 = vld [vmem:[#allocation3 + $0x40] sm:$0xf] }
 0x2c1   : > { %9837 = vmatprep.subr.bf16.mxu1 %v10471_v15  ;;  %v6153_v37 = vsel %vm10655_vm2, %v6148_v18, %v12270_v24  ;;  %v6177_v11 = vsel %vm10655_vm2, %v6172_v29, %v12272_v55  ;;  %v6458_v2 = vld [vmem:[#allocation3 + $0x1c] sm:$0xf]  ;;  %v6210_v25 = vrot.slane %v6208_v5, 5  ;;  %v10478_v55 = vld [vmem:[%s12608_s3 + $0x170] sm:$0xff]   ;;  %v10480_v3 = vld [vmem:[%s12608_s3 + $0x180] sm:$0xff]  }
 0x2c2   : > { %v6115_v22 = vsel %vm10655_vm2, %v6110_v46, %v6114_v23  ;;  %v6195_v19 = vor.u32 %v6194_v4, %v6191_v41  ;;  %v6506_v46 = vrot.slane %v6504_v27, 4  ;;  %v6468_v41 = vld [vmem:[#allocation3 + $0x44] sm:$0x1]  ;;  %v6463_v4 = vld [vmem:[#allocation3 + $0x30] sm:$0xe] }
 0x2c3   : > { %v8841_v26 = vcombine.low %v6105_v62, %v6115_v22  ;;  %v6211_v23 = vsel %vm10655_vm2, %v6206_v34, %v6210_v25  ;;  %v6464_v62 = vld [vmem:[#allocation3 + $0x34] sm:$0xf]  ;;  %v6473_v56 = vld [vmem:[#allocation3 + $0x58] sm:$0xf]  ;;  %v6535_v51 = vrot.slane %v6468_v41, 5 }
 0x2c4   : > { %9838 = vmatpush3.bf16.msra.mxu1 %v10471_v15  ;;  %v6016_v15 = vld [vmem:[#allocation3 + $0x5c] sm:$0x1]  ;;  %v6196_v24 = vrot.slane %v6195_v19, 4  ;;  %v6469_v25 = vld [vmem:[#allocation3 + $0x48] sm:$0xe] }
 0x2c5   : > { %9855 = vmatprep.subr.bf16.mxu1 %v10472_v0  ;;  %v6184_v20 = vshll.u32 %v6016_v15, 16  ;;  %v6462_v15 = vld [vmem:[#allocation3 + $0x2c] sm:$0x1]  ;;  %v10483_v34 = vld [vmem:[%s12608_s3 + $0x198] sm:$0xff]   ;;  %v8859_v58 = vrot.slane %v6469_v25, 9 }
 0x2c6   : > { %v6521_v49 = vrot.slane %v6462_v15, 5 }
 0x2c7   : > { %9840 = vmatmul.mubr.bf16.vlgmr.msra.gmra.mrb[20].mxu1 %v8839_v21  ;;  %v6158_v21 = vrot.slane %v6157_v39, 4  ;;  %v6186_v42 = vrot.slane %v6184_v20, 5  ;;  %v6532_v20 = vrot.slane %v6467_v13, 5 }
 0x2c8   : > { %9843 = vmatprep.mubr.bf16.mxu1 %v8840_v40  ;;  %9856 = vmatpush3.bf16.msra.mxu1 %v10472_v0  ;;  %v6129_v0 = vsel %vm10655_vm2, %v6124_v9, %v12252_v35  ;;  %v10476_v35 = vld [vmem:[%s12608_s3 + $0x160] sm:$0xff]   ;;  %v6456_v40 = vld [vmem:[#allocation3 + $0x14] sm:$0x1]  ;;  %v6201_v9 = vsel %vm10655_vm2, %v6196_v24, %v6200_v14  ;;  %v6522_v61 = vsel %vm10752_vm5, %v6520_v57, %v6521_v49  ;;  %v6474_v24 = vld [vmem:[#allocation3 + $0x5c] sm:$0x1] }
 0x2c9   : > { %9857 = vmatprep.subr.bf16.mxu1 %v10473_v6  ;;  %v8842_v32 = vcombine.low %v6129_v0, %v6139_v36  ;;  %v6163_v48 = vsel %vm10655_vm2, %v6158_v21, %v6162_v1  ;;  %v6187_v8 = vsel %vm10655_vm2, %v6182_v17, %v6186_v42  ;;  %v6507_v53 = vrot.slane %v6456_v40, 5  ;;  %v6465_v17 = vld [vmem:[#allocation3 + $0x38] sm:$0x1]  ;;  %v6466_v42 = vld [vmem:[#allocation3 + $0x3c] sm:$0xe] }
 0x2ca   : > { %v8844_v45 = vcombine.low %v6177_v11, %v6187_v8  ;;  %v8845_v30 = vcombine.low %v6201_v9, %v6211_v23  ;;  %v6514_v36 = vrot.slane %v6459_v16, 5  ;;  %v6525_v0 = vrot.slane %v6464_v62, 5  ;;  %v6471_v40 = vld [vmem:[#allocation3 + $0x50] sm:$0x1]  ;;  %v10484_v23 = vld [vmem:[%s12608_s3 + $0x1a0] sm:$0xff]  }
 0x2cb   : > { %v6508_v59 = vsel %vm10752_vm5, %v6506_v46, %v6507_v53  ;;  %v6534_v63 = vrot.slane %v6532_v20, 4  ;;  %v6528_v29 = vrot.slane %v6465_v17, 5  ;;  %v8857_v8 = vrot.slane %v6463_v4, 9  ;;  %v6472_v53 = vld [vmem:[#allocation3 + $0x54] sm:$0xe]  ;;  %v10493_v4 = vld [vmem:[#allocation3 + $0x3c] sm:$0xff]  }
 0x2cc   : > { %9858 = vmatpush3.bf16.msra.mxu1 %v10473_v6  ;;  %v8843_v6 = vcombine.low %v6153_v37, %v6163_v48  ;;  %v8878_v22 = vcombine.low %v6505_v43, %v6508_v59  ;;  %v6527_v1 = vrot.slane %v6525_v0, 4  ;;  %v10482_v48 = vld [vmem:[%s12608_s3 + $0x190] sm:$0xff]   ;;  %v8858_v19 = vrot.slane %v6466_v42, 9  ;;  %v6475_v57 = vld [vmem:[#allocation3 + $0x60] sm:$0xe] }
 0x2cd   : > { %9859 = vmatprep.subr.bf16.mxu1 %v10474_v50  ;;  %v6536_v5 = vsel %vm10752_vm5, %v6534_v63, %v6535_v51  ;;  %v6526_v11 = vsel %vm10752_vm5, %v8857_v8, %v6525_v0  ;;  %v8860_v9 = vrot.slane %v6472_v53, 9  ;;  %v10490_v0 = vld [vmem:[%s12608_s3 + $0x1c0] sm:$0xff]   ;;  %v10496_v63 = vld [vmem:[%s12608_s3 + $0x1d8] sm:$0xff]   ;;  %v10495_v51 = vld [vmem:[#allocation3 + $0x48] sm:$0xff]  }
 0x2ce   : > { %v6529_v27 = vsel %vm10752_vm5, %v6527_v1, %v6528_v29  ;;  %v7078_v42 = vld [vmem:[#allocation3 + $0x24] sm:$0xf] }
 0x2cf   : > { %9844 = vmatmul.mubr.bf16.gmra.mrb[24].mxu1 %v8841_v26 }
 0x2d0   : > { %9847 = vmatprep.mubr.bf16.mxu1 %v8842_v32  ;;  %9860 = vmatpush3.bf16.msra.mxu1 %v10474_v50  ;;  %v6511_v50 = vrot.slane %v6458_v2, 5 }
 0x2d1   : > { %9861 = vmatprep.subr.bf16.mxu1 %v10475_v10 }
 0x2d2   : > { %v6513_v39 = vrot.slane %v6511_v50, 4  ;;  %v6512_v32 = vsel %vm10752_vm5, %v8855_v38, %v6511_v50  ;;  %v6549_v50 = vrot.slane %v6474_v24, 5  ;;  %v10488_v38 = vld [vmem:[%s12608_s3 + $0x1b8] sm:$0xff]  }
 0x2d4   : > { %9862 = vmatpush3.bf16.msra.mxu1 %v10475_v10  ;;  %v6515_v26 = vsel %vm10752_vm5, %v6513_v39, %v6514_v36  ;;  %v8856_v10 = vrot.slane %v6460_v54, 9  ;;  %v6477_v39 = vld [vmem:[#allocation3 + $0x68] sm:$0x1]  ;;  %v10486_v36 = vld [vmem:[%s12608_s3 + $0x1b0] sm:$0xff]   ;;  %v8861_v54 = vrot.slane %v6475_v57, 9 }
 0x2d5   : > { %9863 = vmatprep.subr.bf16.mxu1 %v10476_v35  ;;  %v8879_v21 = vcombine.low %v6512_v32, %v6515_v26  ;;  %v6556_v62 = vrot.slane %v6477_v39, 5  ;;  %v10487_v26 = vld [vmem:[#allocation3 + $0x18] sm:$0xff]   ;;  %v7085_v39 = vld [vmem:[#allocation3 + $0x40] sm:$0xf] }
 0x2d6   : > { %v6519_v14 = vsel %vm10752_vm5, %v8856_v10, %v6518_v7  ;;  %v6553_v7 = vrot.slane %v6476_v60, 5  ;;  %v10489_v10 = vld [vmem:[#allocation3 + $0x24] sm:$0xff]   ;;  %v7076_v32 = vld [vmem:[#allocation3 + $0x1c] sm:$0xf] }
 0x2d7   : > { %9848 = vmatmul.mubr.bf16.gmra.mrb[28].mxu1 %v8843_v6  ;;  %v8880_v18 = vcombine.low %v6519_v14, %v6522_v61  ;;  %v6546_v6 = vrot.slane %v6473_v56, 5  ;;  %v10492_v61 = vld [vmem:[%s12608_s3 + $0x1c8] sm:$0xff]   ;;  %v10494_v14 = vld [vmem:[%s12608_s3 + $0x1d0] sm:$0xff]   ;;  %v7113_v17 = vshrl.u32 %v7076_v32, 16 }
 0x2d8   : > { %9851 = vmatprep.mubr.bf16.mxu1 %v8844_v45  ;;  %9864 = vmatpush3.bf16.msra.mxu1 %v10476_v35  ;;  %v6470_v35 = vld [vmem:[#allocation3 + $0x4c] sm:$0xf]  ;;  %v6533_v45 = vsel %vm10752_vm5, %v8858_v19, %v6532_v20  ;;  %v6555_v28 = vrot.slane %v6553_v7, 4  ;;  %v10491_v20 = vld [vmem:[#allocation3 + $0x30] sm:$0xff]   ;;  %v7124_v19 = vshrl.u32 %v7078_v42, 16 }
 0x2d9   : > { %9865 = vmatprep.subr.bf16.mxu1 %v10477_v44  ;;  %v6539_v37 = vrot.slane %v6470_v35, 5  ;;  %v8882_v46 = vcombine.low %v6533_v45, %v6536_v5  ;;  %v6548_v12 = vrot.slane %v6546_v6, 4  ;;  %v6547_v16 = vsel %vm10752_vm5, %v8860_v9, %v6546_v6  ;;  %v7082_v6 = vld [vmem:[#allocation3 + $0x34] sm:$0xf]  ;;  %v10499_v9 = vld [vmem:[#allocation3 + $0x60] sm:$0xff]  }
 0x2da   : > { %v6557_v13 = vsel %vm10752_vm5, %v6555_v28, %v6556_v62  ;;  %v7115_v29 = vrot.slane %v7113_v17, 4  ;;  %v7127_v5 = vshll.u32 %v7078_v42, 16  ;;  %v7157_v24 = vshll.u32 %v7082_v6, 16 }
 0x2db   : > { %v6541_v2 = vrot.slane %v6539_v37, 4  ;;  %v6540_v43 = vsel %vm10752_vm5, %v8859_v58, %v6539_v37  ;;  %v7077_v37 = vld [vmem:[#allocation3 + $0x20] sm:$0x1]  ;;  %v7161_v25 = vshrl.u32 %v7082_v6, 16  ;;  %v7126_v60 = vrot.slane %v7124_v19, 4  ;;  %v10500_v58 = vld [vmem:[%s12608_s3 + $0x1e8] sm:$0xff]  }
 0x2dc   : > { %9866 = vmatpush3.bf16.msra.mxu1 %v10477_v44  ;;  %v8881_v44 = vcombine.low %v6526_v11, %v6529_v27  ;;  %v10498_v11 = vld [vmem:[%s12608_s3 + $0x1e0] sm:$0xff]  }
 0x2dd   : > { %9867 = vmatprep.subr.bf16.mxu1 %v10478_v55 }
 0x2df   : > { %9852 = vmatmul.mubr.bf16.gmra.mrb[32].mxu1 %v8845_v30  ;;  %v6550_v30 = vsel %vm10752_vm5, %v6548_v12, %v6549_v50  ;;  %v7080_v12 = vld [vmem:[#allocation3 + $0x2c] sm:$0x1]  ;;  %v10497_v50 = vld [vmem:[#allocation3 + $0x54] sm:$0xff]  }
 0x2e0   : > { %9868 = vmatpush3.bf16.msra.mxu1 %v10478_v55  ;;  %9871 = vmatprep.mubr.bf16.mxu1 %v8878_v22  ;;  %v6542_v55 = vrot.slane %v6471_v40, 5  ;;  %v10485_v22 = vld [vmem:[%s12608_s3 + $0x1a8] sm:$0xff]   ;;  %v8884_v15 = vcombine.low %v6547_v16, %v6550_v30  ;;  %v7081_v40 = vld [vmem:[#allocation3 + $0x30] sm:$0xf]  ;;  %v7084_v30 = vld [vmem:[#allocation3 + $0x3c] sm:$0xf] }
 0x2e1   : > { %9869 = vmatprep.subr.bf16.mxu1 %v10479_v52  ;;  %v7148_v53 = vshrl.u32 %v7081_v40, 16  ;;  %v12398_v16 = vrot.slane %v7157_v24, 5 }
 0x2e2   : > { %v6543_v59 = vsel %vm10752_vm5, %v6541_v2, %v6542_v55  ;;  %v7119_v2 = vshll.u32 %v7077_v37, 16  ;;  %v7129_v55 = vrot.slane %v7127_v5, 5  ;;  %v7091_v5 = vld [vmem:[#allocation3 + $0x58] sm:$0xf] }
 0x2e3   : > { %v7150_v57 = vrot.slane %v7148_v53, 4  ;;  %v7089_v53 = vld [vmem:[#allocation3 + $0x50] sm:$0x1] }
 0x2e4   : > { %9870 = vmatpush3.bf16.msra.mxu1 %v10479_v52  ;;  %v8883_v52 = vcombine.low %v6540_v43, %v6543_v59  ;;  %v7121_v43 = vrot.slane %v7119_v2, 5  ;;  %v7130_v28 = vor.u32 %v7129_v55, %v7126_v60 }
 0x2e5   : > { %9887 = vmatprep.subr.bf16.mxu1 %v10480_v3 }
 0x2e6   : > { %v7131_v17 = vrot.slane %v7130_v28, 4  ;;  %v7215_v28 = vshll.u32 %v7089_v53, 16 }
 0x2e7   : > { %9872 = vmatmul.mubr.bf16.vlgmr.msra.gmra.mrb[20].mxu1 %v8879_v21  ;;  %v7075_v21 = vld [vmem:[#allocation3 + $0x18] sm:$0xf] }
 0x2e8   : > { %9875 = vmatprep.mubr.bf16.mxu1 %v8880_v18  ;;  %9888 = vmatpush3.bf16.msra.mxu1 %v10480_v3  ;;  %v6554_v3 = vsel %vm10752_vm5, %v8861_v54, %v6553_v7  ;;  %v7079_v18 = vld [vmem:[#allocation3 + $0x28] sm:$0xf]  ;;  %v7100_v1 = vshrl.u32 %v7075_v21, 16  ;;  %v7103_v41 = vshll.u32 %v7075_v21, 16  ;;  %v10502_v54 = vld [vmem:[%s12608_s3 + $0x1f0] sm:$0xff]  }
 0x2e9   : > { %9889 = vmatprep.subr.bf16.mxu1 %v10481_v47  ;;  %v8885_v49 = vcombine.low %v6554_v3, %v6557_v13  ;;  %v7133_v56 = vshll.u32 %v7079_v18, 16 }
 0x2ea   : > { %v7102_v8 = vrot.slane %v7100_v1, 4  ;;  %v7105_v27 = vrot.slane %v7103_v41, 5  ;;  %v10501_v41 = vld [vmem:[#allocation3 + $0x6c] sm:$0xff]  }
 0x2eb   : > { %v12392_v45 = vrot.slane %v7133_v56, 5 }
 0x2ec   : > { %9890 = vmatpush3.bf16.msra.mxu1 %v10481_v47  ;;  %v7109_v47 = vshll.u32 %v7076_v32, 16 }
 0x2ed   : > { %9891 = vmatprep.subr.bf16.mxu1 %v10482_v48  ;;  %v7136_v6 = vsel %vm10655_vm2, %v7131_v17, %v12392_v45  ;;  %v7217_v17 = vrot.slane %v7215_v28, 5  ;;  %v10509_v28 = vld [vmem:[%s12608_s3 + $0x228] sm:$0xff]  }
 0x2ee   : > { %v12386_v35 = vrot.slane %v7109_v47, 5 }
 0x2ef   : > { %9876 = vmatmul.mubr.bf16.gmra.mrb[24].mxu1 %v8881_v44 }
 0x2f0   : > { %9879 = vmatprep.mubr.bf16.mxu1 %v8882_v46  ;;  %9892 = vmatpush3.bf16.msra.mxu1 %v10482_v48  ;;  %v7137_v48 = vshrl.u32 %v7079_v18, 16  ;;  %v7116_v44 = vor.u32 %v7115_v29, %v12386_v35  ;;  %v7106_v46 = vor.u32 %v7105_v27, %v7102_v8 }
 0x2f1   : > { %9893 = vmatprep.subr.bf16.mxu1 %v10483_v34 }
 0x2f2   : > { %v7117_v59 = vrot.slane %v7116_v44, 4  ;;  %v7086_v44 = vld [vmem:[#allocation3 + $0x44] sm:$0x1] }
 0x2f4   : > { %9894 = vmatpush3.bf16.msra.mxu1 %v10483_v34  ;;  %v7139_v34 = vrot.slane %v7137_v48, 4  ;;  %v7122_v13 = vsel %vm10655_vm2, %v7117_v59, %v7121_v43  ;;  %v7191_v43 = vshll.u32 %v7086_v44, 16 }
 0x2f5   : > { %9895 = vmatprep.subr.bf16.mxu1 %v10484_v23 }
 0x2f6   : > { %v7140_v7 = vor.u32 %v7139_v34, %v12392_v45  ;;  %v7094_v34 = vld [vmem:[#allocation3 + $0x64] sm:$0xf]  ;;  %v7093_v45 = vld [vmem:[#allocation3 + $0x60] sm:$0xf] }
 0x2f7   : > { %9880 = vmatmul.mubr.bf16.gmra.mrb[28].mxu1 %v8883_v52  ;;  %v7143_v52 = vshll.u32 %v7080_v12, 16  ;;  %v7090_v12 = vld [vmem:[#allocation3 + $0x54] sm:$0xf] }
 0x2f8   : > { %9883 = vmatprep.mubr.bf16.mxu1 %v8884_v15  ;;  %9896 = vmatpush3.bf16.msra.mxu1 %v10484_v23  ;;  %v7151_v23 = vshll.u32 %v7081_v40, 16  ;;  %v7107_v15 = vrot.slane %v7106_v46, 4  ;;  %v7141_v3 = vrot.slane %v7140_v7, 4  ;;  %v10504_v46 = vld [vmem:[%s12608_s3 + $0x200] sm:$0xff]   ;;  %v7253_v7 = vshll.u32 %v7094_v34, 16 }
 0x2f9   : > { %9897 = vmatprep.subr.bf16.mxu1 %v10485_v22 }
 0x2fa   : > { %v7153_v62 = vrot.slane %v7151_v23, 5  ;;  %v7112_v47 = vsel %vm10655_vm2, %v7107_v15, %v12386_v35  ;;  %v7229_v23 = vshll.u32 %v7091_v5, 16 }
 0x2fc   : > { %9898 = vmatpush3.bf16.msra.mxu1 %v10485_v22  ;;  %v7163_v22 = vrot.slane %v7161_v25, 4  ;;  %v7154_v18 = vor.u32 %v7153_v62, %v7150_v57  ;;  %v7244_v57 = vshrl.u32 %v7093_v45, 16  ;;  %v7247_v62 = vshll.u32 %v7093_v45, 16 }
 0x2fd   : > { %9899 = vmatprep.subr.bf16.mxu1 %v10486_v36 }
 0x2fe   : > { %v7164_v32 = vor.u32 %v7163_v22, %v12398_v16  ;;  %v7223_v22 = vshll.u32 %v7090_v12, 16 }
 0x2ff   : > { %9884 = vmatmul.mubr.bf16.gmra.mrb[32].mxu1 %v8885_v49  ;;  %v7083_v49 = vld [vmem:[#allocation3 + $0x38] sm:$0x1] }
 0x300   : > { %9900 = vmatpush3.bf16.msra.mxu1 %v10486_v36  ;;  %9903 = vmatprep.mubr.bf16.mxu1 %v10487_v26  ;;  %v7088_v36 = vld [vmem:[#allocation3 + $0x4c] sm:$0xf]  ;;  %v7175_v26 = vshll.u32 %v7084_v30, 16  ;;  %v7167_v1 = vshll.u32 %v7083_v49, 16  ;;  %v7165_v27 = vrot.slane %v7164_v32, 4  ;;  %v7225_v32 = vrot.slane %v7223_v22, 5 }
 0x301   : > { %9901 = vmatprep.subr.bf16.mxu1 %v10488_v38  ;;  %v7205_v21 = vshll.u32 %v7088_v36, 16 }
 0x302   : > { %v7169_v2 = vrot.slane %v7167_v1, 5  ;;  %v7249_v1 = vrot.slane %v7247_v62, 5 }
 0x303   : > { %v12416_v37 = vrot.slane %v7205_v21, 5  ;;  %v7096_v21 = vld [vmem:[#allocation3 + $0x6c] sm:$0xf] }
 0x304   : > { %9902 = vmatpush3.bf16.msra.mxu1 %v10488_v38  ;;  %v7172_v38 = vshrl.u32 %v7084_v30, 16 }
 0x305   : > { %9919 = vmatprep.subr.bf16.mxu1 %v10490_v0 }
 0x306   : > { %v7174_v48 = vrot.slane %v7172_v38, 4  ;;  %v7092_v38 = vld [vmem:[#allocation3 + $0x5c] sm:$0x1] }
 0x307   : > { %9904 = vmatmul.mubr.bf16.vlgmr.msra.gmra.mrb[20].mxu1 %v10489_v10  ;;  %v7185_v10 = vshrl.u32 %v7085_v39, 16 }
 0x308   : > { %9907 = vmatprep.mubr.bf16.mxu1 %v10491_v20  ;;  %9920 = vmatpush3.bf16.msra.mxu1 %v10490_v0  ;;  %v7181_v0 = vshll.u32 %v7085_v39, 16  ;;  %v7145_v20 = vrot.slane %v7143_v52, 5  ;;  %v7220_v52 = vshrl.u32 %v7090_v12, 16  ;;  %v10505_v39 = vld [vmem:[%s12608_s3 + $0x208] sm:$0xff]  }
 0x309   : > { %9921 = vmatprep.subr.bf16.mxu1 %v10492_v61  ;;  %v7187_v35 = vrot.slane %v7185_v10, 4  ;;  %v7097_v10 = vld [vmem:[#allocation3 + $0x70] sm:$0xf] }
 0x30a   : > { %v7146_v29 = vsel %vm10655_vm2, %v7141_v3, %v7145_v20  ;;  %v12414_v8 = vrot.slane %v7181_v0, 5  ;;  %v7222_v20 = vrot.slane %v7220_v52, 4 }
 0x30b   : > { %v8943_v40 = vcombine.low %v7136_v6, %v7146_v29  ;;  %v7277_v29 = vshll.u32 %v7097_v10, 16 }
 0x30c   : > { %9922 = vmatpush3.bf16.msra.mxu1 %v10492_v61  ;;  %v7087_v61 = vld [vmem:[#allocation3 + $0x48] sm:$0xf]  ;;  %v7188_v55 = vor.u32 %v7187_v35, %v12414_v8  ;;  %v7226_v35 = vor.u32 %v7225_v32, %v7222_v20 }
 0x30d   : > { %9923 = vmatprep.subr.bf16.mxu1 %v10494_v14  ;;  %v7196_v42 = vshrl.u32 %v7087_v61, 16  ;;  %v7199_v56 = vshll.u32 %v7087_v61, 16  ;;  %v7193_v61 = vrot.slane %v7191_v43, 5 }
 0x30e   : > { %v7227_v12 = vrot.slane %v7226_v35, 4 }
 0x30f   : > { %9908 = vmatmul.mubr.bf16.gmra.mrb[24].mxu1 %v10493_v4  ;;  %v8942_v4 = vcombine.low %v7112_v47, %v7122_v13  ;;  %v7198_v24 = vrot.slane %v7196_v42, 4  ;;  %v7201_v25 = vrot.slane %v7199_v56, 5  ;;  %v12434_v13 = vrot.slane %v7229_v23, 5  ;;  %v7534_v23 = vld [vmem:[#allocation3 + $0x1c] sm:$0xf] }
 0x310   : > { %9911 = vmatprep.mubr.bf16.mxu1 %v10495_v51  ;;  %9924 = vmatpush3.bf16.msra.mxu1 %v10494_v14  ;;  %v7209_v14 = vshrl.u32 %v7088_v36, 16  ;;  %v7177_v51 = vrot.slane %v7175_v26, 5  ;;  %v12436_v26 = vrot.slane %v7253_v7, 5  ;;  %v7281_v42 = vshrl.u32 %v7097_v10, 16 }
 0x311   : > { %9925 = vmatprep.subr.bf16.mxu1 %v10496_v63  ;;  %v7202_v15 = vor.u32 %v7201_v25, %v7198_v24  ;;  %v7232_v43 = vsel %vm10655_vm2, %v7227_v12, %v12434_v13  ;;  %v7542_v12 = vld [vmem:[#allocation3 + $0x3c] sm:$0xe] }
 0x312   : > { %v7211_v19 = vrot.slane %v7209_v14, 4  ;;  %v7178_v60 = vor.u32 %v7177_v51, %v7174_v48  ;;  %v10506_v14 = vld [vmem:[%s12608_s3 + $0x210] sm:$0xff]   ;;  %v7283_v24 = vrot.slane %v7281_v42, 4 }
 0x313   : > { %v7203_v47 = vrot.slane %v7202_v15, 4 }
 0x314   : > { %9926 = vmatpush3.bf16.msra.mxu1 %v10496_v63  ;;  %v10503_v63 = vld [vmem:[%s12608_s3 + $0x1f8] sm:$0xff]   ;;  %v7212_v59 = vor.u32 %v7211_v19, %v12416_v37  ;;  %v7179_v49 = vrot.slane %v7178_v60, 4  ;;  %v7268_v19 = vshrl.u32 %v7096_v21, 16 }
 0x315   : > { %9927 = vmatprep.subr.bf16.mxu1 %v10498_v11 }
 0x316   : > { %v7184_v56 = vsel %vm10655_vm2, %v7179_v49, %v12414_v8  ;;  %v10507_v8 = vld [vmem:[%s12608_s3 + $0x218] sm:$0xff]  }
 0x317   : > { %9912 = vmatmul.mubr.bf16.gmra.mrb[28].mxu1 %v10497_v50  ;;  %v7233_v50 = vshrl.u32 %v7091_v5, 16  ;;  %v7271_v5 = vshll.u32 %v7096_v21, 16 }
 0x318   : > { %9915 = vmatprep.mubr.bf16.mxu1 %v10499_v9  ;;  %9928 = vmatpush3.bf16.msra.mxu1 %v10498_v11  ;;  %v7155_v11 = vrot.slane %v7154_v18, 4  ;;  %v7257_v9 = vshrl.u32 %v7094_v34, 16  ;;  %v7246_v18 = vrot.slane %v7244_v57, 4 }
 0x319   : > { %9929 = vmatprep.subr.bf16.mxu1 %v10500_v58  ;;  %v7235_v3 = vrot.slane %v7233_v50, 4  ;;  %v7273_v53 = vrot.slane %v7271_v5, 5 }
 0x31a   : > { %v7160_v30 = vsel %vm10655_vm2, %v7155_v11, %v12398_v16  ;;  %v7213_v16 = vrot.slane %v7212_v59, 4  ;;  %v7259_v0 = vrot.slane %v7257_v9, 4  ;;  %v7208_v11 = vsel %vm10655_vm2, %v7203_v47, %v12416_v37  ;;  %v10508_v37 = vld [vmem:[%s12608_s3 + $0x220] sm:$0xff]  }
 0x31b   : > { %v7250_v44 = vor.u32 %v7249_v1, %v7246_v18  ;;  %v10511_v18 = vld [vmem:[%s12608_s3 + $0x238] sm:$0xff]   ;;  %v7538_v1 = vld [vmem:[#allocation3 + $0x2c] sm:$0x1] }
 0x31c   : > { %9930 = vmatpush3.bf16.msra.mxu1 %v10500_v58  ;;  %v7170_v58 = vsel %vm10655_vm2, %v7165_v27, %v7169_v2  ;;  %v7218_v48 = vsel %vm10655_vm2, %v7213_v16, %v7217_v17  ;;  %v7260_v51 = vor.u32 %v7259_v0, %v12436_v26  ;;  %v7239_v27 = vshll.u32 %v7092_v38, 16  ;;  %v7533_v16 = vld [vmem:[#allocation3 + $0x18] sm:$0xe]  ;;  %v7540_v38 = vld [vmem:[#allocation3 + $0x34] sm:$0xf] }
 0x31d   : > { %9931 = vmatprep.subr.bf16.mxu1 %v10502_v54  ;;  %v8944_v36 = vcombine.low %v7160_v30, %v7170_v58  ;;  %v7279_v2 = vrot.slane %v7277_v29, 5  ;;  %v7251_v50 = vrot.slane %v7250_v44, 4  ;;  %v7098_v58 = vld [vmem:[#allocation3 + $0x74] sm:$0x1]  ;;  %v7583_v30 = vrot.slane %v7534_v23, 5 }
 0x31e   : > { %v7261_v25 = vrot.slane %v7260_v51, 4  ;;  %v7241_v60 = vrot.slane %v7239_v27, 5  ;;  %v7287_v22 = vshll.u32 %v7098_v58, 16  ;;  %v8958_v20 = vrot.slane %v7533_v16, 9  ;;  %v7536_v29 = vld [vmem:[#allocation3 + $0x24] sm:$0xe] }
 0x31f   : > { %9916 = vmatmul.mubr.bf16.gmra.mrb[32].mxu1 %v10501_v41  ;;  %v7284_v7 = vor.u32 %v7283_v24, %v7279_v2  ;;  %v7256_v15 = vsel %vm10655_vm2, %v7251_v50, %v12436_v26  ;;  %v10510_v26 = vld [vmem:[%s12608_s3 + $0x230] sm:$0xff]   ;;  %v7597_v21 = vrot.slane %v7540_v38, 5  ;;  %v7593_v31 = vrot.slane %v7538_v1, 5  ;;  %v7546_v51 = vld [vmem:[#allocation3 + $0x4c] sm:$0xf] }
 0x320   : > { %9932 = vmatpush3.bf16.msra.mxu1 %v10502_v54  ;;  %9935 = vmatprep.mubr.bf16.mxu1 %v8942_v4  ;;  %v7189_v54 = vrot.slane %v7188_v55, 4  ;;  %v7236_v4 = vor.u32 %v7235_v3, %v12434_v13  ;;  %v7270_v55 = vrot.slane %v7268_v19, 4  ;;  %v7537_v3 = vld [vmem:[#allocation3 + $0x28] sm:$0xf]  ;;  %v7289_v49 = vrot.slane %v7287_v22, 5 }
 0x321   : > { %9933 = vmatprep.subr.bf16.mxu1 %v10503_v63  ;;  %v7285_v62 = vrot.slane %v7284_v7, 4  ;;  %v7584_v17 = vsel %vm10752_vm5, %v8958_v20, %v7583_v30  ;;  %v7599_v42 = vrot.slane %v7597_v21, 4  ;;  %v8959_v27 = vrot.slane %v7536_v29, 9  ;;  %v7545_v23 = vld [vmem:[#allocation3 + $0x48] sm:$0xe] }
 0x322   : > { %v7194_v41 = vsel %vm10655_vm2, %v7189_v54, %v7193_v61  ;;  %v7274_v52 = vor.u32 %v7273_v53, %v7270_v55  ;;  %v7585_v54 = vrot.slane %v7583_v30, 4  ;;  %v7590_v61 = vrot.slane %v7537_v3, 5  ;;  %v7549_v55 = vld [vmem:[#allocation3 + $0x58] sm:$0xf]  ;;  %v9001_v29 = vld [vmem:[%s10638_s15 + $0x24] sm:$0xff]  }
 0x323   : > { %v8945_v6 = vcombine.low %v7184_v56, %v7194_v41  ;;  %v7290_v10 = vsel %vm10655_vm2, %v7285_v62, %v7289_v49  ;;  %v7543_v56 = vld [vmem:[#allocation3 + $0x40] sm:$0xf]  ;;  %v8962_v7 = vrot.slane %v7545_v23, 9  ;;  %v7548_v62 = vld [vmem:[#allocation3 + $0x54] sm:$0xe] }
 0x324   : > { %9934 = vmatpush3.bf16.msra.mxu1 %v10503_v63  ;;  %v7095_v63 = vld [vmem:[#allocation3 + $0x68] sm:$0x1]  ;;  %v7275_v13 = vrot.slane %v7274_v52, 4  ;;  %v7604_v5 = vrot.slane %v7543_v56, 5  ;;  %v7591_v44 = vsel %vm10752_vm5, %v8959_v27, %v7590_v61  ;;  %v8963_v16 = vrot.slane %v7548_v62, 9 }
 0x325   : > { %9951 = vmatprep.subr.bf16.mxu1 %v10504_v46  ;;  %v7263_v34 = vshll.u32 %v7095_v63, 16  ;;  %v7541_v63 = vld [vmem:[#allocation3 + $0x38] sm:$0x1]  ;;  %v9003_v56 = vld [vmem:[%s10638_s15 + $0x2c] sm:$0x1] }
 0x326   : > { %v7600_v35 = vrot.slane %v7541_v63, 5  ;;  %v7606_v24 = vrot.slane %v7604_v5, 4 }
 0x327   : > { %9936 = vmatmul.mubr.bf16.vlgmr.msra.gmra.mrb[20].mxu1 %v8943_v40  ;;  %v8946_v40 = vcombine.low %v7208_v11, %v7218_v48  ;;  %v7265_v45 = vrot.slane %v7263_v34, 5  ;;  %v7539_v48 = vld [vmem:[#allocation3 + $0x30] sm:$0xe] }
 0x328   : > { %9939 = vmatprep.mubr.bf16.mxu1 %v8944_v36  ;;  %9952 = vmatpush3.bf16.msra.mxu1 %v10504_v46  ;;  %v7237_v46 = vrot.slane %v7236_v4, 4  ;;  %v7535_v36 = vld [vmem:[#allocation3 + $0x20] sm:$0x1]  ;;  %v7592_v4 = vrot.slane %v7590_v61, 4  ;;  %v7601_v11 = vsel %vm10752_vm5, %v7599_v42, %v7600_v35  ;;  %v9061_v42 = vld [vmem:[%s10638_s15 + $0x18] sm:$0xff]  }
 0x329   : > { %9953 = vmatprep.subr.bf16.mxu1 %v10505_v39  ;;  %v7266_v9 = vsel %vm10655_vm2, %v7261_v25, %v7265_v45  ;;  %v7586_v0 = vrot.slane %v7535_v36, 5  ;;  %v7547_v25 = vld [vmem:[#allocation3 + $0x50] sm:$0x1]  ;;  %v8961_v45 = vrot.slane %v7542_v12, 9  ;;  %v9047_v35 = vunpack.c.l.bf16 %v9061_v42 }
 0x32a   : > { %v7242_v59 = vsel %vm10655_vm2, %v7237_v46, %v7241_v60  ;;  %v8948_v57 = vcombine.low %v7256_v15, %v7266_v9  ;;  %v7594_v19 = vsel %vm10752_vm5, %v7592_v4, %v7593_v31  ;;  %v7544_v46 = vld [vmem:[#allocation3 + $0x44] sm:$0x1]  ;;  %v7614_v50 = vrot.slane %v7547_v25, 5 }
 0x32b   : > { %v7587_v32 = vsel %vm10752_vm5, %v7585_v54, %v7586_v0  ;;  %v8983_v34 = vcombine.low %v7591_v44, %v7594_v19  ;;  %v7607_v53 = vrot.slane %v7544_v46, 5  ;;  %v7555_v54 = vld [vmem:[#allocation3 + $0x70] sm:$0xf]  ;;  %v7906_v31 = vunpack.c.l.bf16 %v9001_v29  ;;  %v9007_v44 = vld [vmem:[%s10638_s15 + $0x3c] sm:$0xff]  }
 0x32c   : > { %9954 = vmatpush3.bf16.msra.mxu1 %v10505_v39  ;;  %v8947_v39 = vcombine.low %v7232_v43, %v7242_v59  ;;  %v8982_v41 = vcombine.low %v7584_v17, %v7587_v32  ;;  %v7618_v59 = vrot.slane %v7549_v55, 5  ;;  %v7605_v43 = vsel %vm10752_vm5, %v8961_v45, %v7604_v5  ;;  %v7554_v17 = vld [vmem:[#allocation3 + $0x6c] sm:$0xe]  ;;  %v9062_v46 = vld [vmem:[%s10638_s15 + $0x30] sm:$0xff]  }
 0x32d   : > { %9955 = vmatprep.subr.bf16.mxu1 %v10506_v14  ;;  %v7608_v58 = vsel %vm10752_vm5, %v7606_v24, %v7607_v53  ;;  %v8965_v1 = vrot.slane %v7554_v17, 9  ;;  %v9048_v27 = vunpack.c.h.bf16 %v9061_v42  ;;  %v7908_v19 = vunpack.c.l.bf16 %v9003_v56  ;;  %v9009_v24 = vld [vmem:[%s10638_s15 + $0x44] sm:$0x1]  ;;  %v9006_v53 = vld [vmem:[%s10638_s15 + $0x38] sm:$0x1] }
 0x32e   : > { %v8985_v52 = vcombine.low %v7605_v43, %v7608_v58  ;;  %v7619_v61 = vsel %vm10752_vm5, %v8963_v16, %v7618_v59  ;;  %v7913_v55 = vunpack.c.h.bf16 %v9007_v44  ;;  %v9051_v45 = vunpack.c.l.bf16 %v9062_v46  ;;  %v9013_v16 = vld [vmem:[%s10638_s15 + $0x54] sm:$0xff]  }
 0x32f   : > { %9940 = vmatmul.mubr.bf16.gmra.mrb[24].mxu1 %v8945_v6  ;;  %v8960_v6 = vrot.slane %v7539_v48, 9  ;;  %v7907_v48 = vunpack.c.h.bf16 %v9001_v29  ;;  %v9052_v58 = vunpack.c.h.bf16 %v9062_v46  ;;  %v7918_v17 = vunpack.c.l.bf16 %v9013_v16 }
 0x330   : > { %9943 = vmatprep.mubr.bf16.mxu1 %v8946_v40  ;;  %9956 = vmatpush3.bf16.msra.mxu1 %v10506_v14  ;;  %v7280_v14 = vsel %vm10655_vm2, %v7275_v13, %v7279_v2  ;;  %v7551_v13 = vld [vmem:[#allocation3 + $0x60] sm:$0xe]  ;;  %vm7951_vm2 = vcmask 1046528  }
 0x331   : > { %9957 = vmatprep.subr.bf16.mxu1 %v10507_v8  ;;  %v8949_v47 = vcombine.low %v7280_v14, %v7290_v10  ;;  %v7598_v40 = vsel %vm10752_vm5, %v8960_v6, %v7597_v21  ;;  %v8964_v0 = vrot.slane %v7551_v13, 9  ;;  %v7556_v21 = vld [vmem:[#allocation3 + $0x74] sm:$0x1]  ;;  %v7957_v6 = vrot.slane %v7906_v31, 1 }
 0x332   : > { %v8984_v2 = vcombine.low %v7598_v40, %v7601_v11  ;;  %v7958_v33 = vrot.slane %v7907_v48, 1  ;;  %v7952_v11 = vrot.slane %v9047_v35, 1  ;;  %v7960_v40 = vrot.slane %v7908_v19, 1 }
 0x333   : > { %v7962_v13 = vrot.slane %v9051_v45, 1 }
 0x334   : > { %9958 = vmatpush3.bf16.msra.mxu1 %v10507_v8  ;;  %v7611_v8 = vrot.slane %v7546_v51, 5  ;;  %v9000_v51 = vld [vmem:[%s10638_s15 + $0x20] sm:$0x1]  ;;  %v7959_v12 = vsel %vm7951_vm2, %v7957_v6, %v7958_v33 }
 0x335   : > { %9959 = vmatprep.subr.bf16.mxu1 %v10508_v37  ;;  %v7905_v5 = vunpack.c.l.bf16 %v9000_v51 }
 0x336   : > { %v7613_v60 = vrot.slane %v7611_v8, 4  ;;  %v7612_v22 = vsel %vm10752_vm5, %v8962_v7, %v7611_v8  ;;  %v7953_v8 = vrot.slane %v9048_v27, 1 }
 0x337   : > { %9944 = vmatmul.mubr.bf16.gmra.mrb[28].mxu1 %v8947_v39  ;;  %v7550_v39 = vld [vmem:[#allocation3 + $0x5c] sm:$0x1] }
 0x338   : > { %9947 = vmatprep.mubr.bf16.mxu1 %v8948_v57  ;;  %9960 = vmatpush3.bf16.msra.mxu1 %v10508_v37  ;;  %v7552_v37 = vld [vmem:[#allocation3 + $0x64] sm:$0xf]  ;;  %v7615_v9 = vsel %vm10752_vm5, %v7613_v60, %v7614_v50  ;;  %v7553_v57 = vld [vmem:[#allocation3 + $0x68] sm:$0x1]  ;;  %v7621_v3 = vrot.slane %v7550_v39, 5  ;;  %v7912_v60 = vunpack.c.l.bf16 %v9007_v44  ;;  %v7954_v50 = vsel %vm7951_vm2, %v7952_v11, %v7953_v8 }
 0x339   : > { %9961 = vmatprep.subr.bf16.mxu1 %v10509_v28  ;;  %v7625_v30 = vrot.slane %v7552_v37, 5  ;;  %v8986_v15 = vcombine.low %v7612_v22, %v7615_v9  ;;  %v7628_v49 = vrot.slane %v7553_v57, 5  ;;  %v7961_v9 = vsel %vm7951_vm2, %v7958_v33, %v7960_v40 }
 0x33a   : > { %v7967_v62 = vrot.slane %v7912_v60, 1 }
 0x33b   : > { %v7627_v36 = vrot.slane %v7625_v30, 4  ;;  %v7626_v32 = vsel %vm10752_vm5, %v8964_v0, %v7625_v30  ;;  %v7914_v30 = vunpack.c.l.bf16 %v9009_v24 }
 0x33c   : > { %9962 = vmatpush3.bf16.msra.mxu1 %v10509_v28  ;;  %v7620_v28 = vrot.slane %v7618_v59, 4 }
 0x33d   : > { %9963 = vmatprep.subr.bf16.mxu1 %v10510_v26  ;;  %v7629_v10 = vsel %vm10752_vm5, %v7627_v36, %v7628_v49  ;;  %v7968_v36 = vrot.slane %v7913_v55, 1  ;;  %v7963_v49 = vrot.slane %v9052_v58, 1  ;;  %v7970_v0 = vrot.slane %v7914_v30, 1  ;;  %v9018_v30 = vld [vmem:[%s10638_s15 + $0x68] sm:$0x1] }
 0x33e   : > { %v7622_v38 = vsel %vm10752_vm5, %v7620_v28, %v7621_v3  ;;  %v8988_v14 = vcombine.low %v7626_v32, %v7629_v10  ;;  %v9063_v10 = vld [vmem:[%s10638_s15 + $0x48] sm:$0xff]   ;;  %v9015_v32 = vld [vmem:[%s10638_s15 + $0x5c] sm:$0x1] }
 0x33f   : > { %9948 = vmatmul.mubr.bf16.gmra.mrb[32].mxu1 %v8949_v47  ;;  %v8987_v20 = vcombine.low %v7619_v61, %v7622_v38  ;;  %v9055_v29 = vunpack.c.l.bf16 %v9063_v10  ;;  %v9056_v42 = vunpack.c.h.bf16 %v9063_v10  ;;  %v7971_v48 = vsel %vm7951_vm2, %v7968_v36, %v7970_v0 }
 0x340   : > { %9964 = vmatpush3.bf16.msra.mxu1 %v10510_v26  ;;  %9967 = vmatprep.mubr.bf16.mxu1 %v8982_v41  ;;  %v7632_v26 = vrot.slane %v7555_v54, 5  ;;  %v7920_v51 = vunpack.c.l.bf16 %v9015_v32 }
 0x341   : > { %9965 = vmatprep.subr.bf16.mxu1 %v10511_v18  ;;  %v7973_v24 = vrot.slane %v9056_v42, 1 }
 0x342   : > { %v7634_v47 = vrot.slane %v7632_v26, 4  ;;  %v7633_v4 = vsel %vm10752_vm5, %v8965_v1, %v7632_v26  ;;  %v9012_v1 = vld [vmem:[%s10638_s15 + $0x50] sm:$0x1]  ;;  %v7980_v55 = vrot.slane %v7920_v51, 1 }
 0x343   : > { %v7917_v6 = vunpack.c.l.bf16 %v9012_v1 }
 0x344   : > { %9966 = vmatpush3.bf16.msra.mxu1 %v10511_v18  ;;  %v7635_v18 = vrot.slane %v7556_v21, 5 }
 0x346   : > { %v7636_v41 = vsel %vm10752_vm5, %v7634_v47, %v7635_v18  ;;  %v7969_v47 = vsel %vm7951_vm2, %v7967_v62, %v7968_v36  ;;  %v7919_v18 = vunpack.c.h.bf16 %v9013_v16  ;;  %v7923_v16 = vunpack.c.l.bf16 %v9018_v30 }
 0x347   : > { %9968 = vmatmul.mubr.bf16.vlgmr.msra.gmra.mrb[20].mxu1 %v8983_v34  ;;  %v8989_v63 = vcombine.low %v7633_v4, %v7636_v41  ;;  %v12524_v34 = vld [vmem:[%s12609_s4] ss:$0 sm:$0xff] }
 0x348   : > { %9971 = vmatprep.mubr.bf16.mxu1 %v8984_v2  ;;  %v7955_v2 = vrot.slane %v7905_v5, 1  ;;  %v7978_v44 = vrot.slane %v7919_v18, 1  ;;  %v7985_v1 = vrot.slane %v7923_v16, 1 }
 0x34a   : > { %v7956_v39 = vsel %vm7951_vm2, %v7953_v8, %v7955_v2  ;;  %v7977_v8 = vrot.slane %v7918_v17, 1  ;;  %v7972_v2 = vrot.slane %v9055_v29, 1  ;;  %v7981_v62 = vsel %vm7951_vm2, %v7978_v44, %v7980_v55 }
 0x34f   : > { %9972 = vmatmul.mubr.bf16.gmra.mrb[24].mxu1 %v8985_v52 }
 0x350   : > { %9975 = vmatprep.mubr.bf16.mxu1 %v8986_v15  ;;  %v7911_v15 = vunpack.c.l.bf16 %v9006_v53  ;;  %v9064_v53 = vld [vmem:[%s10638_s15 + $0x60] sm:$0xff]  }
 0x357   : > { %9976 = vmatmul.mubr.bf16.gmra.mrb[28].mxu1 %v8987_v20  ;;  %v7965_v20 = vrot.slane %v7911_v15, 1  ;;  %v9060_v15 = vunpack.c.h.bf16 %v9064_v53 }
 0x358   : > { %9979 = vmatprep.mubr.bf16.mxu1 %v8988_v14 }
 0x359   : > { %v7966_v5 = vsel %vm7951_vm2, %v7963_v49, %v7965_v20 }
 0x35f   : > { %9980 = vmatmul.mubr.bf16.gmra.mrb[32].mxu1 %v8989_v63  ;;  %v7964_v63 = vsel %vm7951_vm2, %v7962_v13, %v7963_v49 }
 0x41a   : > { %v9969_v25 = vpop.f32.mrb[20].mxu1 }
 0x41b   : > { %v8033_v23 = vadd.f32 %v9969_v25, %v12524_v34  ;;  %v7784_v37 = vpop.f32.mrb[21].mxu1  ;;  %v9019_v25 = vld [vmem:[%s10638_s15 + $0x6c] sm:$0xff]  }
 0x41c   : > { %v8031_v59 = vadd.f32 %v12524_v34, %v7784_v37  ;;  %v9970_v7 = vpop.f32.mrb[22].mxu1  ;;  %v7975_v37 = vrot.slane %v7917_v6, 1 }
 0x41d   : > { %v8049_v43 = vadd.f32 %v8033_v23, %v7959_v12  ;;  %v8034_v52 = vadd.f32 %v9970_v7, %v12524_v34  ;;  %v7787_v22 = vpop.f32.mrb[23].mxu1  ;;  %v7924_v7 = vunpack.c.l.bf16 %v9019_v25 }
 0x41e   : > { %v8047_v28 = vadd.f32 %v8031_v59, %v7954_v50  ;;  %v8032_v57 = vadd.f32 %v12524_v34, %v7787_v22  ;;  %v9021_v50 = vld [vmem:[%s10638_s15 + $0x74] sm:$0x1]  ;;  %v7979_v59 = vsel %vm7951_vm2, %v7977_v8, %v7978_v44  ;;  %v7974_v22 = vsel %vm7951_vm2, %v7972_v2, %v7973_v24 }
 0x41f   : > { %v8065_v54 = vmax.f32 %v8049_v43, 0.0  ;;  %v8050_v3 = vadd.f32 %v8034_v52, %v7961_v9  ;;  %v7925_v9 = vunpack.c.h.bf16 %v9019_v25  ;;  %v7926_v36 = vunpack.c.l.bf16 %v9021_v50 }
 0x420   : > { %v8063_v38 = vmax.f32 %v8047_v28, 0.0  ;;  %v8048_v26 = vadd.f32 %v8032_v57, %v7956_v39  ;;  %v9059_v39 = vunpack.c.l.bf16 %v9064_v53  ;;  %v7976_v49 = vsel %vm7951_vm2, %v7973_v24, %v7975_v37 }
 0x421   : > { %8081 = vst [vmem:[%s12539_s9 + $0x10] sm:$0xff] %v8065_v54  ;;  %v8066_v61 = vmax.f32 %v8050_v3, 0.0  ;;  %v7987_v0 = vrot.slane %v7924_v7, 1  ;;  %v7988_v10 = vrot.slane %v7925_v9, 1  ;;  %v7990_v17 = vrot.slane %v7926_v36, 1 }
 0x422   : > { %8079 = vst [vmem:[%s12539_s9] sm:$0xff] %v8063_v38  ;;  %v8064_v21 = vmax.f32 %v8048_v26, 0.0  ;;  %v9973_v14 = vpop.f32.mrb[24].mxu1  ;;  %v7982_v32 = vrot.slane %v9059_v39, 1 }
 0x423   : > { %8082 = vst [vmem:[%s12539_s9 + $0x18] sm:$0xff] %v8066_v61  ;;  %v8037_v41 = vadd.f32 %v9973_v14, %v12524_v34  ;;  %v7800_v4 = vpop.f32.mrb[25].mxu1  ;;  %v7991_v51 = vsel %vm7951_vm2, %v7988_v10, %v7990_v17 }
 0x424   : > { %8080 = vst [vmem:[%s12539_s9 + $0x8] sm:$0xff] %v8064_v21  ;;  %v8035_v56 = vadd.f32 %v12524_v34, %v7800_v4  ;;  %v9974_v31 = vpop.f32.mrb[26].mxu1  ;;  %v7983_v21 = vrot.slane %v9060_v15, 1 }
 0x425   : > { %v8053_v35 = vadd.f32 %v8037_v41, %v7969_v47  ;;  %v8038_v27 = vadd.f32 %v9974_v31, %v12524_v34  ;;  %v7803_v19 = vpop.f32.mrb[27].mxu1 }
 0x426   : > { %v8051_v33 = vadd.f32 %v8035_v56, %v7964_v63  ;;  %v8036_v11 = vadd.f32 %v12524_v34, %v7803_v19  ;;  %v7989_v63 = vsel %vm7951_vm2, %v7987_v0, %v7988_v10  ;;  %v7984_v56 = vsel %vm7951_vm2, %v7982_v32, %v7983_v21 }
 0x427   : > { %v8069_v40 = vmax.f32 %v8053_v35, 0.0  ;;  %v8054_v46 = vadd.f32 %v8038_v27, %v7971_v48 }
 0x428   : > { %v8067_v12 = vmax.f32 %v8051_v33, 0.0  ;;  %v8052_v60 = vadd.f32 %v8036_v11, %v7966_v5  ;;  %v7986_v5 = vsel %vm7951_vm2, %v7983_v21, %v7985_v1 }
 0x429   : > { %8085 = vst [vmem:[%s12539_s9 + $0x30] sm:$0xff] %v8069_v40  ;;  %v8070_v23 = vmax.f32 %v8054_v46, 0.0 }
 0x42a   : > { %8083 = vst [vmem:[%s12539_s9 + $0x20] sm:$0xff] %v8067_v12  ;;  %v8068_v45 = vmax.f32 %v8052_v60, 0.0  ;;  %v9977_v58 = vpop.f32.mrb[28].mxu1 }
 0x42b   : > { %8086 = vst [vmem:[%s12539_s9 + $0x38] sm:$0xff] %v8070_v23  ;;  %v8041_v43 = vadd.f32 %v9977_v58, %v12524_v34  ;;  %v7816_v52 = vpop.f32.mrb[29].mxu1 }
 0x42c   : > { %8084 = vst [vmem:[%s12539_s9 + $0x28] sm:$0xff] %v8068_v45  ;;  %v8039_v28 = vadd.f32 %v12524_v34, %v7816_v52  ;;  %v9978_v57 = vpop.f32.mrb[30].mxu1 }
 0x42d   : > { %v8057_v54 = vadd.f32 %v8041_v43, %v7979_v59  ;;  %v8042_v3 = vadd.f32 %v9978_v57, %v12524_v34  ;;  %v7819_v13 = vpop.f32.mrb[31].mxu1 }
 0x42e   : > { %v8055_v38 = vadd.f32 %v8039_v28, %v7974_v22  ;;  %v8040_v26 = vadd.f32 %v12524_v34, %v7819_v13 }
 0x42f   : > { %v8073_v61 = vmax.f32 %v8057_v54, 0.0  ;;  %v8058_v20 = vadd.f32 %v8042_v3, %v7981_v62 }
 0x430   : > { %v8071_v14 = vmax.f32 %v8055_v38, 0.0  ;;  %v8056_v47 = vadd.f32 %v8040_v26, %v7976_v49 }
 0x431   : > { %8089 = vst [vmem:[%s12539_s9 + $0x50] sm:$0xff] %v8073_v61  ;;  %v8074_v18 = vmax.f32 %v8058_v20, 0.0 }
 0x432   : > { %8087 = vst [vmem:[%s12539_s9 + $0x40] sm:$0xff] %v8071_v14  ;;  %v8072_v41 = vmax.f32 %v8056_v47, 0.0  ;;  %v9981_v4 = vpop.f32.mrb[32].mxu1 }
 0x433   : > { %8090 = vst [vmem:[%s12539_s9 + $0x58] sm:$0xff] %v8074_v18  ;;  %v8045_v29 = vadd.f32 %v9981_v4, %v12524_v34  ;;  %v7832_v42 = vpop.f32.mrb[33].mxu1 }
 0x434   : > { %8088 = vst [vmem:[%s12539_s9 + $0x48] sm:$0xff] %v8072_v41  ;;  %v8043_v31 = vadd.f32 %v12524_v34, %v7832_v42  ;;  %v9982_v48 = vpop.f32.mrb[34].mxu1 }
 0x435   : > { %v8061_v35 = vadd.f32 %v8045_v29, %v7989_v63  ;;  %v8046_v27 = vadd.f32 %v9982_v48, %v12524_v34  ;;  %v7835_v19 = vpop.f32.mrb[35].mxu1 }
 0x436   : > { %v8059_v6 = vadd.f32 %v8043_v31, %v7984_v56  ;;  %v8044_v33 = vadd.f32 %v12524_v34, %v7835_v19 }
 0x437   : > { %v8077_v11 = vmax.f32 %v8061_v35, 0.0  ;;  %v8062_v8 = vadd.f32 %v8046_v27, %v7991_v51 }
 0x438   : > { %v8075_v44 = vmax.f32 %v8059_v6, 0.0  ;;  %v8060_v40 = vadd.f32 %v8044_v33, %v7986_v5 }
 0x439   : > { %8093 = vst [vmem:[%s12539_s9 + $0x70] sm:$0xff] %v8077_v11  ;;  %v8078_v46 = vmax.f32 %v8062_v8, 0.0 }
 0x43a   : > { %8091 = vst [vmem:[%s12539_s9 + $0x60] sm:$0xff] %v8075_v44  ;;  %v8076_v2 = vmax.f32 %v8060_v40, 0.0 }
 0x43b   : > { %8094 = vst [vmem:[%s12539_s9 + $0x78] sm:$0xff] %v8078_v46 }
 0x43c   : > { %8092 = vst [vmem:[%s12539_s9 + $0x68] sm:$0xff] %v8076_v2 }
 0x43d PF: > { %s15_s22 = sadd.s32 1, %s10550_s22   ;;  %s12641_s18 = smov %s10542_s20 }
 0x43e   : > { %p12_p7 = scmp.ge.s32.totalorder %s15_s22, 6   ;;  %s12642_s19 = smov %s10546_s21 }
 0x43f   : > { %s12643_s20 = smov %s12646_s23  ;;  %s12644_s21 = smov %s12650_s24 }
 0x440   :  { %14 = sbr.rel (!%p12_p7) target bundleno = 3 (0x3), region = 90 }

</bundles_post_ra>
